<compile_context>
chip_gen: v7x
topology: tpu7x:2x2x1
jax: 0.10.0
libtpu: 0.0.40
codegen_flags: <defaults>
</compile_context>

<pallas_src>
import functools
from math import sqrt

import jax
import jax.numpy as jnp
from jax.experimental import pallas as pl
from jax.experimental.pallas import tpu as pltpu


# ----------------------------------------------------------------------------
# Fused kernel: one batch element per grid step, all 7 conv layers in VMEM.
#   x_ref   : (1, H, W*C)      input activation (lane-dense)
#   refs    : [w0, b0, ..., w6, b6, out_ref, pad_ref]
#   w_i     : (3, W*Cin, W*Cout) banded weights (kw shifts folded in)
#   b_i     : (1, W*Cout)        bias tiled across W positions
#   out_ref : (1, H, W*Cout5)
#   pad_ref : (H+2, W*C) VMEM scratch, rows 0 and H+1 stay zero (H padding)
# ----------------------------------------------------------------------------
def _fused_kernel(x_ref, *refs, H, W):
    *wb_refs, out_ref, pad_ref = refs
    w_refs = wb_refs[0::2]
    b_refs = wb_refs[1::2]

    def conv_band(act, w_ref, b_ref, relu):
        # act: (H, W*Cin) value.  Write into padded scratch (rows 1..H).
        pad_ref[1:H + 1, :] = act
        wco = w_ref.shape[-1]
        acc = jnp.zeros((H, wco), jnp.float32)
        # 3 matmuls, one per kernel-height tap; W shifts are inside w_ref[dh].
        for dh in range(3):
            acc = acc + jnp.dot(pad_ref[dh:dh + H, :], w_ref[dh],
                                preferred_element_type=jnp.float32)
        acc = acc + b_ref[...]          # (1, W*Cout) broadcast over H rows
        if relu:
            acc = jnp.maximum(acc, 0.0)
        return acc

    # Zero the padded scratch once per image (border rows stay zero afterwards).
    pad_ref[...] = jnp.zeros_like(pad_ref)

    act = x_ref[0]                      # (H, W*C)

    def res_block(a, idx):
        y0 = conv_band(a, w_refs[idx], b_refs[idx], True)       # preprocess
        y1 = conv_band(y0, w_refs[idx + 1], b_refs[idx + 1], True)
        y2 = conv_band(y1, w_refs[idx + 2], b_refs[idx + 2], True) + y0
        return y2

    act = res_block(act, 0)             # res_conv1
    act = res_block(act, 3)             # res_conv2
    out = conv_band(act, w_refs[6], b_refs[6], False)            # conv5
    out_ref[...] = out.reshape(1, *out.shape).astype(out_ref.dtype)


# ----------------------------------------------------------------------------
# Host-side weight preparation: fold the kw (width) taps of each 3x3 conv into
# a banded (W*Cin, W*Cout) matrix per kh tap, and tile biases across W.
# ----------------------------------------------------------------------------
def _make_band_weight(w, W):
    """w: (3, 3, Cin, Cout) HWIO -> (3, W*Cin, W*Cout) banded matrix."""
    kh, kw, cin, cout = w.shape
    band = jnp.zeros((kh, W * cin, W * cout), w.dtype)
    for dw in range(kw):
        for wo in range(W):
            wi = wo + dw - 1            # padding = 1
            if 0 <= wi < W:
                band = band.at[:, wi * cin:(wi + 1) * cin,
                               wo * cout:(wo + 1) * cout].set(w[:, dw])
    return band


def prepare_params(params, W):
    """Flatten params into a list of (band_weight, tiled_bias) per conv layer."""
    layers = list(params["res_conv1"]) + list(params["res_conv2"]) + \
        [params["conv5"]]
    prepared = []
    for w, b in layers:
        cout = w.shape[-1]
        prepared.append((_make_band_weight(w, W),
                         jnp.tile(b, W).reshape(1, W * cout)))
    return prepared


# ----------------------------------------------------------------------------
# Model wrapper: single fused pallas_call.
# ----------------------------------------------------------------------------
def classification_model(x_nchw, prepared, num_anchors, num_classes):
    B, C, H, W = x_nchw.shape
    x = jnp.transpose(x_nchw, (0, 2, 3, 1)).reshape(B, H, W * C)   # lane-dense

    pad_cols = W * C
    args = [x]
    in_specs = [pl.BlockSpec((1, H, W * C), lambda b: (b, 0, 0))]
    for band, btile in prepared:
        assert band.shape[1] == pad_cols, "all layers share Cin=feature_size"
        args += [band, btile]
        in_specs += [
            pl.BlockSpec(band.shape, lambda b: (0, 0, 0)),   # weights: resident
            pl.BlockSpec(btile.shape, lambda b: (0, 0)),
        ]
    wcout5 = prepared[-1][0].shape[-1]                       # W * A * num_classes

    out = pl.pallas_call(
        functools.partial(_fused_kernel, H=H, W=W),
        out_shape=jax.ShapeDtypeStruct((B, H, wcout5), jnp.float32),
        grid=(B,),
        in_specs=in_specs,
        out_specs=pl.BlockSpec((1, H, wcout5), lambda b: (b, 0, 0)),
        scratch_shapes=[pltpu.VMEM((H + 2, pad_cols), jnp.float32)],
        compiler_params=pltpu.CompilerParams(
            dimension_semantics=("parallel",),
            vmem_limit_bytes=32 * 1024 * 1024),
    )(*args)

    # (B, H, W*A*NC) -> (B, H*W*A, NC)   (same ordering as permute+view in torch)
    return out.reshape(B, H * W * num_anchors, num_classes)


# ----------------------------------------------------------------------------
# Deterministic parameter init (shapes from the module's __init__).
# ----------------------------------------------------------------------------
def init_conv(key, cin, cout):
    kw, kb = jax.random.split(key)
    limit = 1.0 / sqrt(cin * 9)
    w = jax.random.uniform(kw, (3, 3, cin, cout), jnp.float32, -limit, limit)
    b = jax.random.uniform(kb, (cout,), jnp.float32, -limit, limit)
    return w, b


def init_params(key, feature_size, num_anchors, num_classes):
    keys = jax.random.split(key, 7)
    return {
        "res_conv1": tuple(init_conv(keys[i], feature_size, feature_size)
                           for i in range(3)),
        "res_conv2": tuple(init_conv(keys[3 + i], feature_size, feature_size)
                           for i in range(3)),
        "conv5": init_conv(keys[6], feature_size, num_anchors * num_classes),
    }


# ----------------------------------------------------------------------------
# Pure-JAX reference (for correctness check only).
# ----------------------------------------------------------------------------
def conv3x3_ref(x, w, b, relu=False, residual=None):
    out = jax.lax.conv_general_dilated(
        x, w, window_strides=(1, 1), padding="SAME",
        dimension_numbers=("NHWC", "HWIO", "NHWC"))
    out = out + b.reshape(1, 1, 1, -1)
    if relu:
        out = jnp.maximum(out, 0.0)
    if residual is not None:
        out = out + residual
    return out


def classification_model_ref(x_nchw, params, num_anchors, num_classes):
    x = jnp.transpose(x_nchw, (0, 2, 3, 1))

    def block(x, p):
        (w0, b0), (w1, b1), (w2, b2) = p
        y0 = conv3x3_ref(x, w0, b0, relu=True)
        y1 = conv3x3_ref(y0, w1, b1, relu=True)
        return conv3x3_ref(y1, w2, b2, relu=True, residual=y0)

    out = block(x, params["res_conv1"])
    out = block(out, params["res_conv2"])
    w5, b5 = params["conv5"]
    out = conv3x3_ref(out, w5, b5, relu=False)
    B, H, W, _ = out.shape
    return out.reshape(B, H * W * num_anchors, num_classes)


if __name__ == "__main__":
    # batch=2, feature_size=32, spatial=8x8, num_anchors=4, num_classes=8
    #   -> conv5 out channels = 32, output (2, 256, 8).
    B, FEAT, Hs, Ws = 2, 32, 8, 8
    NUM_ANCHORS, NUM_CLASSES = 4, 8

    key = jax.random.PRNGKey(0)
    kp, kx = jax.random.split(key)
    params = init_params(kp, FEAT, NUM_ANCHORS, NUM_CLASSES)
    x = jax.random.normal(kx, (B, FEAT, Hs, Ws), jnp.float32)   # NCHW input

    prepared = prepare_params(params, Ws)                       # one-time fold
    fwd = jax.jit(functools.partial(classification_model,
                                    num_anchors=NUM_ANCHORS,
                                    num_classes=NUM_CLASSES))
    out = fwd(x, prepared)
    jax.block_until_ready(out)

    assert out.shape == (B, Hs * Ws * NUM_ANCHORS, NUM_CLASSES), out.shape
    ref = classification_model_ref(x, params, NUM_ANCHORS, NUM_CLASSES)
    max_err = float(jnp.max(jnp.abs(out - ref)))
    assert jnp.allclose(out, ref, atol=2e-3, rtol=2e-3), max_err

    print("KERNEL_OK")
</pallas_src>

<mosaic_0001>
module attributes {stable_mosaic.version = 11 : i64} {
  func.func @_fused_kernel(%arg0: i32, %arg1: memref<1x8x256xf32, #tpu.memory_space<vmem>>, %arg2: memref<3x256x256xf32, #tpu.memory_space<vmem>>, %arg3: memref<1x256xf32, #tpu.memory_space<vmem>>, %arg4: memref<3x256x256xf32, #tpu.memory_space<vmem>>, %arg5: memref<1x256xf32, #tpu.memory_space<vmem>>, %arg6: memref<3x256x256xf32, #tpu.memory_space<vmem>>, %arg7: memref<1x256xf32, #tpu.memory_space<vmem>>, %arg8: memref<3x256x256xf32, #tpu.memory_space<vmem>>, %arg9: memref<1x256xf32, #tpu.memory_space<vmem>>, %arg10: memref<3x256x256xf32, #tpu.memory_space<vmem>>, %arg11: memref<1x256xf32, #tpu.memory_space<vmem>>, %arg12: memref<3x256x256xf32, #tpu.memory_space<vmem>>, %arg13: memref<1x256xf32, #tpu.memory_space<vmem>>, %arg14: memref<3x256x256xf32, #tpu.memory_space<vmem>>, %arg15: memref<1x256xf32, #tpu.memory_space<vmem>>, %arg16: memref<1x8x256xf32, #tpu.memory_space<vmem>>, %arg17: memref<10x256xf32, #tpu.memory_space<vmem>>) attributes {dimension_semantics = [#tpu.dimension_semantics<parallel>], iteration_bounds = array<i64: 2>, scalar_prefetch = 0 : i64, scratch_operands = 1 : i64, tpu.core_type = #tpu.core_type<tc>, window_params = [{transform_indices = @transform_0, window_bounds = array<i64: 1, 8, 256>}, {pipeline_mode = #tpu.pipeline_mode<synchronous>, transform_indices = @transform_1, window_bounds = array<i64: 3, 256, 256>}, {pipeline_mode = #tpu.pipeline_mode<synchronous>, transform_indices = @transform_2, window_bounds = array<i64: 1, 256>}, {pipeline_mode = #tpu.pipeline_mode<synchronous>, transform_indices = @transform_3, window_bounds = array<i64: 3, 256, 256>}, {pipeline_mode = #tpu.pipeline_mode<synchronous>, transform_indices = @transform_4, window_bounds = array<i64: 1, 256>}, {pipeline_mode = #tpu.pipeline_mode<synchronous>, transform_indices = @transform_5, window_bounds = array<i64: 3, 256, 256>}, {pipeline_mode = #tpu.pipeline_mode<synchronous>, transform_indices = @transform_6, window_bounds = array<i64: 1, 256>}, {pipeline_mode = #tpu.pipeline_mode<synchronous>, transform_indices = @transform_7, window_bounds = array<i64: 3, 256, 256>}, {pipeline_mode = #tpu.pipeline_mode<synchronous>, transform_indices = @transform_8, window_bounds = array<i64: 1, 256>}, {pipeline_mode = #tpu.pipeline_mode<synchronous>, transform_indices = @transform_9, window_bounds = array<i64: 3, 256, 256>}, {pipeline_mode = #tpu.pipeline_mode<synchronous>, transform_indices = @transform_10, window_bounds = array<i64: 1, 256>}, {pipeline_mode = #tpu.pipeline_mode<synchronous>, transform_indices = @transform_11, window_bounds = array<i64: 3, 256, 256>}, {pipeline_mode = #tpu.pipeline_mode<synchronous>, transform_indices = @transform_12, window_bounds = array<i64: 1, 256>}, {pipeline_mode = #tpu.pipeline_mode<synchronous>, transform_indices = @transform_13, window_bounds = array<i64: 3, 256, 256>}, {pipeline_mode = #tpu.pipeline_mode<synchronous>, transform_indices = @transform_14, window_bounds = array<i64: 1, 256>}, {transform_indices = @transform_15, window_bounds = array<i64: 1, 8, 256>}]} {
    %cst = arith.constant 0.000000e+00 : f32
    %0 = vector.broadcast %cst : f32 to vector<10x256xf32>
    %c0 = arith.constant 0 : index
    %c0_0 = arith.constant 0 : index
    %1 = vector.load %arg17[%c0, %c0_0] : memref<10x256xf32, #tpu.memory_space<vmem>>, vector<10x256xf32>
    tpu.vector_store %arg17[%c0, %c0_0], %0 {strides = array<i32>} : memref<10x256xf32, #tpu.memory_space<vmem>>, vector<10x256xf32>,
    %c0_1 = arith.constant 0 : index
    %c0_2 = arith.constant 0 : index
    %c0_3 = arith.constant 0 : index
    %2 = vector.load %arg1[%c0_1, %c0_2, %c0_3] : memref<1x8x256xf32, #tpu.memory_space<vmem>>, vector<1x8x256xf32>
    %3 = vector.shape_cast %2 : vector<1x8x256xf32> to vector<8x256xf32>
    %c1 = arith.constant 1 : index
    %c0_4 = arith.constant 0 : index
    %4 = vector.load %arg17[%c1, %c0_4] : memref<10x256xf32, #tpu.memory_space<vmem>>, vector<8x256xf32>
    tpu.vector_store %arg17[%c1, %c0_4], %3 {strides = array<i32>} : memref<10x256xf32, #tpu.memory_space<vmem>>, vector<8x256xf32>,
    %cst_5 = arith.constant 0.000000e+00 : f32
    %5 = vector.broadcast %cst_5 : f32 to vector<8x256xf32>
    %c0_6 = arith.constant 0 : index
    %c0_7 = arith.constant 0 : index
    %6 = vector.load %arg17[%c0_6, %c0_7] : memref<10x256xf32, #tpu.memory_space<vmem>>, vector<8x256xf32>
    %c0_8 = arith.constant 0 : index
    %c0_9 = arith.constant 0 : index
    %c0_10 = arith.constant 0 : index
    %7 = vector.load %arg2[%c0_8, %c0_9, %c0_10] : memref<3x256x256xf32, #tpu.memory_space<vmem>>, vector<1x256x256xf32>
    %8 = vector.shape_cast %7 : vector<1x256x256xf32> to vector<256x256xf32>
    %cst_11 = arith.constant dense<0.000000e+00> : vector<8x256xf32>
    %9 = tpu.matmul %6, %8, %cst_11 {dimension_numbers = #tpu.dot_dimension_numbers<[1], [0], [0], [1], [0, 0, 1, 1], [], []>} : vector<8x256xf32>, vector<256x256xf32>, vector<8x256xf32> -> vector<8x256xf32>
    %10 = arith.addf %5, %9 : vector<8x256xf32>
    %c1_12 = arith.constant 1 : index
    %c0_13 = arith.constant 0 : index
    %11 = vector.load %arg17[%c1_12, %c0_13] : memref<10x256xf32, #tpu.memory_space<vmem>>, vector<8x256xf32>
    %c1_14 = arith.constant 1 : index
    %c0_15 = arith.constant 0 : index
    %c0_16 = arith.constant 0 : index
    %12 = vector.load %arg2[%c1_14, %c0_15, %c0_16] : memref<3x256x256xf32, #tpu.memory_space<vmem>>, vector<1x256x256xf32>
    %13 = vector.shape_cast %12 : vector<1x256x256xf32> to vector<256x256xf32>
    %cst_17 = arith.constant dense<0.000000e+00> : vector<8x256xf32>
    %14 = tpu.matmul %11, %13, %cst_17 {dimension_numbers = #tpu.dot_dimension_numbers<[1], [0], [0], [1], [0, 0, 1, 1], [], []>} : vector<8x256xf32>, vector<256x256xf32>, vector<8x256xf32> -> vector<8x256xf32>
    %15 = arith.addf %10, %14 : vector<8x256xf32>
    %c2 = arith.constant 2 : index
    %c0_18 = arith.constant 0 : index
    %16 = vector.load %arg17[%c2, %c0_18] : memref<10x256xf32, #tpu.memory_space<vmem>>, vector<8x256xf32>
    %c2_19 = arith.constant 2 : index
    %c0_20 = arith.constant 0 : index
    %c0_21 = arith.constant 0 : index
    %17 = vector.load %arg2[%c2_19, %c0_20, %c0_21] : memref<3x256x256xf32, #tpu.memory_space<vmem>>, vector<1x256x256xf32>
    %18 = vector.shape_cast %17 : vector<1x256x256xf32> to vector<256x256xf32>
    %cst_22 = arith.constant dense<0.000000e+00> : vector<8x256xf32>
    %19 = tpu.matmul %16, %18, %cst_22 {dimension_numbers = #tpu.dot_dimension_numbers<[1], [0], [0], [1], [0, 0, 1, 1], [], []>} : vector<8x256xf32>, vector<256x256xf32>, vector<8x256xf32> -> vector<8x256xf32>
    %20 = arith.addf %15, %19 : vector<8x256xf32>
    %c0_23 = arith.constant 0 : index
    %c0_24 = arith.constant 0 : index
    %21 = vector.load %arg3[%c0_23, %c0_24] : memref<1x256xf32, #tpu.memory_space<vmem>>, vector<1x256xf32>
    %22 = vector.broadcast %21 : vector<1x256xf32> to vector<8x256xf32>
    %23 = arith.addf %20, %22 : vector<8x256xf32>
    %cst_25 = arith.constant 0.000000e+00 : f32
    %24 = vector.broadcast %cst_25 : f32 to vector<8x256xf32>
    %25 = arith.maximumf %23, %24 : vector<8x256xf32>
    %c1_26 = arith.constant 1 : index
    %c0_27 = arith.constant 0 : index
    %26 = vector.load %arg17[%c1_26, %c0_27] : memref<10x256xf32, #tpu.memory_space<vmem>>, vector<8x256xf32>
    tpu.vector_store %arg17[%c1_26, %c0_27], %25 {strides = array<i32>} : memref<10x256xf32, #tpu.memory_space<vmem>>, vector<8x256xf32>,
    %cst_28 = arith.constant 0.000000e+00 : f32
    %27 = vector.broadcast %cst_28 : f32 to vector<8x256xf32>
    %c0_29 = arith.constant 0 : index
    %c0_30 = arith.constant 0 : index
    %28 = vector.load %arg17[%c0_29, %c0_30] : memref<10x256xf32, #tpu.memory_space<vmem>>, vector<8x256xf32>
    %c0_31 = arith.constant 0 : index
    %c0_32 = arith.constant 0 : index
    %c0_33 = arith.constant 0 : index
    %29 = vector.load %arg4[%c0_31, %c0_32, %c0_33] : memref<3x256x256xf32, #tpu.memory_space<vmem>>, vector<1x256x256xf32>
    %30 = vector.shape_cast %29 : vector<1x256x256xf32> to vector<256x256xf32>
    %cst_34 = arith.constant dense<0.000000e+00> : vector<8x256xf32>
    %31 = tpu.matmul %28, %30, %cst_34 {dimension_numbers = #tpu.dot_dimension_numbers<[1], [0], [0], [1], [0, 0, 1, 1], [], []>} : vector<8x256xf32>, vector<256x256xf32>, vector<8x256xf32> -> vector<8x256xf32>
    %32 = arith.addf %27, %31 : vector<8x256xf32>
    %c1_35 = arith.constant 1 : index
    %c0_36 = arith.constant 0 : index
    %33 = vector.load %arg17[%c1_35, %c0_36] : memref<10x256xf32, #tpu.memory_space<vmem>>, vector<8x256xf32>
    %c1_37 = arith.constant 1 : index
    %c0_38 = arith.constant 0 : index
    %c0_39 = arith.constant 0 : index
    %34 = vector.load %arg4[%c1_37, %c0_38, %c0_39] : memref<3x256x256xf32, #tpu.memory_space<vmem>>, vector<1x256x256xf32>
    %35 = vector.shape_cast %34 : vector<1x256x256xf32> to vector<256x256xf32>
    %cst_40 = arith.constant dense<0.000000e+00> : vector<8x256xf32>
    %36 = tpu.matmul %33, %35, %cst_40 {dimension_numbers = #tpu.dot_dimension_numbers<[1], [0], [0], [1], [0, 0, 1, 1], [], []>} : vector<8x256xf32>, vector<256x256xf32>, vector<8x256xf32> -> vector<8x256xf32>
    %37 = arith.addf %32, %36 : vector<8x256xf32>
    %c2_41 = arith.constant 2 : index
    %c0_42 = arith.constant 0 : index
    %38 = vector.load %arg17[%c2_41, %c0_42] : memref<10x256xf32, #tpu.memory_space<vmem>>, vector<8x256xf32>
    %c2_43 = arith.constant 2 : index
    %c0_44 = arith.constant 0 : index
    %c0_45 = arith.constant 0 : index
    %39 = vector.load %arg4[%c2_43, %c0_44, %c0_45] : memref<3x256x256xf32, #tpu.memory_space<vmem>>, vector<1x256x256xf32>
    %40 = vector.shape_cast %39 : vector<1x256x256xf32> to vector<256x256xf32>
    %cst_46 = arith.constant dense<0.000000e+00> : vector<8x256xf32>
    %41 = tpu.matmul %38, %40, %cst_46 {dimension_numbers = #tpu.dot_dimension_numbers<[1], [0], [0], [1], [0, 0, 1, 1], [], []>} : vector<8x256xf32>, vector<256x256xf32>, vector<8x256xf32> -> vector<8x256xf32>
    %42 = arith.addf %37, %41 : vector<8x256xf32>
    %c0_47 = arith.constant 0 : index
    %c0_48 = arith.constant 0 : index
    %43 = vector.load %arg5[%c0_47, %c0_48] : memref<1x256xf32, #tpu.memory_space<vmem>>, vector<1x256xf32>
    %44 = vector.broadcast %43 : vector<1x256xf32> to vector<8x256xf32>
    %45 = arith.addf %42, %44 : vector<8x256xf32>
    %cst_49 = arith.constant 0.000000e+00 : f32
    %46 = vector.broadcast %cst_49 : f32 to vector<8x256xf32>
    %47 = arith.maximumf %45, %46 : vector<8x256xf32>
    %c1_50 = arith.constant 1 : index
    %c0_51 = arith.constant 0 : index
    %48 = vector.load %arg17[%c1_50, %c0_51] : memref<10x256xf32, #tpu.memory_space<vmem>>, vector<8x256xf32>
    tpu.vector_store %arg17[%c1_50, %c0_51], %47 {strides = array<i32>} : memref<10x256xf32, #tpu.memory_space<vmem>>, vector<8x256xf32>,
    %cst_52 = arith.constant 0.000000e+00 : f32
    %49 = vector.broadcast %cst_52 : f32 to vector<8x256xf32>
    %c0_53 = arith.constant 0 : index
    %c0_54 = arith.constant 0 : index
    %50 = vector.load %arg17[%c0_53, %c0_54] : memref<10x256xf32, #tpu.memory_space<vmem>>, vector<8x256xf32>
    %c0_55 = arith.constant 0 : index
    %c0_56 = arith.constant 0 : index
    %c0_57 = arith.constant 0 : index
    %51 = vector.load %arg6[%c0_55, %c0_56, %c0_57] : memref<3x256x256xf32, #tpu.memory_space<vmem>>, vector<1x256x256xf32>
    %52 = vector.shape_cast %51 : vector<1x256x256xf32> to vector<256x256xf32>
    %cst_58 = arith.constant dense<0.000000e+00> : vector<8x256xf32>
    %53 = tpu.matmul %50, %52, %cst_58 {dimension_numbers = #tpu.dot_dimension_numbers<[1], [0], [0], [1], [0, 0, 1, 1], [], []>} : vector<8x256xf32>, vector<256x256xf32>, vector<8x256xf32> -> vector<8x256xf32>
    %54 = arith.addf %49, %53 : vector<8x256xf32>
    %c1_59 = arith.constant 1 : index
    %c0_60 = arith.constant 0 : index
    %55 = vector.load %arg17[%c1_59, %c0_60] : memref<10x256xf32, #tpu.memory_space<vmem>>, vector<8x256xf32>
    %c1_61 = arith.constant 1 : index
    %c0_62 = arith.constant 0 : index
    %c0_63 = arith.constant 0 : index
    %56 = vector.load %arg6[%c1_61, %c0_62, %c0_63] : memref<3x256x256xf32, #tpu.memory_space<vmem>>, vector<1x256x256xf32>
    %57 = vector.shape_cast %56 : vector<1x256x256xf32> to vector<256x256xf32>
    %cst_64 = arith.constant dense<0.000000e+00> : vector<8x256xf32>
    %58 = tpu.matmul %55, %57, %cst_64 {dimension_numbers = #tpu.dot_dimension_numbers<[1], [0], [0], [1], [0, 0, 1, 1], [], []>} : vector<8x256xf32>, vector<256x256xf32>, vector<8x256xf32> -> vector<8x256xf32>
    %59 = arith.addf %54, %58 : vector<8x256xf32>
    %c2_65 = arith.constant 2 : index
    %c0_66 = arith.constant 0 : index
    %60 = vector.load %arg17[%c2_65, %c0_66] : memref<10x256xf32, #tpu.memory_space<vmem>>, vector<8x256xf32>
    %c2_67 = arith.constant 2 : index
    %c0_68 = arith.constant 0 : index
    %c0_69 = arith.constant 0 : index
    %61 = vector.load %arg6[%c2_67, %c0_68, %c0_69] : memref<3x256x256xf32, #tpu.memory_space<vmem>>, vector<1x256x256xf32>
    %62 = vector.shape_cast %61 : vector<1x256x256xf32> to vector<256x256xf32>
    %cst_70 = arith.constant dense<0.000000e+00> : vector<8x256xf32>
    %63 = tpu.matmul %60, %62, %cst_70 {dimension_numbers = #tpu.dot_dimension_numbers<[1], [0], [0], [1], [0, 0, 1, 1], [], []>} : vector<8x256xf32>, vector<256x256xf32>, vector<8x256xf32> -> vector<8x256xf32>
    %64 = arith.addf %59, %63 : vector<8x256xf32>
    %c0_71 = arith.constant 0 : index
    %c0_72 = arith.constant 0 : index
    %65 = vector.load %arg7[%c0_71, %c0_72] : memref<1x256xf32, #tpu.memory_space<vmem>>, vector<1x256xf32>
    %66 = vector.broadcast %65 : vector<1x256xf32> to vector<8x256xf32>
    %67 = arith.addf %64, %66 : vector<8x256xf32>
    %cst_73 = arith.constant 0.000000e+00 : f32
    %68 = vector.broadcast %cst_73 : f32 to vector<8x256xf32>
    %69 = arith.maximumf %67, %68 : vector<8x256xf32>
    %70 = arith.addf %69, %25 : vector<8x256xf32>
    %c1_74 = arith.constant 1 : index
    %c0_75 = arith.constant 0 : index
    %71 = vector.load %arg17[%c1_74, %c0_75] : memref<10x256xf32, #tpu.memory_space<vmem>>, vector<8x256xf32>
    tpu.vector_store %arg17[%c1_74, %c0_75], %70 {strides = array<i32>} : memref<10x256xf32, #tpu.memory_space<vmem>>, vector<8x256xf32>,
    %cst_76 = arith.constant 0.000000e+00 : f32
    %72 = vector.broadcast %cst_76 : f32 to vector<8x256xf32>
    %c0_77 = arith.constant 0 : index
    %c0_78 = arith.constant 0 : index
    %73 = vector.load %arg17[%c0_77, %c0_78] : memref<10x256xf32, #tpu.memory_space<vmem>>, vector<8x256xf32>
    %c0_79 = arith.constant 0 : index
    %c0_80 = arith.constant 0 : index
    %c0_81 = arith.constant 0 : index
    %74 = vector.load %arg8[%c0_79, %c0_80, %c0_81] : memref<3x256x256xf32, #tpu.memory_space<vmem>>, vector<1x256x256xf32>
    %75 = vector.shape_cast %74 : vector<1x256x256xf32> to vector<256x256xf32>
    %cst_82 = arith.constant dense<0.000000e+00> : vector<8x256xf32>
    %76 = tpu.matmul %73, %75, %cst_82 {dimension_numbers = #tpu.dot_dimension_numbers<[1], [0], [0], [1], [0, 0, 1, 1], [], []>} : vector<8x256xf32>, vector<256x256xf32>, vector<8x256xf32> -> vector<8x256xf32>
    %77 = arith.addf %72, %76 : vector<8x256xf32>
    %c1_83 = arith.constant 1 : index
    %c0_84 = arith.constant 0 : index
    %78 = vector.load %arg17[%c1_83, %c0_84] : memref<10x256xf32, #tpu.memory_space<vmem>>, vector<8x256xf32>
    %c1_85 = arith.constant 1 : index
    %c0_86 = arith.constant 0 : index
    %c0_87 = arith.constant 0 : index
    %79 = vector.load %arg8[%c1_85, %c0_86, %c0_87] : memref<3x256x256xf32, #tpu.memory_space<vmem>>, vector<1x256x256xf32>
    %80 = vector.shape_cast %79 : vector<1x256x256xf32> to vector<256x256xf32>
    %cst_88 = arith.constant dense<0.000000e+00> : vector<8x256xf32>
    %81 = tpu.matmul %78, %80, %cst_88 {dimension_numbers = #tpu.dot_dimension_numbers<[1], [0], [0], [1], [0, 0, 1, 1], [], []>} : vector<8x256xf32>, vector<256x256xf32>, vector<8x256xf32> -> vector<8x256xf32>
    %82 = arith.addf %77, %81 : vector<8x256xf32>
    %c2_89 = arith.constant 2 : index
    %c0_90 = arith.constant 0 : index
    %83 = vector.load %arg17[%c2_89, %c0_90] : memref<10x256xf32, #tpu.memory_space<vmem>>, vector<8x256xf32>
    %c2_91 = arith.constant 2 : index
    %c0_92 = arith.constant 0 : index
    %c0_93 = arith.constant 0 : index
    %84 = vector.load %arg8[%c2_91, %c0_92, %c0_93] : memref<3x256x256xf32, #tpu.memory_space<vmem>>, vector<1x256x256xf32>
    %85 = vector.shape_cast %84 : vector<1x256x256xf32> to vector<256x256xf32>
    %cst_94 = arith.constant dense<0.000000e+00> : vector<8x256xf32>
    %86 = tpu.matmul %83, %85, %cst_94 {dimension_numbers = #tpu.dot_dimension_numbers<[1], [0], [0], [1], [0, 0, 1, 1], [], []>} : vector<8x256xf32>, vector<256x256xf32>, vector<8x256xf32> -> vector<8x256xf32>
    %87 = arith.addf %82, %86 : vector<8x256xf32>
    %c0_95 = arith.constant 0 : index
    %c0_96 = arith.constant 0 : index
    %88 = vector.load %arg9[%c0_95, %c0_96] : memref<1x256xf32, #tpu.memory_space<vmem>>, vector<1x256xf32>
    %89 = vector.broadcast %88 : vector<1x256xf32> to vector<8x256xf32>
    %90 = arith.addf %87, %89 : vector<8x256xf32>
    %cst_97 = arith.constant 0.000000e+00 : f32
    %91 = vector.broadcast %cst_97 : f32 to vector<8x256xf32>
    %92 = arith.maximumf %90, %91 : vector<8x256xf32>
    %c1_98 = arith.constant 1 : index
    %c0_99 = arith.constant 0 : index
    %93 = vector.load %arg17[%c1_98, %c0_99] : memref<10x256xf32, #tpu.memory_space<vmem>>, vector<8x256xf32>
    tpu.vector_store %arg17[%c1_98, %c0_99], %92 {strides = array<i32>} : memref<10x256xf32, #tpu.memory_space<vmem>>, vector<8x256xf32>,
    %cst_100 = arith.constant 0.000000e+00 : f32
    %94 = vector.broadcast %cst_100 : f32 to vector<8x256xf32>
    %c0_101 = arith.constant 0 : index
    %c0_102 = arith.constant 0 : index
    %95 = vector.load %arg17[%c0_101, %c0_102] : memref<10x256xf32, #tpu.memory_space<vmem>>, vector<8x256xf32>
    %c0_103 = arith.constant 0 : index
    %c0_104 = arith.constant 0 : index
    %c0_105 = arith.constant 0 : index
    %96 = vector.load %arg10[%c0_103, %c0_104, %c0_105] : memref<3x256x256xf32, #tpu.memory_space<vmem>>, vector<1x256x256xf32>
    %97 = vector.shape_cast %96 : vector<1x256x256xf32> to vector<256x256xf32>
    %cst_106 = arith.constant dense<0.000000e+00> : vector<8x256xf32>
    %98 = tpu.matmul %95, %97, %cst_106 {dimension_numbers = #tpu.dot_dimension_numbers<[1], [0], [0], [1], [0, 0, 1, 1], [], []>} : vector<8x256xf32>, vector<256x256xf32>, vector<8x256xf32> -> vector<8x256xf32>
    %99 = arith.addf %94, %98 : vector<8x256xf32>
    %c1_107 = arith.constant 1 : index
    %c0_108 = arith.constant 0 : index
    %100 = vector.load %arg17[%c1_107, %c0_108] : memref<10x256xf32, #tpu.memory_space<vmem>>, vector<8x256xf32>
    %c1_109 = arith.constant 1 : index
    %c0_110 = arith.constant 0 : index
    %c0_111 = arith.constant 0 : index
    %101 = vector.load %arg10[%c1_109, %c0_110, %c0_111] : memref<3x256x256xf32, #tpu.memory_space<vmem>>, vector<1x256x256xf32>
    %102 = vector.shape_cast %101 : vector<1x256x256xf32> to vector<256x256xf32>
    %cst_112 = arith.constant dense<0.000000e+00> : vector<8x256xf32>
    %103 = tpu.matmul %100, %102, %cst_112 {dimension_numbers = #tpu.dot_dimension_numbers<[1], [0], [0], [1], [0, 0, 1, 1], [], []>} : vector<8x256xf32>, vector<256x256xf32>, vector<8x256xf32> -> vector<8x256xf32>
    %104 = arith.addf %99, %103 : vector<8x256xf32>
    %c2_113 = arith.constant 2 : index
    %c0_114 = arith.constant 0 : index
    %105 = vector.load %arg17[%c2_113, %c0_114] : memref<10x256xf32, #tpu.memory_space<vmem>>, vector<8x256xf32>
    %c2_115 = arith.constant 2 : index
    %c0_116 = arith.constant 0 : index
    %c0_117 = arith.constant 0 : index
    %106 = vector.load %arg10[%c2_115, %c0_116, %c0_117] : memref<3x256x256xf32, #tpu.memory_space<vmem>>, vector<1x256x256xf32>
    %107 = vector.shape_cast %106 : vector<1x256x256xf32> to vector<256x256xf32>
    %cst_118 = arith.constant dense<0.000000e+00> : vector<8x256xf32>
    %108 = tpu.matmul %105, %107, %cst_118 {dimension_numbers = #tpu.dot_dimension_numbers<[1], [0], [0], [1], [0, 0, 1, 1], [], []>} : vector<8x256xf32>, vector<256x256xf32>, vector<8x256xf32> -> vector<8x256xf32>
    %109 = arith.addf %104, %108 : vector<8x256xf32>
    %c0_119 = arith.constant 0 : index
    %c0_120 = arith.constant 0 : index
    %110 = vector.load %arg11[%c0_119, %c0_120] : memref<1x256xf32, #tpu.memory_space<vmem>>, vector<1x256xf32>
    %111 = vector.broadcast %110 : vector<1x256xf32> to vector<8x256xf32>
    %112 = arith.addf %109, %111 : vector<8x256xf32>
    %cst_121 = arith.constant 0.000000e+00 : f32
    %113 = vector.broadcast %cst_121 : f32 to vector<8x256xf32>
    %114 = arith.maximumf %112, %113 : vector<8x256xf32>
    %c1_122 = arith.constant 1 : index
    %c0_123 = arith.constant 0 : index
    %115 = vector.load %arg17[%c1_122, %c0_123] : memref<10x256xf32, #tpu.memory_space<vmem>>, vector<8x256xf32>
    tpu.vector_store %arg17[%c1_122, %c0_123], %114 {strides = array<i32>} : memref<10x256xf32, #tpu.memory_space<vmem>>, vector<8x256xf32>,
    %cst_124 = arith.constant 0.000000e+00 : f32
    %116 = vector.broadcast %cst_124 : f32 to vector<8x256xf32>
    %c0_125 = arith.constant 0 : index
    %c0_126 = arith.constant 0 : index
    %117 = vector.load %arg17[%c0_125, %c0_126] : memref<10x256xf32, #tpu.memory_space<vmem>>, vector<8x256xf32>
    %c0_127 = arith.constant 0 : index
    %c0_128 = arith.constant 0 : index
    %c0_129 = arith.constant 0 : index
    %118 = vector.load %arg12[%c0_127, %c0_128, %c0_129] : memref<3x256x256xf32, #tpu.memory_space<vmem>>, vector<1x256x256xf32>
    %119 = vector.shape_cast %118 : vector<1x256x256xf32> to vector<256x256xf32>
    %cst_130 = arith.constant dense<0.000000e+00> : vector<8x256xf32>
    %120 = tpu.matmul %117, %119, %cst_130 {dimension_numbers = #tpu.dot_dimension_numbers<[1], [0], [0], [1], [0, 0, 1, 1], [], []>} : vector<8x256xf32>, vector<256x256xf32>, vector<8x256xf32> -> vector<8x256xf32>
    %121 = arith.addf %116, %120 : vector<8x256xf32>
    %c1_131 = arith.constant 1 : index
    %c0_132 = arith.constant 0 : index
    %122 = vector.load %arg17[%c1_131, %c0_132] : memref<10x256xf32, #tpu.memory_space<vmem>>, vector<8x256xf32>
    %c1_133 = arith.constant 1 : index
    %c0_134 = arith.constant 0 : index
    %c0_135 = arith.constant 0 : index
    %123 = vector.load %arg12[%c1_133, %c0_134, %c0_135] : memref<3x256x256xf32, #tpu.memory_space<vmem>>, vector<1x256x256xf32>
    %124 = vector.shape_cast %123 : vector<1x256x256xf32> to vector<256x256xf32>
    %cst_136 = arith.constant dense<0.000000e+00> : vector<8x256xf32>
    %125 = tpu.matmul %122, %124, %cst_136 {dimension_numbers = #tpu.dot_dimension_numbers<[1], [0], [0], [1], [0, 0, 1, 1], [], []>} : vector<8x256xf32>, vector<256x256xf32>, vector<8x256xf32> -> vector<8x256xf32>
    %126 = arith.addf %121, %125 : vector<8x256xf32>
    %c2_137 = arith.constant 2 : index
    %c0_138 = arith.constant 0 : index
    %127 = vector.load %arg17[%c2_137, %c0_138] : memref<10x256xf32, #tpu.memory_space<vmem>>, vector<8x256xf32>
    %c2_139 = arith.constant 2 : index
    %c0_140 = arith.constant 0 : index
    %c0_141 = arith.constant 0 : index
    %128 = vector.load %arg12[%c2_139, %c0_140, %c0_141] : memref<3x256x256xf32, #tpu.memory_space<vmem>>, vector<1x256x256xf32>
    %129 = vector.shape_cast %128 : vector<1x256x256xf32> to vector<256x256xf32>
    %cst_142 = arith.constant dense<0.000000e+00> : vector<8x256xf32>
    %130 = tpu.matmul %127, %129, %cst_142 {dimension_numbers = #tpu.dot_dimension_numbers<[1], [0], [0], [1], [0, 0, 1, 1], [], []>} : vector<8x256xf32>, vector<256x256xf32>, vector<8x256xf32> -> vector<8x256xf32>
    %131 = arith.addf %126, %130 : vector<8x256xf32>
    %c0_143 = arith.constant 0 : index
    %c0_144 = arith.constant 0 : index
    %132 = vector.load %arg13[%c0_143, %c0_144] : memref<1x256xf32, #tpu.memory_space<vmem>>, vector<1x256xf32>
    %133 = vector.broadcast %132 : vector<1x256xf32> to vector<8x256xf32>
    %134 = arith.addf %131, %133 : vector<8x256xf32>
    %cst_145 = arith.constant 0.000000e+00 : f32
    %135 = vector.broadcast %cst_145 : f32 to vector<8x256xf32>
    %136 = arith.maximumf %134, %135 : vector<8x256xf32>
    %137 = arith.addf %136, %92 : vector<8x256xf32>
    %c1_146 = arith.constant 1 : index
    %c0_147 = arith.constant 0 : index
    %138 = vector.load %arg17[%c1_146, %c0_147] : memref<10x256xf32, #tpu.memory_space<vmem>>, vector<8x256xf32>
    tpu.vector_store %arg17[%c1_146, %c0_147], %137 {strides = array<i32>} : memref<10x256xf32, #tpu.memory_space<vmem>>, vector<8x256xf32>,
    %cst_148 = arith.constant 0.000000e+00 : f32
    %139 = vector.broadcast %cst_148 : f32 to vector<8x256xf32>
    %c0_149 = arith.constant 0 : index
    %c0_150 = arith.constant 0 : index
    %140 = vector.load %arg17[%c0_149, %c0_150] : memref<10x256xf32, #tpu.memory_space<vmem>>, vector<8x256xf32>
    %c0_151 = arith.constant 0 : index
    %c0_152 = arith.constant 0 : index
    %c0_153 = arith.constant 0 : index
    %141 = vector.load %arg14[%c0_151, %c0_152, %c0_153] : memref<3x256x256xf32, #tpu.memory_space<vmem>>, vector<1x256x256xf32>
    %142 = vector.shape_cast %141 : vector<1x256x256xf32> to vector<256x256xf32>
    %cst_154 = arith.constant dense<0.000000e+00> : vector<8x256xf32>
    %143 = tpu.matmul %140, %142, %cst_154 {dimension_numbers = #tpu.dot_dimension_numbers<[1], [0], [0], [1], [0, 0, 1, 1], [], []>} : vector<8x256xf32>, vector<256x256xf32>, vector<8x256xf32> -> vector<8x256xf32>
    %144 = arith.addf %139, %143 : vector<8x256xf32>
    %c1_155 = arith.constant 1 : index
    %c0_156 = arith.constant 0 : index
    %145 = vector.load %arg17[%c1_155, %c0_156] : memref<10x256xf32, #tpu.memory_space<vmem>>, vector<8x256xf32>
    %c1_157 = arith.constant 1 : index
    %c0_158 = arith.constant 0 : index
    %c0_159 = arith.constant 0 : index
    %146 = vector.load %arg14[%c1_157, %c0_158, %c0_159] : memref<3x256x256xf32, #tpu.memory_space<vmem>>, vector<1x256x256xf32>
    %147 = vector.shape_cast %146 : vector<1x256x256xf32> to vector<256x256xf32>
    %cst_160 = arith.constant dense<0.000000e+00> : vector<8x256xf32>
    %148 = tpu.matmul %145, %147, %cst_160 {dimension_numbers = #tpu.dot_dimension_numbers<[1], [0], [0], [1], [0, 0, 1, 1], [], []>} : vector<8x256xf32>, vector<256x256xf32>, vector<8x256xf32> -> vector<8x256xf32>
    %149 = arith.addf %144, %148 : vector<8x256xf32>
    %c2_161 = arith.constant 2 : index
    %c0_162 = arith.constant 0 : index
    %150 = vector.load %arg17[%c2_161, %c0_162] : memref<10x256xf32, #tpu.memory_space<vmem>>, vector<8x256xf32>
    %c2_163 = arith.constant 2 : index
    %c0_164 = arith.constant 0 : index
    %c0_165 = arith.constant 0 : index
    %151 = vector.load %arg14[%c2_163, %c0_164, %c0_165] : memref<3x256x256xf32, #tpu.memory_space<vmem>>, vector<1x256x256xf32>
    %152 = vector.shape_cast %151 : vector<1x256x256xf32> to vector<256x256xf32>
    %cst_166 = arith.constant dense<0.000000e+00> : vector<8x256xf32>
    %153 = tpu.matmul %150, %152, %cst_166 {dimension_numbers = #tpu.dot_dimension_numbers<[1], [0], [0], [1], [0, 0, 1, 1], [], []>} : vector<8x256xf32>, vector<256x256xf32>, vector<8x256xf32> -> vector<8x256xf32>
    %154 = arith.addf %149, %153 : vector<8x256xf32>
    %c0_167 = arith.constant 0 : index
    %c0_168 = arith.constant 0 : index
    %155 = vector.load %arg15[%c0_167, %c0_168] : memref<1x256xf32, #tpu.memory_space<vmem>>, vector<1x256xf32>
    %156 = vector.broadcast %155 : vector<1x256xf32> to vector<8x256xf32>
    %157 = arith.addf %154, %156 : vector<8x256xf32>
    %158 = vector.shape_cast %157 : vector<8x256xf32> to vector<1x8x256xf32>
    %c0_169 = arith.constant 0 : index
    %c0_170 = arith.constant 0 : index
    %c0_171 = arith.constant 0 : index
    %159 = vector.load %arg16[%c0_169, %c0_170, %c0_171] : memref<1x8x256xf32, #tpu.memory_space<vmem>>, vector<1x8x256xf32>
    tpu.vector_store %arg16[%c0_169, %c0_170, %c0_171], %158 {strides = array<i32>} : memref<1x8x256xf32, #tpu.memory_space<vmem>>, vector<1x8x256xf32>,
    return
  }
  func.func @transform_0(%arg0: i32) -> (i32, i32, i32) {
    %c0_i32 = arith.constant 0 : i32
    %c0_i32_0 = arith.constant 0 : i32
    %c0_i32_1 = arith.constant 0 : i32
    return %arg0, %c0_i32, %c0_i32_0 : i32, i32, i32
  }
  func.func @transform_1(%arg0: i32) -> (i32, i32, i32) {
    %c0_i32 = arith.constant 0 : i32
    %c0_i32_0 = arith.constant 0 : i32
    %c0_i32_1 = arith.constant 0 : i32
    %c0_i32_2 = arith.constant 0 : i32
    return %c0_i32, %c0_i32_0, %c0_i32_1 : i32, i32, i32
  }
  func.func @transform_2(%arg0: i32) -> (i32, i32) {
    %c0_i32 = arith.constant 0 : i32
    %c0_i32_0 = arith.constant 0 : i32
    %c0_i32_1 = arith.constant 0 : i32
    return %c0_i32, %c0_i32_0 : i32, i32
  }
  func.func @transform_3(%arg0: i32) -> (i32, i32, i32) {
    %c0_i32 = arith.constant 0 : i32
    %c0_i32_0 = arith.constant 0 : i32
    %c0_i32_1 = arith.constant 0 : i32
    %c0_i32_2 = arith.constant 0 : i32
    return %c0_i32, %c0_i32_0, %c0_i32_1 : i32, i32, i32
  }
  func.func @transform_4(%arg0: i32) -> (i32, i32) {
    %c0_i32 = arith.constant 0 : i32
    %c0_i32_0 = arith.constant 0 : i32
    %c0_i32_1 = arith.constant 0 : i32
    return %c0_i32, %c0_i32_0 : i32, i32
  }
  func.func @transform_5(%arg0: i32) -> (i32, i32, i32) {
    %c0_i32 = arith.constant 0 : i32
    %c0_i32_0 = arith.constant 0 : i32
    %c0_i32_1 = arith.constant 0 : i32
    %c0_i32_2 = arith.constant 0 : i32
    return %c0_i32, %c0_i32_0, %c0_i32_1 : i32, i32, i32
  }
  func.func @transform_6(%arg0: i32) -> (i32, i32) {
    %c0_i32 = arith.constant 0 : i32
    %c0_i32_0 = arith.constant 0 : i32
    %c0_i32_1 = arith.constant 0 : i32
    return %c0_i32, %c0_i32_0 : i32, i32
  }
  func.func @transform_7(%arg0: i32) -> (i32, i32, i32) {
    %c0_i32 = arith.constant 0 : i32
    %c0_i32_0 = arith.constant 0 : i32
    %c0_i32_1 = arith.constant 0 : i32
    %c0_i32_2 = arith.constant 0 : i32
    return %c0_i32, %c0_i32_0, %c0_i32_1 : i32, i32, i32
  }
  func.func @transform_8(%arg0: i32) -> (i32, i32) {
    %c0_i32 = arith.constant 0 : i32
    %c0_i32_0 = arith.constant 0 : i32
    %c0_i32_1 = arith.constant 0 : i32
    return %c0_i32, %c0_i32_0 : i32, i32
  }
  func.func @transform_9(%arg0: i32) -> (i32, i32, i32) {
    %c0_i32 = arith.constant 0 : i32
    %c0_i32_0 = arith.constant 0 : i32
    %c0_i32_1 = arith.constant 0 : i32
    %c0_i32_2 = arith.constant 0 : i32
    return %c0_i32, %c0_i32_0, %c0_i32_1 : i32, i32, i32
  }
  func.func @transform_10(%arg0: i32) -> (i32, i32) {
    %c0_i32 = arith.constant 0 : i32
    %c0_i32_0 = arith.constant 0 : i32
    %c0_i32_1 = arith.constant 0 : i32
    return %c0_i32, %c0_i32_0 : i32, i32
  }
  func.func @transform_11(%arg0: i32) -> (i32, i32, i32) {
    %c0_i32 = arith.constant 0 : i32
    %c0_i32_0 = arith.constant 0 : i32
    %c0_i32_1 = arith.constant 0 : i32
    %c0_i32_2 = arith.constant 0 : i32
    return %c0_i32, %c0_i32_0, %c0_i32_1 : i32, i32, i32
  }
  func.func @transform_12(%arg0: i32) -> (i32, i32) {
    %c0_i32 = arith.constant 0 : i32
    %c0_i32_0 = arith.constant 0 : i32
    %c0_i32_1 = arith.constant 0 : i32
    return %c0_i32, %c0_i32_0 : i32, i32
  }
  func.func @transform_13(%arg0: i32) -> (i32, i32, i32) {
    %c0_i32 = arith.constant 0 : i32
    %c0_i32_0 = arith.constant 0 : i32
    %c0_i32_1 = arith.constant 0 : i32
    %c0_i32_2 = arith.constant 0 : i32
    return %c0_i32, %c0_i32_0, %c0_i32_1 : i32, i32, i32
  }
  func.func @transform_14(%arg0: i32) -> (i32, i32) {
    %c0_i32 = arith.constant 0 : i32
    %c0_i32_0 = arith.constant 0 : i32
    %c0_i32_1 = arith.constant 0 : i32
    return %c0_i32, %c0_i32_0 : i32, i32
  }
  func.func @transform_15(%arg0: i32) -> (i32, i32, i32) {
    %c0_i32 = arith.constant 0 : i32
    %c0_i32_0 = arith.constant 0 : i32
    %c0_i32_1 = arith.constant 0 : i32
    return %arg0, %c0_i32, %c0_i32_0 : i32, i32, i32
  }
}

</mosaic_0001>

<bundles_post_ra>
// kernel: classification_model.1
= control target key start
LH: loop header
LB: loop body
LE: loop exit
PB: predicated region body
PF: predicated region fallthrough
CT: control target
= control target key end

     0   :  { %s6138_s0 = inlined_call_operand.vmem [shape: f32[2,8,256], index: 0, kind: input, shape index: {}]   ;;  %s6139_s1 = inlined_call_operand.hbm [shape: f32[3,256,256], index: 1, kind: input, shape index: {}]   ;;  %s6140_s2 = inlined_call_operand.vmem [shape: f32[1,256], index: 2, kind: input, shape index: {}]   ;;  %s6141_s3 = inlined_call_operand.hbm [shape: f32[3,256,256], index: 3, kind: input, shape index: {}]   ;;  %s6142_s4 = inlined_call_operand.vmem [shape: f32[1,256], index: 4, kind: input, shape index: {}]   ;;  %s6143_s5 = inlined_call_operand.hbm [shape: f32[3,256,256], index: 5, kind: input, shape index: {}]   ;;  %s6144_s6 = inlined_call_operand.vmem [shape: f32[1,256], index: 6, kind: input, shape index: {}]   ;;  %s6145_s7 = inlined_call_operand.hbm [shape: f32[3,256,256], index: 7, kind: input, shape index: {}]   ;;  %s6146_s8 = inlined_call_operand.vmem [shape: f32[1,256], index: 8, kind: input, shape index: {}]   ;;  %s6147_s9 = inlined_call_operand.hbm [shape: f32[3,256,256], index: 9, kind: input, shape index: {}]   ;;  %s6148_s10 = inlined_call_operand.vmem [shape: f32[1,256], index: 10, kind: input, shape index: {}]   ;;  %s6149_s11 = inlined_call_operand.hbm [shape: f32[3,256,256], index: 11, kind: input, shape index: {}]   ;;  %s6150_s12 = inlined_call_operand.vmem [shape: f32[1,256], index: 12, kind: input, shape index: {}]   ;;  %s6151_s13 = inlined_call_operand.hbm [shape: f32[3,256,256], index: 13, kind: input, shape index: {}]   ;;  %s6152_s14 = inlined_call_operand.vmem [shape: f32[1,256], index: 14, kind: input, shape index: {}]   ;;  %s6153_s15 = inlined_call_operand.vmem [shape: f32[2,8,256], index: 15, kind: output, shape index: {}]  }
   0x1   :  { %6157 = sst [smem:[#allocation19_spill]] %s6148_s10 }
   0x2   :  { %6158 = sst [smem:[#allocation20_spill]] %s6150_s12 }
   0x3   :  { %6159 = sst [smem:[#allocation21_spill]] %s6152_s14 }
   0x4   :  { %6160 = sst [smem:[#allocation22_spill]] %s6153_s15 }
   0x5   :  { %20 = vsyncpa [#allocation4], 0 }
   0x6   :  { %21 = vsyncpa [#allocation6], 0 }
   0x7   :  { %22 = vsyncpa [#allocation9], 0 }
   0x8   :  { %23 = vsyncpa [#allocation12], 0  ;;  %s5807_s18 = smov 0  }
   0x9 LB: > { %6161 = sst [smem:[#allocation18_spill]] %s5715_s18  ;;  %s5813_s19 = sadd.s32 4294967295, %s5715_s18   ;;  %s5715_s18 = sphi %s5807_s18, %s29_s18  }
   0xa   : > { %p4018_p0 = scmp.ge.s32.totalorder %s5715_s18, 1  ;;  %p380_p1 = scmp.lt.s32.totalorder %s5715_s18, 3 }
   0xb   : > { %p6155_p2 = scmp.eq.s32.totalorder %s5813_s19, 0  ;;  %s5717_s21 = smov [#allocation5]  }
   0xc   : > { %p5818_p3 = pnand %p4018_p0, %p380_p1  ;;  %s408_s22 = sshll.u32 %s5717_s21, 4  ;;  %s5822_s22 = int_to_ptr.vmem [resolvable:$true] %s408_s22 }
   0xd   : > { %s5718_s23 = smov [#allocation8]   ;;  %s5719_s26 = smov [#allocation11]  }
   0xe   : > { %s6162_s20 = scalar_select %p5818_p3, 1, 0 }
   0xf   : > { %p5443_p4 = pneg %p5818_p3  ;;  %s440_s24 = sshll.u32 %s5718_s23, 4  ;;  %s5826_s24 = int_to_ptr.vmem [resolvable:$true] %s440_s24 }
  0x10   : > { %s472_s27 = sshll.u32 %s5719_s26, 4  ;;  %s5720_s28 = smov [#allocation3]   ;;  %s5834_s27 = int_to_ptr.vmem [resolvable:$true] %s472_s27 }
  0x11   : > { %p5830_p5 = pnand %p6155_p2, %p5443_p4  ;;  %s5836_s29 = sshll.u32 %s5720_s28, 4  ;;  %s393_s29 = int_to_ptr.vmem [resolvable:$true] %s5836_s29 }
  0x12   : > { %s5497_s17 = scalar_lea.hbm %s6141_s3, 24576 }
  0x13   : > { %p5498_p6 = scmp.ne.s32.totalorder %s6141_s3, %s5497_s17  ;;  %p5846_p7 = pneg %p5830_p5 }
  0x14   : > { %p5504_p10 = scmp.lt.u32.totalorder %s5497_s17, %s6141_s3 }
  0x15   : > { %p5500_p8 = pnand %p5846_p7, %p5498_p6 }
  0x17   : > { %p5501_p9 = pneg %p5500_p8 }
  0x19   : > { %p5506_p11 = pnand %p5504_p10, %p5501_p9 }
  0x1b   : > { %5509 = shalt.err (!%p5506_p11)
}
  0x1c   : > { %s5510_s30 = scalar_lea.vmem %s5822_s22, 24576  ;;  %p5518_p1 = scmp.lt.s32.totalorder %s5822_s22, %s5822_s22 }
  0x1d   : > { %p5511_p12 = scmp.ne.s32.totalorder %s5822_s22, %s5510_s30  ;;  %p5519_p4 = scmp.lt.s32.totalorder %s5510_s30, %s5510_s30 }
  0x1f   : > { %p5513_p13 = pnand %p5511_p12, %p5846_p7  ;;  %p5520_p6 = por %p5519_p4, %p5518_p1 }
  0x21   : > { %p5514_p0 = pneg %p5513_p13 }
  0x23   : > { %p5521_p8 = pnand %p5520_p6, %p5514_p0 }
  0x25   : > { %5524 = shalt.err (!%p5521_p8)
}
  0x26   : > { %s5721_s16 = smov 256   ;;  %s5722_s17 = smov 16  }
  0x27   : > { %5449 = dma.hbm_to_vmem [thread:$0]  (!%p5830_p5), %s6141_s3, 24576, %s5822_s22, [#allocation6], %s5721_s16, %s5721_s16, %s5722_s17  }
  0x28   : > { %s5525_s30 = scalar_lea.hbm %s6145_s7, 24576 }
  0x29   : > { %p5526_p9 = scmp.ne.s32.totalorder %s6145_s7, %s5525_s30  ;;  %p5532_p12 = scmp.lt.u32.totalorder %s5525_s30, %s6145_s7 }
  0x2b   : > { %p5528_p10 = pnand %p5526_p9, %p5846_p7 }
  0x2d   : > { %p5529_p11 = pneg %p5528_p10 }
  0x2f   : > { %p5534_p13 = pnand %p5532_p12, %p5529_p11 }
  0x31   : > { %5537 = shalt.err (!%p5534_p13)
}
  0x32   : > { %s5538_s22 = scalar_lea.vmem %s5826_s24, 24576  ;;  %p5546_p6 = scmp.lt.s32.totalorder %s5826_s24, %s5826_s24 }
  0x33   : > { %p5539_p0 = scmp.ne.s32.totalorder %s5826_s24, %s5538_s22  ;;  %p5547_p8 = scmp.lt.s32.totalorder %s5538_s22, %s5538_s22 }
  0x35   : > { %p5541_p1 = pnand %p5539_p0, %p5846_p7  ;;  %p5548_p9 = por %p5547_p8, %p5546_p6 }
  0x37   : > { %p5542_p4 = pneg %p5541_p1 }
  0x39   : > { %p5549_p10 = pnand %p5548_p9, %p5542_p4 }
  0x3b   : > { %5552 = shalt.err (!%p5549_p10)
}
  0x3c   : > { %5455 = dma.hbm_to_vmem [thread:$0]  (!%p5830_p5), %s6145_s7, 24576, %s5826_s24, [#allocation9], %s5721_s16, %s5721_s16, %s5722_s17  }
  0x3d   : > { %s5553_s21 = scalar_lea.hbm %s6149_s11, 24576 }
  0x3e   : > { %p5554_p11 = scmp.ne.s32.totalorder %s6149_s11, %s5553_s21  ;;  %p5560_p0 = scmp.lt.u32.totalorder %s5553_s21, %s6149_s11 }
  0x40   : > { %p5556_p12 = pnand %p5554_p11, %p5846_p7 }
  0x42   : > { %p5557_p13 = pneg %p5556_p12 }
  0x44   : > { %p5562_p1 = pnand %p5560_p0, %p5557_p13 }
  0x46   : > { %5565 = shalt.err (!%p5562_p1)
}
  0x47   : > { %s5566_s24 = scalar_lea.vmem %s5834_s27, 24576  ;;  %p5574_p9 = scmp.lt.s32.totalorder %s5834_s27, %s5834_s27 }
  0x48   : > { %p5567_p4 = scmp.ne.s32.totalorder %s5834_s27, %s5566_s24  ;;  %p5575_p10 = scmp.lt.s32.totalorder %s5566_s24, %s5566_s24 }
  0x4a   : > { %p5569_p6 = pnand %p5567_p4, %p5846_p7  ;;  %p5576_p11 = por %p5575_p10, %p5574_p9 }
  0x4c   : > { %p5570_p8 = pneg %p5569_p6 }
  0x4e   : > { %p5577_p12 = pnand %p5576_p11, %p5570_p8 }
  0x50   : > { %5580 = shalt.err (!%p5577_p12)
}
  0x51   : > { %5461 = dma.hbm_to_vmem [thread:$0]  (!%p5830_p5), %s6149_s11, 24576, %s5834_s27, [#allocation12], %s5721_s16, %s5721_s16, %s5722_s17  }
  0x52   : > { %s5581_s15 = scalar_lea.hbm %s6139_s1, 24576 }
  0x53   : > { %p5582_p13 = scmp.ne.s32.totalorder %s6139_s1, %s5581_s15  ;;  %p5588_p4 = scmp.lt.u32.totalorder %s5581_s15, %s6139_s1 }
  0x55   : > { %p5584_p0 = pnand %p5582_p13, %p5846_p7 }
  0x57   : > { %p5585_p1 = pneg %p5584_p0 }
  0x59   : > { %p5590_p6 = pnand %p5588_p4, %p5585_p1 }
  0x5b   : > { %5593 = shalt.err (!%p5590_p6)
}
  0x5c   : > { %s5594_s30 = scalar_lea.vmem %s393_s29, 24576  ;;  %p5602_p11 = scmp.lt.s32.totalorder %s393_s29, %s393_s29 }
  0x5d   : > { %p5595_p8 = scmp.ne.s32.totalorder %s393_s29, %s5594_s30  ;;  %p5603_p12 = scmp.lt.s32.totalorder %s5594_s30, %s5594_s30 }
  0x5f   : > { %p5597_p9 = pnand %p5595_p8, %p5846_p7  ;;  %p5604_p2 = por %p5603_p12, %p5602_p11 }
  0x61   : > { %p5598_p10 = pneg %p5597_p9 }
  0x63   : > { %p5605_p3 = pnand %p5604_p2, %p5598_p10 }
  0x65   : > { %5608 = shalt.err (!%p5605_p3)
}
  0x66   : > { %5446 = dma.hbm_to_vmem [thread:$0]  (!%p5830_p5), %s6139_s1, 24576, %s393_s29, [#allocation4], %s5721_s16, %s5721_s16, %s5722_s17  }
  0x67   : > { %s5723_s22 = smov [#allocation7]   ;;  %s5724_s12 = smov [#allocation10]  }
  0x68   : > { %s424_s10 = sshll.u32 %s5723_s22, 4  ;;  %s456_s14 = sshll.u32 %s5724_s12, 4  ;;  %s425_s10 = int_to_ptr.vmem [resolvable:$true] %s424_s10  ;;  %s457_s14 = int_to_ptr.vmem [resolvable:$true] %s456_s14 }
  0x69   : > { %s5609_s23 = scalar_lea.hbm %s6143_s5, 24576 }
  0x6a   : > { %p5610_p2 = scmp.ne.s32.totalorder %s6143_s5, %s5609_s23  ;;  %p5616_p0 = scmp.lt.u32.totalorder %s5609_s23, %s6143_s5 }
  0x6c   : > { %p5612_p3 = pnand %p5610_p2, %p5846_p7 }
  0x6e   : > { %p5613_p13 = pneg %p5612_p3 }
  0x70   : > { %p5618_p1 = pnand %p5616_p0, %p5613_p13 }
  0x72   : > { %5621 = shalt.err (!%p5618_p1)
}
  0x73   : > { %s5622_s29 = scalar_lea.vmem %s425_s10, 24576  ;;  %p5630_p9 = scmp.lt.s32.totalorder %s425_s10, %s425_s10 }
  0x74   : > { %p5623_p4 = scmp.ne.s32.totalorder %s425_s10, %s5622_s29  ;;  %p5631_p10 = scmp.lt.s32.totalorder %s5622_s29, %s5622_s29 }
  0x76   : > { %p5625_p6 = pnand %p5623_p4, %p5846_p7  ;;  %p5632_p11 = por %p5631_p10, %p5630_p9 }
  0x78   : > { %p5626_p8 = pneg %p5625_p6 }
  0x7a   : > { %p5633_p12 = pnand %p5632_p11, %p5626_p8 }
  0x7c   : > { %5636 = shalt.err (!%p5633_p12)
}
  0x7d   : > { %5452 = dma.hbm_to_vmem [thread:$0]  (!%p5830_p5), %s6143_s5, 24576, %s425_s10, [#allocation6], %s5721_s16, %s5721_s16, %s5722_s17  }
  0x7e   : > { %s5637_s21 = scalar_lea.hbm %s6147_s9, 24576 }
  0x7f   : > { %p5638_p2 = scmp.ne.s32.totalorder %s6147_s9, %s5637_s21  ;;  %p5644_p0 = scmp.lt.u32.totalorder %s5637_s21, %s6147_s9 }
  0x81   : > { %p5640_p3 = pnand %p5638_p2, %p5846_p7 }
  0x83   : > { %p5641_p13 = pneg %p5640_p3 }
  0x85   : > { %p5646_p1 = pnand %p5644_p0, %p5641_p13 }
  0x87   : > { %5649 = shalt.err (!%p5646_p1)
}
  0x88   : > { %s5650_s27 = scalar_lea.vmem %s457_s14, 24576  ;;  %p5658_p9 = scmp.lt.s32.totalorder %s457_s14, %s457_s14 }
  0x89   : > { %p5651_p4 = scmp.ne.s32.totalorder %s457_s14, %s5650_s27  ;;  %p5659_p10 = scmp.lt.s32.totalorder %s5650_s27, %s5650_s27 }
  0x8b   : > { %p5653_p6 = pnand %p5651_p4, %p5846_p7  ;;  %p5660_p11 = por %p5659_p10, %p5658_p9 }
  0x8d   : > { %p5654_p8 = pneg %p5653_p6 }
  0x8f   : > { %p5661_p12 = pnand %p5660_p11, %p5654_p8 }
  0x91   : > { %5664 = shalt.err (!%p5661_p12)
}
  0x92   : > { %5458 = dma.hbm_to_vmem [thread:$0]  (!%p5830_p5), %s6147_s9, 24576, %s457_s14, [#allocation9], %s5721_s16, %s5721_s16, %s5722_s17  }
  0x93   : > { %s5725_s24 = smov [#allocation13]   ;;  %s5665_s21 = scalar_lea.hbm %s6151_s13, 24576 }
  0x94   : > { %s488_s22 = sshll.u32 %s5725_s24, 4  ;;  %p5666_p2 = scmp.ne.s32.totalorder %s6151_s13, %s5665_s21  ;;  %s489_s22 = int_to_ptr.vmem [resolvable:$true] %s488_s22 }
  0x95   : > { %p5672_p0 = scmp.lt.u32.totalorder %s5665_s21, %s6151_s13 }
  0x96   : > { %p5668_p3 = pnand %p5666_p2, %p5846_p7 }
  0x98   : > { %p5669_p13 = pneg %p5668_p3 }
  0x9a   : > { %p5674_p1 = pnand %p5672_p0, %p5669_p13 }
  0x9c   : > { %5677 = shalt.err (!%p5674_p1)
}
  0x9d   : > { %s5678_s14 = scalar_lea.vmem %s489_s22, 24576  ;;  %p5686_p9 = scmp.lt.s32.totalorder %s489_s22, %s489_s22 }
  0x9e   : > { %p5679_p4 = scmp.ne.s32.totalorder %s489_s22, %s5678_s14  ;;  %p5687_p10 = scmp.lt.s32.totalorder %s5678_s14, %s5678_s14 }
  0xa0   : > { %p5681_p6 = pnand %p5679_p4, %p5846_p7  ;;  %p5688_p11 = por %p5687_p10, %p5686_p9 }
  0xa2   : > { %p5682_p8 = pneg %p5681_p6 }
  0xa4   : > { %p5689_p12 = pnand %p5688_p11, %p5682_p8 }
  0xa6   : > { %5692 = shalt.err (!%p5689_p12)
}
  0xa7   : > { %5464 = dma.hbm_to_vmem [thread:$0]  (!%p5830_p5), %s6151_s13, 24576, %s489_s22, [#allocation12], %s5721_s16, %s5721_s16, %s5722_s17  }
  0xa8   : > { %p6165_p2 = scmp.ne.s32.totalorder %s6162_s20, 0 }
  0xa9   : > { %p6166_p7 = scmp.eq.s32.totalorder (!%p6165_p2), %s5813_s19, 0 }
  0xaa   : > { %515 = sbr.rel (%p6165_p2) target bundleno = 2695 (0xa87), region = 80 }
  0xb1   : > { %5698 = dma.done.wait (%p6166_p7), [#allocation4], 24576   ;;  %p6167_p3 = pmov %p6166_p7 }
  0xb3   : > { %5700 = vsyncadd (%p6167_p3), [#allocation4], 4294942720  ;;  %p6168_p13 = pmov %p6167_p3 }
  0xb4   : > { %p6169_p0 = pmov %p6167_p3 }
  0xb5   : > { %5702 = dma.done.wait (%p6168_p13), [#allocation6], 49152  }
  0xb6   : > { %5704 = vsyncadd (%p6169_p0), [#allocation6], 4294918144  ;;  %p6170_p1 = pmov %p6169_p0 }
  0xb7   : > { %p6171_p5 = pmov %p6169_p0 }
  0xb8   : > { %5706 = dma.done.wait (%p6170_p1), [#allocation9], 49152  }
  0xb9   : > { %5708 = vsyncadd (%p6171_p5), [#allocation9], 4294918144  ;;  %p6172_p4 = pmov %p6169_p0 }
  0xba   : > { %p6173_p6 = pmov %p6169_p0 }
  0xbb   : > { %5710 = dma.done.wait (%p6172_p4), [#allocation12], 49152  }
  0xbc   : > { %5712 = vsyncadd (%p6173_p6), [#allocation12], 4294918144  ;;  %v5726_v0 = vmov 0.0   ;;  %v616_v1 = vld [vmem:[#allocation3 + $0x8] sm:$0xff]  ;;  %v618_v2 = vld [vmem:[#allocation3 + $0x18] sm:$0xff]  ;;  %p587_p8 = scmp.lt.s32.totalorder %s5813_s19, 1 }
  0xbd   : > { %598 = vst [vmem:[#allocation2 + $0x8] sm:$0xff] %v5726_v0  ;;  %599 = vst [vmem:[#allocation2 + $0x10] sm:$0x3] %v5726_v0  ;;  %v615_v3 = vld [vmem:[#allocation3] sm:$0xff]  ;;  %v4107_v4 = vpack.c.bf16 %v618_v2, %v616_v1  ;;  %v617_v5 = vld [vmem:[#allocation3 + $0x10] sm:$0xff]  ;;  %vm752_vm0 = vcmask 1046528  }
  0xbe   : > { %600 = vst [vmem:[#allocation2 + $0x18] sm:$0x3] %v5726_v0  ;;  %597 = vst [vmem:[#allocation2] sm:$0xff] %v5726_v0  ;;  %v620_v6 = vld [vmem:[#allocation3 + $0x28] sm:$0xff]  ;;  %v622_v7 = vld [vmem:[#allocation3 + $0x38] sm:$0xff]  ;;  %v4109_v8 = vpack.c.bf16 %v617_v5, %v615_v3  ;;  %s6180_s19 = smov (!%p587_p8, %s5813_s19), 1 }
  0xbf   : > { %v4111_v9 = vpack.c.bf16 %v622_v7, %v620_v6  ;;  %v619_v10 = vld [vmem:[#allocation3 + $0x20] sm:$0xff]  ;;  %v621_v11 = vld [vmem:[#allocation3 + $0x30] sm:$0xff]  ;;  %v624_v12 = vld [vmem:[#allocation3 + $0x48] sm:$0xff]  ;;  %4108 = vmatprep.subr.bf16.mxu0 %v4107_v4  ;;  %s4041_s18 = sshll.u32 %s6180_s19, 4  ;;  %vm976_vm1 = vcmask 1045504   ;;  %s6174_s30 = sld [smem:[#allocation19_spill]] }
  0xc0   : > { %v626_v13 = vld [vmem:[#allocation3 + $0x58] sm:$0xff]  ;;  %4110 = vmatpush1.bf16.msra.mxu0 %v4109_v8  ;;  %v4113_v14 = vpack.c.bf16 %v621_v11, %v619_v10  ;;  %v623_v16 = vld [vmem:[#allocation3 + $0x40] sm:$0xff]  ;;  %v625_v17 = vld [vmem:[#allocation3 + $0x50] sm:$0xff]  ;;  %s591_s16 = scalar_lea.vmem %s6138_s0, %s4041_s18  ;;  %s6175_s10 = sld [smem:[#allocation20_spill]] }
  0xc1   : > { %4112 = vmatprep.subr.bf16.mxu0 %v4111_v9  ;;  %v4115_v15 = vpack.c.bf16 %v626_v13, %v624_v12  ;;  %v628_v18 = vld [vmem:[#allocation3 + $0x68] sm:$0xff]  ;;  %v630_v19 = vld [vmem:[#allocation3 + $0x78] sm:$0xff]  ;;  %v4117_v20 = vpack.c.bf16 %v625_v17, %v623_v16  ;;  %v627_v22 = vld [vmem:[#allocation3 + $0x60] sm:$0xff]  ;;  %s6177_s24 = sld [smem:[#allocation22_spill]] }
  0xc2   : > { %v4119_v21 = vpack.c.bf16 %v630_v19, %v628_v18  ;;  %v629_v23 = vld [vmem:[#allocation3 + $0x70] sm:$0xff]  ;;  %v632_v24 = vld [vmem:[#allocation3 + $0x88] sm:$0xff]  ;;  %v634_v25 = vld [vmem:[#allocation3 + $0x98] sm:$0xff] }
  0xc3   : > { %v4121_v26 = vpack.c.bf16 %v629_v23, %v627_v22  ;;  %v4123_v27 = vpack.c.bf16 %v634_v25, %v632_v24  ;;  %v631_v28 = vld [vmem:[#allocation3 + $0x80] sm:$0xff]  ;;  %v633_v29 = vld [vmem:[#allocation3 + $0x90] sm:$0xff]  ;;  %v636_v30 = vld [vmem:[#allocation3 + $0xa8] sm:$0xff] }
  0xc4   : > { %4114 = vmatpush1.bf16.msra.mxu0 %v4113_v14  ;;  %v638_v31 = vld [vmem:[#allocation3 + $0xb8] sm:$0xff]  ;;  %v4125_v32 = vpack.c.bf16 %v633_v29, %v631_v28  ;;  %v635_v34 = vld [vmem:[#allocation3 + $0xa0] sm:$0xff]  ;;  %v637_v35 = vld [vmem:[#allocation3 + $0xb0] sm:$0xff] }
  0xc5   : > { %4116 = vmatprep.subr.bf16.mxu0 %v4115_v15  ;;  %v4127_v33 = vpack.c.bf16 %v638_v31, %v636_v30  ;;  %v640_v36 = vld [vmem:[#allocation3 + $0xc8] sm:$0xff]  ;;  %v642_v37 = vld [vmem:[#allocation3 + $0xd8] sm:$0xff]  ;;  %v4129_v38 = vpack.c.bf16 %v637_v35, %v635_v34  ;;  %v639_v39 = vld [vmem:[#allocation3 + $0xc0] sm:$0xff] }
  0xc6   : > { %v641_v40 = vld [vmem:[#allocation3 + $0xd0] sm:$0xff]  ;;  %v644_v41 = vld [vmem:[#allocation3 + $0xe8] sm:$0xff]  ;;  %v4131_v42 = vpack.c.bf16 %v642_v37, %v640_v36  ;;  %v646_v43 = vld [vmem:[#allocation3 + $0xf8] sm:$0xff] }
  0xc7   : > { %v685_v44 = vld [vmem:[#allocation3 + $0x208] sm:$0xff]  ;;  %v687_v45 = vld [vmem:[#allocation3 + $0x218] sm:$0xff]  ;;  %v684_v47 = vld [vmem:[#allocation3 + $0x200] sm:$0xff]  ;;  %v4133_v53 = vpack.c.bf16 %v641_v40, %v639_v39  ;;  %v4135_v58 = vpack.c.bf16 %v646_v43, %v644_v41  ;;  %s596_s22 = scalar_lea.vmem %s6177_s24, %s4041_s18 }
  0xc8   : > { %4118 = vmatpush1.bf16.msra.mxu0 %v4117_v20  ;;  %v4043_v46 = vpack.c.bf16 %v687_v45, %v685_v44  ;;  %v686_v48 = vld [vmem:[#allocation3 + $0x210] sm:$0xff]  ;;  %v602_v49 = vld [vmem:[%s591_s16 + $0x8] sm:$0xff]  ;;  %v601_v52 = vld [vmem:[%s591_s16] sm:$0xff]  ;;  %s6176_s16 = sld [smem:[#allocation21_spill]] }
  0xc9   : > { %4120 = vmatprep.subr.bf16.mxu0 %v4119_v21  ;;  %v4045_v50 = vpack.c.bf16 %v686_v48, %v684_v47  ;;  %v606_v51 = vrot.slane %v602_v49, 7  ;;  %v643_v54 = vld [vmem:[#allocation3 + $0xe0] sm:$0xff]  ;;  %v645_v55 = vld [vmem:[#allocation3 + $0xf0] sm:$0xff]  ;;  %v605_v56 = vrot.slane %v601_v52, 7  ;;  %v689_v57 = vld [vmem:[#allocation3 + $0x228] sm:$0xff] }
  0xca   : > { %4044 = vmatprep.subr.bf16.mxu1 %v4043_v46  ;;  %v691_v59 = vld [vmem:[#allocation3 + $0x238] sm:$0xff]  ;;  %v688_v60 = vld [vmem:[#allocation3 + $0x220] sm:$0xff]  ;;  %v690_v61 = vld [vmem:[#allocation3 + $0x230] sm:$0xff]  ;;  %v4137_v4 = vpack.c.bf16 %v645_v55, %v643_v54 }
  0xcb   : > { %4046 = vmatpush1.bf16.msra.mxu1 %v4045_v50  ;;  %610 = vst [vmem:[#allocation2 + $0x8] sm:$0xfe] %v606_v51  ;;  %612 = vst [vmem:[#allocation2 + $0x18] sm:$0x1] %v606_v51  ;;  %v648_v62 = vld [vmem:[#allocation3 + $0x108] sm:$0xff]  ;;  %v650_v63 = vld [vmem:[#allocation3 + $0x118] sm:$0xff]  ;;  %v4047_v0 = vpack.c.bf16 %v691_v59, %v689_v57  ;;  %v4049_v1 = vpack.c.bf16 %v690_v61, %v688_v60 }
  0xcc   : > { %4122 = vmatpush1.bf16.msra.mxu0 %v4121_v26  ;;  %609 = vst [vmem:[#allocation2] sm:$0xfe] %v605_v56  ;;  %611 = vst [vmem:[#allocation2 + $0x10] sm:$0x1] %v605_v56  ;;  %v693_v2 = vld [vmem:[#allocation3 + $0x248] sm:$0xff]  ;;  %v695_v3 = vld [vmem:[#allocation3 + $0x258] sm:$0xff]  ;;  %v4139_v8 = vpack.c.bf16 %v650_v63, %v648_v62 }
  0xcd   : > { %4124 = vmatprep.subr.bf16.mxu0 %v4123_v27  ;;  %4048 = vmatprep.subr.bf16.mxu1 %v4047_v0  ;;  %v4051_v5 = vpack.c.bf16 %v695_v3, %v693_v2  ;;  %v692_v6 = vld [vmem:[#allocation3 + $0x240] sm:$0xff]  ;;  %v694_v7 = vld [vmem:[#allocation3 + $0x250] sm:$0xff]  ;;  %v652_v11 = vld [vmem:[#allocation3 + $0x128] sm:$0xff] }
  0xce   : > { %v647_v9 = vld [vmem:[#allocation3 + $0x100] sm:$0xff]  ;;  %v649_v10 = vld [vmem:[#allocation3 + $0x110] sm:$0xff]  ;;  %v654_v12 = vld [vmem:[#allocation3 + $0x138] sm:$0xff]  ;;  %v4053_v13 = vpack.c.bf16 %v694_v7, %v692_v6 }
  0xcf   : > { %4050 = vmatpush1.bf16.msra.mxu1 %v4049_v1  ;;  %v697_v14 = vld [vmem:[#allocation3 + $0x268] sm:$0xff]  ;;  %v699_v15 = vld [vmem:[#allocation3 + $0x278] sm:$0xff]  ;;  %v696_v17 = vld [vmem:[#allocation3 + $0x260] sm:$0xff]  ;;  %v4141_v19 = vpack.c.bf16 %v649_v10, %v647_v9  ;;  %v4143_v22 = vpack.c.bf16 %v654_v12, %v652_v11 }
  0xd0   : > { %4126 = vmatpush1.bf16.msra.mxu0 %v4125_v32  ;;  %4052 = vmatprep.subr.bf16.mxu1 %v4051_v5  ;;  %v4055_v16 = vpack.c.bf16 %v699_v15, %v697_v14  ;;  %v698_v18 = vld [vmem:[#allocation3 + $0x270] sm:$0xff]  ;;  %v651_v20 = vld [vmem:[#allocation3 + $0x120] sm:$0xff]  ;;  %v701_v24 = vld [vmem:[#allocation3 + $0x288] sm:$0xff] }
  0xd1   : > { %4128 = vmatprep.subr.bf16.mxu0 %v4127_v33  ;;  %v653_v23 = vld [vmem:[#allocation3 + $0x130] sm:$0xff]  ;;  %v703_v25 = vld [vmem:[#allocation3 + $0x298] sm:$0xff]  ;;  %v656_v26 = vld [vmem:[#allocation3 + $0x148] sm:$0xff]  ;;  %v4057_v28 = vpack.c.bf16 %v698_v18, %v696_v17 }
  0xd2   : > { %v614_v21 = vld [vmem:[#allocation2 + $0x8] sm:$0xff]  ;;  %v658_v27 = vld [vmem:[#allocation3 + $0x158] sm:$0xff]  ;;  %v4059_v29 = vpack.c.bf16 %v703_v25, %v701_v24  ;;  %v700_v30 = vld [vmem:[#allocation3 + $0x280] sm:$0xff]  ;;  %v4145_v32 = vpack.c.bf16 %v653_v23, %v651_v20 }
  0xd3   : > { %896 = vmatprep.mubr.f32.mxu0 %v614_v21  ;;  %4054 = vmatpush1.bf16.msra.mxu1 %v4053_v13  ;;  %v702_v31 = vld [vmem:[#allocation3 + $0x290] sm:$0xff]  ;;  %v705_v33 = vld [vmem:[#allocation3 + $0x2a8] sm:$0xff]  ;;  %v707_v34 = vld [vmem:[#allocation3 + $0x2b8] sm:$0xff]  ;;  %v4147_v35 = vpack.c.bf16 %v658_v27, %v656_v26 }
  0xd4   : > { %4130 = vmatpush1.bf16.msra.mxu0 %v4129_v38  ;;  %4056 = vmatprep.subr.bf16.mxu1 %v4055_v16  ;;  %v655_v36 = vld [vmem:[#allocation3 + $0x140] sm:$0xff]  ;;  %v657_v37 = vld [vmem:[#allocation3 + $0x150] sm:$0xff]  ;;  %v660_v38 = vld [vmem:[#allocation3 + $0x168] sm:$0xff]  ;;  %v4061_v40 = vpack.c.bf16 %v702_v31, %v700_v30  ;;  %v4063_v41 = vpack.c.bf16 %v707_v34, %v705_v33 }
  0xd5   : > { %4132 = vmatprep.subr.bf16.mxu0 %v4131_v42  ;;  %v662_v39 = vld [vmem:[#allocation3 + $0x178] sm:$0xff]  ;;  %v704_v42 = vld [vmem:[#allocation3 + $0x2a0] sm:$0xff]  ;;  %v706_v43 = vld [vmem:[#allocation3 + $0x2b0] sm:$0xff]  ;;  %v4149_v44 = vpack.c.bf16 %v657_v37, %v655_v36 }
  0xd6   : > { %v709_v45 = vld [vmem:[#allocation3 + $0x2c8] sm:$0xff]  ;;  %v711_v46 = vld [vmem:[#allocation3 + $0x2d8] sm:$0xff]  ;;  %v4151_v47 = vpack.c.bf16 %v662_v39, %v660_v38  ;;  %v659_v48 = vld [vmem:[#allocation3 + $0x160] sm:$0xff]  ;;  %v4065_v52 = vpack.c.bf16 %v706_v43, %v704_v42 }
  0xd7   : > { %4058 = vmatpush1.bf16.msra.mxu1 %v4057_v28  ;;  %v661_v49 = vld [vmem:[#allocation3 + $0x170] sm:$0xff]  ;;  %v664_v50 = vld [vmem:[#allocation3 + $0x188] sm:$0xff]  ;;  %v666_v51 = vld [vmem:[#allocation3 + $0x198] sm:$0xff] }
  0xd8   : > { %4134 = vmatpush1.bf16.msra.mxu0 %v4133_v53  ;;  %4060 = vmatprep.subr.bf16.mxu1 %v4059_v29  ;;  %v4067_v53 = vpack.c.bf16 %v711_v46, %v709_v45  ;;  %v708_v54 = vld [vmem:[#allocation3 + $0x2c0] sm:$0xff]  ;;  %v710_v55 = vld [vmem:[#allocation3 + $0x2d0] sm:$0xff]  ;;  %v4153_v56 = vpack.c.bf16 %v661_v49, %v659_v48  ;;  %v713_v57 = vld [vmem:[#allocation3 + $0x2e8] sm:$0xff]  ;;  %v4155_v59 = vpack.c.bf16 %v666_v51, %v664_v50 }
  0xd9   : > { %4136 = vmatprep.subr.bf16.mxu0 %v4135_v58  ;;  %v715_v58 = vld [vmem:[#allocation3 + $0x2f8] sm:$0xff]  ;;  %v663_v60 = vld [vmem:[#allocation3 + $0x180] sm:$0xff]  ;;  %v665_v61 = vld [vmem:[#allocation3 + $0x190] sm:$0xff]  ;;  %v4069_v0 = vpack.c.bf16 %v710_v55, %v708_v54 }
  0xda   : > { %v668_v62 = vld [vmem:[#allocation3 + $0x1a8] sm:$0xff]  ;;  %v670_v63 = vld [vmem:[#allocation3 + $0x1b8] sm:$0xff]  ;;  %v4071_v1 = vpack.c.bf16 %v715_v58, %v713_v57  ;;  %v712_v2 = vld [vmem:[#allocation3 + $0x2e0] sm:$0xff] }
  0xdb   : > { %4062 = vmatpush1.bf16.msra.mxu1 %v4061_v40  ;;  %v714_v3 = vld [vmem:[#allocation3 + $0x2f0] sm:$0xff]  ;;  %v717_v5 = vld [vmem:[#allocation3 + $0x308] sm:$0xff]  ;;  %v719_v6 = vld [vmem:[#allocation3 + $0x318] sm:$0xff]  ;;  %v4159_v7 = vpack.c.bf16 %v670_v63, %v668_v62 }
  0xdc   : > { %4138 = vmatpush1.bf16.msra.mxu0 %v4137_v4  ;;  %4064 = vmatprep.subr.bf16.mxu1 %v4063_v41  ;;  %v4157_v4 = vpack.c.bf16 %v665_v61, %v663_v60  ;;  %v669_v9 = vld [vmem:[#allocation3 + $0x1b0] sm:$0xff]  ;;  %v672_v10 = vld [vmem:[#allocation3 + $0x1c8] sm:$0xff]  ;;  %v674_v11 = vld [vmem:[#allocation3 + $0x1d8] sm:$0xff]  ;;  %v4073_v12 = vpack.c.bf16 %v714_v3, %v712_v2  ;;  %v4075_v13 = vpack.c.bf16 %v719_v6, %v717_v5 }
  0xdd   : > { %4140 = vmatprep.subr.bf16.mxu0 %v4139_v8  ;;  %v667_v8 = vld [vmem:[#allocation3 + $0x1a0] sm:$0xff]  ;;  %v718_v15 = vld [vmem:[#allocation3 + $0x310] sm:$0xff]  ;;  %v721_v17 = vld [vmem:[#allocation3 + $0x328] sm:$0xff] }
  0xde   : > { %v716_v14 = vld [vmem:[#allocation3 + $0x300] sm:$0xff]  ;;  %v4161_v16 = vpack.c.bf16 %v669_v9, %v667_v8  ;;  %v723_v18 = vld [vmem:[#allocation3 + $0x338] sm:$0xff]  ;;  %v673_v21 = vld [vmem:[#allocation3 + $0x1d0] sm:$0xff] }
  0xdf   : > { %4066 = vmatpush1.bf16.msra.mxu1 %v4065_v52  ;;  %v671_v20 = vld [vmem:[#allocation3 + $0x1c0] sm:$0xff]  ;;  %v678_v23 = vld [vmem:[#allocation3 + $0x1f8] sm:$0xff]  ;;  %v4077_v24 = vpack.c.bf16 %v718_v15, %v716_v14  ;;  %v4079_v25 = vpack.c.bf16 %v723_v18, %v721_v17  ;;  %v722_v27 = vld [vmem:[#allocation3 + $0x330] sm:$0xff] }
  0xe0   : > { %4142 = vmatpush1.bf16.msra.mxu0 %v4141_v19  ;;  %4068 = vmatprep.subr.bf16.mxu1 %v4067_v53  ;;  %v4163_v19 = vpack.c.bf16 %v674_v11, %v672_v10  ;;  %v720_v26 = vld [vmem:[#allocation3 + $0x320] sm:$0xff]  ;;  %v4165_v28 = vpack.c.bf16 %v673_v21, %v671_v20  ;;  %v725_v29 = vld [vmem:[#allocation3 + $0x348] sm:$0xff]  ;;  %v727_v30 = vld [vmem:[#allocation3 + $0x358] sm:$0xff] }
  0xe1   : > { %4144 = vmatprep.subr.bf16.mxu0 %v4143_v22  ;;  %v676_v22 = vld [vmem:[#allocation3 + $0x1e8] sm:$0xff]  ;;  %v677_v33 = vld [vmem:[#allocation3 + $0x1f0] sm:$0xff]  ;;  %v4081_v36 = vpack.c.bf16 %v722_v27, %v720_v26  ;;  %v4083_v37 = vpack.c.bf16 %v727_v30, %v725_v29  ;;  %v724_v38 = vld [vmem:[#allocation3 + $0x340] sm:$0xff] }
  0xe2   : > { %v4167_v31 = vpack.c.bf16 %v678_v23, %v676_v22  ;;  %v909_v34 = vld [vmem:[#allocation3 + $0x408] sm:$0xff]  ;;  %v726_v39 = vld [vmem:[#allocation3 + $0x350] sm:$0xff]  ;;  %v731_v42 = vld [vmem:[#allocation3 + $0x378] sm:$0xff] }
  0xe3   : > { %4070 = vmatpush1.bf16.msra.mxu1 %v4069_v0  ;;  %v729_v41 = vld [vmem:[#allocation3 + $0x368] sm:$0xff]  ;;  %v910_v45 = vld [vmem:[#allocation3 + $0x410] sm:$0xff]  ;;  %v4085_v48 = vpack.c.bf16 %v726_v39, %v724_v38  ;;  %v912_v49 = vld [vmem:[#allocation3 + $0x420] sm:$0xff] }
  0xe4   : > { %4146 = vmatpush1.bf16.msra.mxu0 %v4145_v32  ;;  %4072 = vmatprep.subr.bf16.mxu1 %v4071_v1  ;;  %v675_v32 = vld [vmem:[#allocation3 + $0x1e0] sm:$0xff]  ;;  %v913_v46 = vld [vmem:[#allocation3 + $0x428] sm:$0xff]  ;;  %v4087_v50 = vpack.c.bf16 %v731_v42, %v729_v41  ;;  %v730_v52 = vld [vmem:[#allocation3 + $0x370] sm:$0xff] }
  0xe5   : > { %4148 = vmatprep.subr.bf16.mxu0 %v4147_v35  ;;  %v911_v35 = vld [vmem:[#allocation3 + $0x418] sm:$0xff]  ;;  %v4169_v40 = vpack.c.bf16 %v677_v33, %v675_v32  ;;  %v728_v51 = vld [vmem:[#allocation3 + $0x360] sm:$0xff]  ;;  %v733_v55 = vld [vmem:[#allocation3 + $0x388] sm:$0xff] }
  0xe6   : > { %v4171_v43 = vpack.c.bf16 %v911_v35, %v909_v34  ;;  %v613_v53 = vld [vmem:[#allocation2] sm:$0xff]  ;;  %v914_v58 = vld [vmem:[#allocation3 + $0x430] sm:$0xff]  ;;  %v682_v60 = vld [vmem:[#allocation2 + $0x18] sm:$0x1]  ;;  %v4089_v63 = vpack.c.bf16 %v730_v52, %v728_v51 }
  0xe7   : > { %4074 = vmatpush1.bf16.msra.mxu1 %v4073_v12  ;;  %v917_v61 = vld [vmem:[#allocation3 + $0x448] sm:$0xff]  ;;  %v919_v62 = vld [vmem:[#allocation3 + $0x458] sm:$0xff]  ;;  %v732_v0 = vld [vmem:[#allocation3 + $0x380] sm:$0xff]  ;;  %v757_v2 = vrot.slane %v682_v60, 1 }
  0xe8   : > { %4150 = vmatpush1.bf16.msra.mxu0 %v4149_v44  ;;  %4076 = vmatprep.subr.bf16.mxu1 %v4075_v13  ;;  %v908_v44 = vld [vmem:[#allocation3 + $0x400] sm:$0xff]  ;;  %v904_v5 = vld [vmem:[#allocation2 + $0x8] sm:$0xfc]  ;;  %v906_v6 = vld [vmem:[#allocation2 + $0x18] sm:$0x3]  ;;  %v4179_v13 = vpack.c.bf16 %v919_v62, %v917_v61 }
  0xe9   : > { %4152 = vmatprep.subr.bf16.mxu0 %v4151_v47  ;;  %v915_v47 = vld [vmem:[#allocation3 + $0x438] sm:$0xff]  ;;  %v4173_v54 = vpack.c.bf16 %v910_v45, %v908_v44  ;;  %v737_v8 = vld [vmem:[#allocation3 + $0x3a8] sm:$0xff]  ;;  %v980_v11 = vrot.slane %v904_v5, 2  ;;  %v981_v12 = vrot.slane %v906_v6, 2  ;;  %v916_v14 = vld [vmem:[#allocation3 + $0x440] sm:$0xff] }
  0xea   : > { %v4175_v57 = vpack.c.bf16 %v915_v47, %v913_v46  ;;  %v739_v9 = vld [vmem:[#allocation3 + $0x3b8] sm:$0xff]  ;;  %v918_v15 = vld [vmem:[#allocation3 + $0x450] sm:$0xff]  ;;  %v736_v21 = vld [vmem:[#allocation3 + $0x3a0] sm:$0xff] }
  0xeb   : > { %4078 = vmatpush1.bf16.msra.mxu1 %v4077_v24  ;;  %v923_v17 = vld [vmem:[#allocation3 + $0x478] sm:$0xff]  ;;  %v4095_v20 = vpack.c.bf16 %v739_v9, %v737_v8  ;;  %v738_v22 = vld [vmem:[#allocation3 + $0x3b0] sm:$0xff]  ;;  %v4181_v23 = vpack.c.bf16 %v918_v15, %v916_v14  ;;  %v741_v24 = vld [vmem:[#allocation3 + $0x3c8] sm:$0xff] }
  0xec   : > { %4154 = vmatpush1.bf16.msra.mxu0 %v4153_v56  ;;  %4080 = vmatprep.subr.bf16.mxu1 %v4079_v25  ;;  %v735_v56 = vld [vmem:[#allocation3 + $0x398] sm:$0xff]  ;;  %v920_v27 = vld [vmem:[#allocation3 + $0x460] sm:$0xff]  ;;  %v925_v29 = vld [vmem:[#allocation3 + $0x488] sm:$0xff] }
  0xed   : > { %4156 = vmatprep.subr.bf16.mxu0 %v4155_v59  ;;  %v680_v59 = vld [vmem:[#allocation2 + $0x8] sm:$0xfe]  ;;  %v4091_v3 = vpack.c.bf16 %v735_v56, %v733_v55  ;;  %v743_v25 = vld [vmem:[#allocation3 + $0x3d8] sm:$0xff]  ;;  %v740_v33 = vld [vmem:[#allocation3 + $0x3c0] sm:$0xff] }
  0xee   : > { %v756_v1 = vrot.slane %v680_v59, 1  ;;  %v927_v30 = vld [vmem:[#allocation3 + $0x498] sm:$0xff]  ;;  %v4099_v32 = vpack.c.bf16 %v743_v25, %v741_v24  ;;  %v742_v34 = vld [vmem:[#allocation3 + $0x3d0] sm:$0xff]  ;;  %v924_v39 = vld [vmem:[#allocation3 + $0x480] sm:$0xff] }
  0xef   : > { %4082 = vmatpush1.bf16.msra.mxu1 %v4081_v36  ;;  %v745_v36 = vld [vmem:[#allocation3 + $0x3e8] sm:$0xff]  ;;  %v4187_v38 = vpack.c.bf16 %v927_v30, %v925_v29  ;;  %v931_v42 = vld [vmem:[#allocation3 + $0x4b8] sm:$0xff]  ;;  %v744_v44 = vld [vmem:[#allocation3 + $0x3e0] sm:$0xff] }
  0xf0   : > { %4158 = vmatpush1.bf16.msra.mxu0 %v4157_v4  ;;  %4084 = vmatprep.subr.bf16.mxu1 %v4083_v37  ;;  %v734_v4 = vld [vmem:[#allocation3 + $0x390] sm:$0xff]  ;;  %v758_v10 = vsel %vm752_vm0, %v756_v1, %v757_v2  ;;  %v747_v37 = vld [vmem:[#allocation3 + $0x3f8] sm:$0xff]  ;;  %v929_v41 = vld [vmem:[#allocation3 + $0x4a8] sm:$0xff] }
  0xf1   : > { %4160 = vmatprep.subr.bf16.mxu0 %v4159_v7  ;;  %v4177_v7 = vpack.c.bf16 %v914_v58, %v912_v49  ;;  %825 = vmatprep.mubr.f32.mxu1 %v758_v10  ;;  %v4093_v18 = vpack.c.bf16 %v734_v4, %v732_v0  ;;  %v4103_v45 = vpack.c.bf16 %v747_v37, %v745_v36  ;;  %v746_v46 = vld [vmem:[#allocation3 + $0x3f0] sm:$0xff]  ;;  %v679_v47 = vld [vmem:[#allocation2] sm:$0xfe]  ;;  %v1158_v51 = vld [vmem:[#allocation5 + $0x218] sm:$0xff] }
  0xf2   : > { %v4191_v52 = vpack.c.bf16 %v931_v42, %v929_v41  ;;  %v933_v55 = vld [vmem:[#allocation3 + $0x4c8] sm:$0xff]  ;;  %v935_v56 = vld [vmem:[#allocation3 + $0x4d8] sm:$0xff]  ;;  %v753_v58 = vrot.slane %v679_v47, 1  ;;  %v1155_v61 = vld [vmem:[#allocation5 + $0x200] sm:$0xff] }
  0xf3   : > { %4086 = vmatpush1.bf16.msra.mxu1 %v4085_v48  ;;  %v681_v48 = vld [vmem:[#allocation2 + $0x10] sm:$0x1]  ;;  %v1160_v0 = vld [vmem:[#allocation5 + $0x228] sm:$0xff]  ;;  %v1162_v1 = vld [vmem:[#allocation5 + $0x238] sm:$0xff]  ;;  %v4195_v2 = vpack.c.bf16 %v935_v56, %v933_v55 }
  0xf4   : > { %4162 = vmatpush1.bf16.msra.mxu0 %v4161_v16  ;;  %4088 = vmatprep.subr.bf16.mxu1 %v4087_v50  ;;  %v921_v16 = vld [vmem:[#allocation3 + $0x468] sm:$0xff]  ;;  %v754_v59 = vrot.slane %v681_v48, 1  ;;  %v1157_v62 = vld [vmem:[#allocation5 + $0x210] sm:$0xff]  ;;  %v939_v6 = vld [vmem:[#allocation3 + $0x4f8] sm:$0xff]  ;;  %v4239_v9 = vpack.c.bf16 %v1162_v1, %v1160_v0 }
  0xf5   : > { %4164 = vmatprep.subr.bf16.mxu0 %v4163_v19  ;;  %v982_v19 = vsel %vm976_vm1, %v980_v11, %v981_v12  ;;  %v4183_v26 = vpack.c.bf16 %v923_v17, %v921_v16  ;;  %v1156_v50 = vld [vmem:[#allocation5 + $0x208] sm:$0xff]  ;;  %v934_v4 = vld [vmem:[#allocation3 + $0x4d0] sm:$0xff]  ;;  %v4237_v8 = vpack.c.bf16 %v1157_v62, %v1155_v61  ;;  %v1159_v10 = vld [vmem:[#allocation5 + $0x220] sm:$0xff] }
  0xf6   : > { %v4235_v60 = vpack.c.bf16 %v1158_v51, %v1156_v50  ;;  %v937_v5 = vld [vmem:[#allocation3 + $0x4e8] sm:$0xff]  ;;  %v1161_v11 = vld [vmem:[#allocation5 + $0x230] sm:$0xff]  ;;  %v1166_v14 = vld [vmem:[#allocation5 + $0x258] sm:$0xff] }
  0xf7   : > { %4090 = vmatpush1.bf16.msra.mxu1 %v4089_v63  ;;  %v4199_v15 = vpack.c.bf16 %v939_v6, %v937_v5  ;;  %v936_v16 = vld [vmem:[#allocation3 + $0x4e0] sm:$0xff]  ;;  %v938_v17 = vld [vmem:[#allocation3 + $0x4f0] sm:$0xff]  ;;  %v1168_v25 = vld [vmem:[#allocation5 + $0x268] sm:$0xff] }
  0xf8   : > { %4166 = vmatpush1.bf16.msra.mxu0 %v4165_v28  ;;  %4092 = vmatprep.subr.bf16.mxu1 %v4091_v3  ;;  %v922_v28 = vld [vmem:[#allocation3 + $0x470] sm:$0xff]  ;;  %v932_v3 = vld [vmem:[#allocation3 + $0x4c0] sm:$0xff]  ;;  %v4201_v24 = vpack.c.bf16 %v938_v17, %v936_v16  ;;  %v945_v30 = vld [vmem:[#allocation3 + $0x528] sm:$0xff] }
  0xf9   : > { %4168 = vmatprep.subr.bf16.mxu0 %v4167_v31  ;;  %v4097_v31 = vpack.c.bf16 %v738_v22, %v736_v21  ;;  %v4185_v35 = vpack.c.bf16 %v922_v28, %v920_v27  ;;  %v4197_v12 = vpack.c.bf16 %v934_v4, %v932_v3  ;;  %v1163_v22 = vld [vmem:[#allocation5 + $0x240] sm:$0xff]  ;;  %v942_v29 = vld [vmem:[#allocation3 + $0x510] sm:$0xff]  ;;  %v1172_v37 = vld [vmem:[#allocation5 + $0x288] sm:$0xff] }
  0xfa   : > { %v940_v28 = vld [vmem:[#allocation3 + $0x500] sm:$0xff]  ;;  %v946_v41 = vld [vmem:[#allocation3 + $0x530] sm:$0xff]  ;;  %v949_v42 = vld [vmem:[#allocation3 + $0x548] sm:$0xff] }
  0xfb   : > { %4094 = vmatpush1.bf16.msra.mxu1 %v4093_v18  ;;  %v941_v18 = vld [vmem:[#allocation3 + $0x508] sm:$0xff]  ;;  %v4205_v36 = vpack.c.bf16 %v942_v29, %v940_v28  ;;  %v1173_v47 = vld [vmem:[#allocation5 + $0x290] sm:$0xff]  ;;  %v1178_v50 = vld [vmem:[#allocation5 + $0x2b8] sm:$0xff] }
  0xfc   : > { %4170 = vmatpush1.bf16.msra.mxu0 %v4169_v40  ;;  %4096 = vmatprep.subr.bf16.mxu1 %v4095_v20  ;;  %v926_v40 = vld [vmem:[#allocation3 + $0x490] sm:$0xff]  ;;  %v4241_v20 = vpack.c.bf16 %v1161_v11, %v1159_v10  ;;  %v955_v55 = vld [vmem:[#allocation3 + $0x578] sm:$0xff]  ;;  %v1180_v61 = vld [vmem:[#allocation5 + $0x2c8] sm:$0xff] }
  0xfd   : > { %4172 = vmatprep.subr.bf16.mxu0 %v4171_v43  ;;  %v4101_v43 = vpack.c.bf16 %v742_v34, %v740_v33  ;;  %v4189_v49 = vpack.c.bf16 %v926_v40, %v924_v39  ;;  %v1167_v34 = vld [vmem:[#allocation5 + $0x260] sm:$0xff]  ;;  %v1182_v62 = vld [vmem:[#allocation5 + $0x2d8] sm:$0xff]  ;;  %v954_v1 = vld [vmem:[#allocation3 + $0x570] sm:$0xff] }
  0xfe   : > { %v944_v40 = vld [vmem:[#allocation3 + $0x520] sm:$0xff]  ;;  %v959_v3 = vld [vmem:[#allocation3 + $0x598] sm:$0xff]  ;;  %v4259_v5 = vpack.c.bf16 %v1182_v62, %v1180_v61  ;;  %v1200_v61 = vld [vmem:[#allocation5 + $0x368] sm:$0xff] }
  0xff   : > { %897 = vmatmul.mubr.f32.vlgmr.msra.gmra.mrb[0].mxu0 %v613_v53  ;;  %4098 = vmatpush1.bf16.msra.mxu1 %v4097_v31  ;;  %v928_v53 = vld [vmem:[#allocation3 + $0x4a0] sm:$0xff]  ;;  %v947_v31 = vld [vmem:[#allocation3 + $0x538] sm:$0xff]  ;;  %v4209_v48 = vpack.c.bf16 %v946_v41, %v944_v40 }
 0x100   : > { %4174 = vmatpush1.bf16.msra.mxu0 %v4173_v54  ;;  %1049 = vmatprep.mubr.f32.mxu0 %v982_v19  ;;  %v930_v54 = vld [vmem:[#allocation3 + $0x4b0] sm:$0xff]  ;;  %v943_v19 = vld [vmem:[#allocation3 + $0x518] sm:$0xff]  ;;  %v4207_v39 = vpack.c.bf16 %v947_v31, %v945_v30  ;;  %v952_v0 = vld [vmem:[#allocation3 + $0x560] sm:$0xff] }
 0x101   : > { %4176 = vmatprep.subr.bf16.mxu0 %v4175_v57  ;;  %4100 = vmatprep.subr.bf16.mxu1 %v4099_v32  ;;  %v4105_v57 = vpack.c.bf16 %v746_v46, %v744_v44  ;;  %v4193_v63 = vpack.c.bf16 %v930_v54, %v928_v53  ;;  %v4203_v27 = vpack.c.bf16 %v943_v19, %v941_v18  ;;  %v1171_v46 = vld [vmem:[#allocation5 + $0x280] sm:$0xff]  ;;  %v950_v53 = vld [vmem:[#allocation3 + $0x550] sm:$0xff]  ;;  %v953_v54 = vld [vmem:[#allocation3 + $0x568] sm:$0xff] }
 0x102   : > { %v4253_v56 = vpack.c.bf16 %v1173_v47, %v1171_v46  ;;  %v1179_v6 = vld [vmem:[#allocation5 + $0x2c0] sm:$0xff]  ;;  %v1186_v10 = vld [vmem:[#allocation5 + $0x2f8] sm:$0xff]  ;;  %v1185_v19 = vld [vmem:[#allocation5 + $0x2f0] sm:$0xff] }
 0x103   : > { %4102 = vmatpush1.bf16.msra.mxu1 %v4101_v43  ;;  %v951_v43 = vld [vmem:[#allocation3 + $0x558] sm:$0xff]  ;;  %v1183_v18 = vld [vmem:[#allocation5 + $0x2e0] sm:$0xff]  ;;  %v1189_v31 = vld [vmem:[#allocation5 + $0x310] sm:$0xff] }
 0x104   : > { %4178 = vmatpush1.bf16.msra.mxu0 %v4177_v7  ;;  %4104 = vmatprep.subr.bf16.mxu1 %v4103_v45  ;;  %v755_v7 = vsel %vm752_vm0, %v753_v58, %v754_v59  ;;  %v4211_v51 = vpack.c.bf16 %v951_v43, %v949_v42  ;;  %v1175_v58 = vld [vmem:[#allocation5 + $0x2a0] sm:$0xff]  ;;  %v1177_v59 = vld [vmem:[#allocation5 + $0x2b0] sm:$0xff]  ;;  %v4265_v28 = vpack.c.bf16 %v1185_v19, %v1183_v18  ;;  %v1196_v46 = vld [vmem:[#allocation5 + $0x348] sm:$0xff] }
 0x105   : > { %4180 = vmatprep.subr.bf16.mxu0 %v4179_v13  ;;  %v1164_v13 = vld [vmem:[#allocation5 + $0x248] sm:$0xff]  ;;  %v4257_v4 = vpack.c.bf16 %v1177_v59, %v1175_v58  ;;  %v1187_v30 = vld [vmem:[#allocation5 + $0x300] sm:$0xff]  ;;  %v1193_v43 = vld [vmem:[#allocation5 + $0x330] sm:$0xff] }
 0x106   : > { %v4243_v21 = vpack.c.bf16 %v1166_v14, %v1164_v13  ;;  %v958_v13 = vld [vmem:[#allocation3 + $0x590] sm:$0xff]  ;;  %v961_v14 = vld [vmem:[#allocation3 + $0x5a8] sm:$0xff]  ;;  %v4269_v40 = vpack.c.bf16 %v1189_v31, %v1187_v30  ;;  %v1191_v42 = vld [vmem:[#allocation5 + $0x320] sm:$0xff] }
 0x107   : > { %4106 = vmatpush1.bf16.msra.mxu1 %v4105_v57  ;;  %v1198_v47 = vld [vmem:[#allocation5 + $0x358] sm:$0xff]  ;;  %v1213_v19 = vld [vmem:[#allocation5 + $0x3d0] sm:$0xff] }
 0x108   : > { %4182 = vmatpush1.bf16.msra.mxu0 %v4181_v23  ;;  %4236 = vmatprep.subr.bf16.mxu1 %v4235_v60  ;;  %v1165_v23 = vld [vmem:[#allocation5 + $0x250] sm:$0xff]  ;;  %v1202_v62 = vld [vmem:[#allocation5 + $0x378] sm:$0xff] }
 0x109   : > { %4184 = vmatprep.subr.bf16.mxu0 %v4183_v26  ;;  %v1170_v26 = vld [vmem:[#allocation5 + $0x278] sm:$0xff]  ;;  %v4245_v32 = vpack.c.bf16 %v1165_v23, %v1163_v22 }
 0x10a   : > { %826 = vmatmul.mubr.f32.vlgmr.msra.gmra.mrb[0].mxu1 %v755_v7  ;;  %v4247_v33 = vpack.c.bf16 %v1170_v26, %v1168_v25  ;;  %v1181_v7 = vld [vmem:[#allocation5 + $0x2d0] sm:$0xff]  ;;  %v1190_v22 = vld [vmem:[#allocation5 + $0x318] sm:$0xff]  ;;  %v965_v26 = vld [vmem:[#allocation3 + $0x5c8] sm:$0xff] }
 0x10b   : > { %4238 = vmatpush1.bf16.msra.mxu1 %v4237_v8  ;;  %v4217_v8 = vpack.c.bf16 %v954_v1, %v952_v0  ;;  %v4261_v16 = vpack.c.bf16 %v1181_v7, %v1179_v6  ;;  %v962_v25 = vld [vmem:[#allocation3 + $0x5b0] sm:$0xff]  ;;  %v1199_v0 = vld [vmem:[#allocation5 + $0x360] sm:$0xff] }
 0x10c   : > { %4186 = vmatpush1.bf16.msra.mxu0 %v4185_v35  ;;  %4240 = vmatprep.subr.bf16.mxu1 %v4239_v9  ;;  %v1169_v35 = vld [vmem:[#allocation5 + $0x270] sm:$0xff]  ;;  %v1184_v9 = vld [vmem:[#allocation5 + $0x2e8] sm:$0xff]  ;;  %v1203_v6 = vld [vmem:[#allocation5 + $0x380] sm:$0xff] }
 0x10d   : > { %4188 = vmatprep.subr.bf16.mxu0 %v4187_v38  ;;  %v1174_v38 = vld [vmem:[#allocation5 + $0x298] sm:$0xff]  ;;  %v4249_v44 = vpack.c.bf16 %v1169_v35, %v1167_v34  ;;  %v4263_v17 = vpack.c.bf16 %v1186_v10, %v1184_v9  ;;  %v1201_v1 = vld [vmem:[#allocation5 + $0x370] sm:$0xff]  ;;  %v1208_v9 = vld [vmem:[#allocation5 + $0x3a8] sm:$0xff] }
 0x10e   : > { %v4251_v45 = vpack.c.bf16 %v1174_v38, %v1172_v37  ;;  %v1194_v34 = vld [vmem:[#allocation5 + $0x338] sm:$0xff]  ;;  %v966_v37 = vld [vmem:[#allocation3 + $0x5d0] sm:$0xff]  ;;  %v969_v38 = vld [vmem:[#allocation3 + $0x5e8] sm:$0xff] }
 0x10f   : > { %4242 = vmatpush1.bf16.msra.mxu1 %v4241_v20  ;;  %v1205_v7 = vld [vmem:[#allocation5 + $0x390] sm:$0xff]  ;;  %v1210_v10 = vld [vmem:[#allocation5 + $0x3b8] sm:$0xff] }
 0x110   : > { %4190 = vmatpush1.bf16.msra.mxu0 %v4189_v49  ;;  %4244 = vmatprep.subr.bf16.mxu1 %v4243_v21  ;;  %v1176_v49 = vld [vmem:[#allocation5 + $0x2a8] sm:$0xff] }
 0x111   : > { %4192 = vmatprep.subr.bf16.mxu0 %v4191_v52  ;;  %v948_v52 = vld [vmem:[#allocation3 + $0x540] sm:$0xff]  ;;  %v4255_v57 = vpack.c.bf16 %v1178_v50, %v1176_v49  ;;  %v1188_v21 = vld [vmem:[#allocation5 + $0x308] sm:$0xff]  ;;  %v970_v49 = vld [vmem:[#allocation3 + $0x5f0] sm:$0xff] }
 0x112   : > { %v4213_v60 = vpack.c.bf16 %v950_v53, %v948_v52  ;;  %v4267_v29 = vpack.c.bf16 %v1190_v22, %v1188_v21  ;;  %v903_v50 = vld [vmem:[#allocation2] sm:$0xfc]  ;;  %v4273_v52 = vpack.c.bf16 %v1193_v43, %v1191_v42  ;;  %v4275_v53 = vpack.c.bf16 %v1198_v47, %v1196_v46  ;;  %v1218_v21 = vld [vmem:[#allocation5 + $0x3f8] sm:$0xff] }
 0x113   : > { %4246 = vmatpush1.bf16.msra.mxu1 %v4245_v32 }
 0x114   : > { %4194 = vmatpush1.bf16.msra.mxu0 %v4193_v63  ;;  %4248 = vmatprep.subr.bf16.mxu1 %v4247_v33  ;;  %v4215_v63 = vpack.c.bf16 %v955_v55, %v953_v54  ;;  %v1192_v33 = vld [vmem:[#allocation5 + $0x328] sm:$0xff]  ;;  %v1195_v54 = vld [vmem:[#allocation5 + $0x340] sm:$0xff]  ;;  %v1197_v55 = vld [vmem:[#allocation5 + $0x350] sm:$0xff] }
 0x115   : > { %4196 = vmatprep.subr.bf16.mxu0 %v4195_v2  ;;  %v957_v2 = vld [vmem:[#allocation3 + $0x588] sm:$0xff]  ;;  %v4271_v41 = vpack.c.bf16 %v1194_v34, %v1192_v33  ;;  %v4277_v59 = vpack.c.bf16 %v1197_v55, %v1195_v54  ;;  %v1093_v54 = vld [vmem:[#allocation5 + $0x38] sm:$0xff] }
 0x116   : > { %v4219_v11 = vpack.c.bf16 %v959_v3, %v957_v2  ;;  %v4281_v2 = vpack.c.bf16 %v1201_v1, %v1199_v0  ;;  %v1204_v3 = vld [vmem:[#allocation5 + $0x388] sm:$0xff]  ;;  %v1090_v0 = vld [vmem:[#allocation5 + $0x20] sm:$0xff]  ;;  %v1092_v1 = vld [vmem:[#allocation5 + $0x30] sm:$0xff] }
 0x117   : > { %4250 = vmatpush1.bf16.msra.mxu1 %v4249_v44 }
 0x118   : > { %4198 = vmatpush1.bf16.msra.mxu0 %v4197_v12  ;;  %4252 = vmatprep.subr.bf16.mxu1 %v4251_v45  ;;  %v956_v12 = vld [vmem:[#allocation3 + $0x580] sm:$0xff] }
 0x119   : > { %4200 = vmatprep.subr.bf16.mxu0 %v4199_v15  ;;  %v963_v15 = vld [vmem:[#allocation3 + $0x5b8] sm:$0xff]  ;;  %v4221_v20 = vpack.c.bf16 %v958_v13, %v956_v12  ;;  %v968_v45 = vld [vmem:[#allocation3 + $0x5e0] sm:$0xff]  ;;  %v1209_v13 = vld [vmem:[#allocation5 + $0x3b0] sm:$0xff] }
 0x11a   : > { %v4223_v23 = vpack.c.bf16 %v963_v15, %v961_v14  ;;  %v1207_v12 = vld [vmem:[#allocation5 + $0x3a0] sm:$0xff]  ;;  %v1212_v15 = vld [vmem:[#allocation5 + $0x3c8] sm:$0xff] }
 0x11b   : > { %4254 = vmatpush1.bf16.msra.mxu1 %v4253_v56  ;;  %v4233_v56 = vpack.c.bf16 %v970_v49, %v968_v45  ;;  %v4289_v14 = vpack.c.bf16 %v1209_v13, %v1207_v12  ;;  %v1086_v49 = vld [vmem:[#allocation5] sm:$0xff]  ;;  %v1626_v13 = vld [vmem:[#allocation7 + $0x210] sm:$0xff] }
 0x11c   : > { %4202 = vmatpush1.bf16.msra.mxu0 %v4201_v24  ;;  %4256 = vmatprep.subr.bf16.mxu1 %v4255_v57  ;;  %v960_v24 = vld [vmem:[#allocation3 + $0x5a0] sm:$0xff]  ;;  %v977_v57 = vrot.slane %v903_v50, 2  ;;  %v1088_v50 = vld [vmem:[#allocation5 + $0x10] sm:$0xff] }
 0x11d   : > { %4204 = vmatprep.subr.bf16.mxu0 %v4203_v27  ;;  %v967_v27 = vld [vmem:[#allocation3 + $0x5d8] sm:$0xff]  ;;  %v4225_v32 = vpack.c.bf16 %v962_v25, %v960_v24  ;;  %v1215_v24 = vld [vmem:[#allocation5 + $0x3e0] sm:$0xff]  ;;  %v1217_v25 = vld [vmem:[#allocation5 + $0x3f0] sm:$0xff] }
 0x11e   : > { %v4227_v35 = vpack.c.bf16 %v967_v27, %v965_v26  ;;  %v4297_v26 = vpack.c.bf16 %v1217_v25, %v1215_v24  ;;  %v1087_v27 = vld [vmem:[#allocation5 + $0x8] sm:$0xff]  ;;  %v1635_v24 = vld [vmem:[#allocation7 + $0x258] sm:$0xff] }
 0x11f   : > { %4258 = vmatpush1.bf16.msra.mxu1 %v4257_v4  ;;  %v1206_v4 = vld [vmem:[#allocation5 + $0x398] sm:$0xff] }
 0x120   : > { %4206 = vmatpush1.bf16.msra.mxu0 %v4205_v36  ;;  %4260 = vmatprep.subr.bf16.mxu1 %v4259_v5  ;;  %v964_v36 = vld [vmem:[#allocation3 + $0x5c0] sm:$0xff]  ;;  %v4283_v5 = vpack.c.bf16 %v1206_v4, %v1204_v3  ;;  %v1095_v4 = vld [vmem:[#allocation5 + $0x48] sm:$0xff] }
 0x121   : > { %4208 = vmatprep.subr.bf16.mxu0 %v4207_v39  ;;  %v971_v39 = vld [vmem:[#allocation3 + $0x5f8] sm:$0xff]  ;;  %v4229_v44 = vpack.c.bf16 %v966_v37, %v964_v36 }
 0x123   : > { %4262 = vmatpush1.bf16.msra.mxu1 %v4261_v16  ;;  %v1214_v16 = vld [vmem:[#allocation5 + $0x3d8] sm:$0xff] }
 0x124   : > { %4210 = vmatpush1.bf16.msra.mxu0 %v4209_v48  ;;  %4264 = vmatprep.subr.bf16.mxu1 %v4263_v17  ;;  %v4231_v48 = vpack.c.bf16 %v971_v39, %v969_v38  ;;  %v1211_v17 = vld [vmem:[#allocation5 + $0x3c0] sm:$0xff]  ;;  %v4291_v18 = vpack.c.bf16 %v1214_v16, %v1212_v15  ;;  %v1631_v15 = vld [vmem:[#allocation7 + $0x238] sm:$0xff] }
 0x125   : > { %4212 = vmatprep.subr.bf16.mxu0 %v4211_v51  ;;  %v905_v51 = vld [vmem:[#allocation2 + $0x10] sm:$0x3]  ;;  %v4293_v22 = vpack.c.bf16 %v1213_v19, %v1211_v17  ;;  %v1628_v19 = vld [vmem:[#allocation7 + $0x220] sm:$0xff] }
 0x126   : > { %v978_v58 = vrot.slane %v905_v51, 2  ;;  %v1091_v51 = vld [vmem:[#allocation5 + $0x28] sm:$0xff] }
 0x127   : > { %4266 = vmatpush1.bf16.msra.mxu1 %v4265_v28  ;;  %v1089_v28 = vld [vmem:[#allocation5 + $0x18] sm:$0xff] }
 0x128   : > { %4214 = vmatpush1.bf16.msra.mxu0 %v4213_v60  ;;  %4268 = vmatprep.subr.bf16.mxu1 %v4267_v29  ;;  %v979_v60 = vsel %vm976_vm1, %v977_v57, %v978_v58  ;;  %v4299_v29 = vpack.c.bf16 %v1089_v28, %v1087_v27  ;;  %v1098_v27 = vld [vmem:[#allocation5 + $0x60] sm:$0xff] }
 0x129   : > { %4216 = vmatprep.subr.bf16.mxu0 %v4215_v63  ;;  %v4279_v63 = vpack.c.bf16 %v1202_v62, %v1200_v61  ;;  %v4301_v61 = vpack.c.bf16 %v1088_v50, %v1086_v49  ;;  %v1104_v50 = vld [vmem:[#allocation5 + $0x90] sm:$0xff] }
 0x12b   : > { %4270 = vmatpush1.bf16.msra.mxu1 %v4269_v40 }
 0x12c   : > { %4218 = vmatpush1.bf16.msra.mxu0 %v4217_v8  ;;  %4272 = vmatprep.subr.bf16.mxu1 %v4271_v41  ;;  %v4285_v8 = vpack.c.bf16 %v1205_v7, %v1203_v6  ;;  %v1094_v6 = vld [vmem:[#allocation5 + $0x40] sm:$0xff]  ;;  %v1096_v7 = vld [vmem:[#allocation5 + $0x50] sm:$0xff] }
 0x12d   : > { %4220 = vmatprep.subr.bf16.mxu0 %v4219_v11  ;;  %v4287_v11 = vpack.c.bf16 %v1210_v10, %v1208_v9  ;;  %v1627_v9 = vld [vmem:[#allocation7 + $0x218] sm:$0xff]  ;;  %v1624_v10 = vld [vmem:[#allocation7 + $0x200] sm:$0xff] }
 0x12e   : > { %v4429_v17 = vpack.c.bf16 %v1626_v13, %v1624_v10  ;;  %v1112_v10 = vld [vmem:[#allocation5 + $0xd0] sm:$0xff]  ;;  %v1115_v13 = vld [vmem:[#allocation5 + $0xe8] sm:$0xff] }
 0x12f   : > { %4274 = vmatpush1.bf16.msra.mxu1 %v4273_v52 }
 0x130   : > { %4222 = vmatpush1.bf16.msra.mxu0 %v4221_v20  ;;  %4276 = vmatprep.subr.bf16.mxu1 %v4275_v53  ;;  %v1216_v20 = vld [vmem:[#allocation5 + $0x3e8] sm:$0xff] }
 0x131   : > { %4224 = vmatprep.subr.bf16.mxu0 %v4223_v23  ;;  %v4295_v23 = vpack.c.bf16 %v1218_v21, %v1216_v20  ;;  %v1630_v20 = vld [vmem:[#allocation7 + $0x230] sm:$0xff]  ;;  %v1633_v21 = vld [vmem:[#allocation7 + $0x248] sm:$0xff] }
 0x132   : > { %v4433_v25 = vpack.c.bf16 %v1630_v20, %v1628_v19  ;;  %v4435_v28 = vpack.c.bf16 %v1635_v24, %v1633_v21  ;;  %v1648_v19 = vld [vmem:[#allocation7 + $0x2c0] sm:$0xff]  ;;  %v1650_v20 = vld [vmem:[#allocation7 + $0x2d0] sm:$0xff]  ;;  %v1655_v24 = vld [vmem:[#allocation7 + $0x2f8] sm:$0xff] }
 0x133   : > { %4278 = vmatpush1.bf16.msra.mxu1 %v4277_v59 }
 0x134   : > { %4226 = vmatpush1.bf16.msra.mxu0 %v4225_v32  ;;  %4280 = vmatprep.subr.bf16.mxu1 %v4279_v63  ;;  %v1060_v32 = vlaneseq  ;;  %v4303_v63 = vpack.c.bf16 %v1093_v54, %v1091_v51  ;;  %v1641_v51 = vld [vmem:[#allocation7 + $0x288] sm:$0xff]  ;;  %v1109_v54 = vld [vmem:[#allocation5 + $0xb8] sm:$0xff] }
 0x135   : > { %4228 = vmatprep.subr.bf16.mxu0 %v4227_v35  ;;  %v1058_v35 = vld [vmem:[%s6140_s2] sm:$0x3] }
 0x136   : > { %v1061_v33 = vshrl.u32 %v1060_v32, 7  ;;  %v1100_v32 = vld [vmem:[#allocation5 + $0x70] sm:$0xff] }
 0x137   : > { %4282 = vmatpush1.bf16.msra.mxu1 %v4281_v2 }
 0x138   : > { %4230 = vmatpush1.bf16.msra.mxu0 %v4229_v44  ;;  %4284 = vmatprep.subr.bf16.mxu1 %v4283_v5  ;;  %v6039_v34 = vsub.s32 0, %v1061_v33  ;;  %v6044_v36 = vsub.s32 1, %v1061_v33  ;;  %v1097_v5 = vld [vmem:[#allocation5 + $0x58] sm:$0xff]  ;;  %v1637_v33 = vld [vmem:[#allocation7 + $0x268] sm:$0xff] }
 0x139   : > { %4232 = vmatprep.subr.bf16.mxu0 %v4231_v48  ;;  %v4307_v16 = vpack.c.bf16 %v1097_v5, %v1095_v4  ;;  %v1110_v5 = vld [vmem:[#allocation5 + $0xc0] sm:$0xff] }
 0x13a   : > { %v1063_v37 = vrot.slane %v1058_v35, %v6039_v34  ;;  %v1067_v39 = vrot.slane %v1058_v35, %v6044_v36  ;;  %v1639_v35 = vld [vmem:[#allocation7 + $0x278] sm:$0xff] }
 0x13b   : > { %4286 = vmatpush1.bf16.msra.mxu1 %v4285_v8  ;;  %v1625_v8 = vld [vmem:[#allocation7 + $0x208] sm:$0xff] }
 0x13c   : > { %4234 = vmatpush1.bf16.msra.mxu0 %v4233_v56  ;;  %4288 = vmatprep.subr.bf16.mxu1 %v4287_v11  ;;  %v4305_v11 = vpack.c.bf16 %v1092_v1, %v1090_v0  ;;  %v4427_v12 = vpack.c.bf16 %v1627_v9, %v1625_v8  ;;  %v1647_v0 = vld [vmem:[#allocation7 + $0x2b8] sm:$0xff]  ;;  %v1111_v1 = vld [vmem:[#allocation5 + $0xc8] sm:$0xff]  ;;  %v1646_v8 = vld [vmem:[#allocation7 + $0x2b0] sm:$0xff] }
 0x13e   : > { %4428 = vmatprep.subr.bf16.mxu0 %v4427_v12  ;;  %v1651_v12 = vld [vmem:[#allocation7 + $0x2d8] sm:$0xff] }
 0x13f   : > { %1050 = vmatmul.mubr.f32.vlgmr.msra.gmra.mrb[0].mxu0 %v979_v60  ;;  %4290 = vmatpush1.bf16.msra.mxu1 %v4289_v14  ;;  %v1629_v14 = vld [vmem:[#allocation7 + $0x228] sm:$0xff] }
 0x140   : > { %4292 = vmatprep.subr.bf16.mxu1 %v4291_v18  ;;  %v4431_v18 = vpack.c.bf16 %v1631_v15, %v1629_v14  ;;  %4430 = vmatpush1.bf16.msra.mxu0 %v4429_v17  ;;  %v1117_v14 = vld [vmem:[#allocation5 + $0xf8] sm:$0xff]  ;;  %v1114_v17 = vld [vmem:[#allocation5 + $0xe0] sm:$0xff] }
 0x141   : > { %v4327_v21 = vpack.c.bf16 %v1117_v14, %v1115_v13  ;;  %v1669_v13 = vld [vmem:[#allocation7 + $0x368] sm:$0xff]  ;;  %v1671_v14 = vld [vmem:[#allocation7 + $0x378] sm:$0xff] }
 0x142   : > { %4432 = vmatprep.subr.bf16.mxu0 %v4431_v18 }
 0x143   : > { %4294 = vmatpush1.bf16.msra.mxu1 %v4293_v22  ;;  %v1099_v22 = vld [vmem:[#allocation5 + $0x68] sm:$0xff] }
 0x144   : > { %4296 = vmatprep.subr.bf16.mxu1 %v4295_v23  ;;  %v1101_v23 = vld [vmem:[#allocation5 + $0x78] sm:$0xff]  ;;  %4434 = vmatpush1.bf16.msra.mxu0 %v4433_v25  ;;  %v1119_v25 = vld [vmem:[#allocation5 + $0x108] sm:$0xff] }
 0x145   : > { %4436 = vmatprep.subr.bf16.mxu0 %v4435_v28 }
 0x147   : > { %4298 = vmatpush1.bf16.msra.mxu1 %v4297_v26  ;;  %v4309_v26 = vpack.c.bf16 %v1096_v7, %v1094_v6  ;;  %v1644_v7 = vld [vmem:[#allocation7 + $0x2a0] sm:$0xff] }
 0x148   : > { %4300 = vmatprep.subr.bf16.mxu1 %v4299_v29  ;;  %v1632_v29 = vld [vmem:[#allocation7 + $0x240] sm:$0xff]  ;;  %v4449_v15 = vpack.c.bf16 %v1646_v8, %v1644_v7 }
 0x149   : > { %v1130_v7 = vld [vmem:[#allocation5 + $0x160] sm:$0xff] }
 0x1dd   : > { %v827_v30 = vpop.f32.mrb[0].mxu1 }
 0x1de   : > { %v829_v31 = vpop.f32.mrb[1].mxu1 }
 0x212   : > { %v1051_v38 = vpop.f32.mrb[0].mxu0 }
 0x213   : > { %v5387_v40 = vadd.f32 %v1051_v38, %v827_v30  ;;  %v1053_v41 = vpop.f32.mrb[1].mxu0  ;;  %v1634_v30 = vld [vmem:[#allocation7 + $0x250] sm:$0xff]  ;;  %v1105_v38 = vld [vmem:[#allocation5 + $0x98] sm:$0xff] }
 0x214   : > { %v5388_v42 = vadd.f32 %v1053_v41, %v829_v31  ;;  %v4311_v31 = vpack.c.bf16 %v1101_v23, %v1099_v22  ;;  %v1102_v41 = vld [vmem:[#allocation5 + $0x80] sm:$0xff]  ;;  %v1116_v22 = vld [vmem:[#allocation5 + $0xf0] sm:$0xff]  ;;  %v1653_v23 = vld [vmem:[#allocation7 + $0x2e8] sm:$0xff] }
 0x215   : > { %v6048_v43 = vadd.f32 %v5387_v40, %v1063_v37  ;;  %v1103_v37 = vld [vmem:[#allocation5 + $0x88] sm:$0xff]  ;;  %v4313_v40 = vpack.c.bf16 %v1100_v32, %v1098_v27  ;;  %v4453_v27 = vpack.c.bf16 %v1650_v20, %v1648_v19  ;;  %v4329_v28 = vpack.c.bf16 %v1116_v22, %v1114_v17  ;;  %v1654_v32 = vld [vmem:[#allocation7 + $0x2f0] sm:$0xff] }
 0x216   : > { %v6050_v44 = vadd.f32 %v5388_v42, %v1067_v39  ;;  %v4437_v39 = vpack.c.bf16 %v1634_v30, %v1632_v29  ;;  %v4439_v42 = vpack.c.bf16 %v1639_v35, %v1637_v33  ;;  %v4315_v49 = vpack.c.bf16 %v1105_v38, %v1103_v37  ;;  %v1118_v29 = vld [vmem:[#allocation5 + $0x100] sm:$0xff]  ;;  %v1120_v35 = vld [vmem:[#allocation5 + $0x110] sm:$0xff]  ;;  %v1657_v37 = vld [vmem:[#allocation7 + $0x308] sm:$0xff] }
 0x217   : > { %v1072_v45 = vmax.f32 %v6048_v43, 0.0  ;;  %v4455_v30 = vpack.c.bf16 %v1655_v24, %v1653_v23  ;;  %v1659_v38 = vld [vmem:[#allocation7 + $0x318] sm:$0xff]  ;;  %v4471_v19 = vpack.c.bf16 %v1671_v14, %v1669_v13  ;;  %v1136_v22 = vld [vmem:[#allocation5 + $0x190] sm:$0xff]  ;;  %v1139_v23 = vld [vmem:[#allocation5 + $0x1a8] sm:$0xff] }
 0x218   : > { %v1073_v46 = vmax.f32 %v6050_v44, 0.0  ;;  %4438 = vmatpush1.bf16.msra.mxu0 %v4437_v39  ;;  %v1123_v39 = vld [vmem:[#allocation5 + $0x128] sm:$0xff]  ;;  %v1141_v24 = vld [vmem:[#allocation5 + $0x1b8] sm:$0xff] }
 0x219   : > { %v1076_v47 = vrot.slane %v1072_v45, 7  ;;  %4440 = vmatprep.subr.bf16.mxu0 %v4439_v42  ;;  %v4333_v42 = vpack.c.bf16 %v1120_v35, %v1118_v29  ;;  %v1143_v29 = vld [vmem:[#allocation5 + $0x1c8] sm:$0xff]  ;;  %v1144_v35 = vld [vmem:[#allocation5 + $0x1d0] sm:$0xff]  ;;  %v1397_v14 = vld [vmem:[#allocation5 + $0x498] sm:$0xff] }
 0x21a   : > { %v1077_v48 = vrot.slane %v1073_v46, 7  ;;  %v1395_v13 = vld [vmem:[#allocation5 + $0x488] sm:$0xff] }
 0x21b   : > { %1080 = vst [vmem:[#allocation2] sm:$0xfe] %v1076_v47  ;;  %1082 = vst [vmem:[#allocation2 + $0x10] sm:$0x1] %v1076_v47  ;;  %v1636_v47 = vld [vmem:[#allocation7 + $0x260] sm:$0xff] }
 0x21c   : > { %1081 = vst [vmem:[#allocation2 + $0x8] sm:$0xfe] %v1077_v48  ;;  %1083 = vst [vmem:[#allocation2 + $0x18] sm:$0x1] %v1077_v48  ;;  %v1638_v48 = vld [vmem:[#allocation7 + $0x270] sm:$0xff] }
 0x222   : > { %v1150_v52 = vld [vmem:[#allocation2] sm:$0xfe]  ;;  %v1152_v53 = vld [vmem:[#allocation2 + $0x10] sm:$0x1] }
 0x223   : > { %v1151_v55 = vld [vmem:[#allocation2 + $0x8] sm:$0xfe]  ;;  %v1153_v56 = vld [vmem:[#allocation2 + $0x18] sm:$0x1]  ;;  %v1223_v57 = vrot.slane %v1150_v52, 1  ;;  %v1224_v58 = vrot.slane %v1152_v53, 1 }
 0x224   : > { %v1226_v59 = vrot.slane %v1151_v55, 1  ;;  %v1227_v60 = vrot.slane %v1153_v56, 1  ;;  %v1085_v3 = vld [vmem:[#allocation2 + $0x8] sm:$0xff]  ;;  %v1643_v52 = vld [vmem:[#allocation7 + $0x298] sm:$0xff]  ;;  %v4441_v55 = vpack.c.bf16 %v1638_v48, %v1636_v47  ;;  %v4317_v56 = vpack.c.bf16 %v1104_v50, %v1102_v41  ;;  %v1122_v47 = vld [vmem:[#allocation5 + $0x120] sm:$0xff] }
 0x225   : > { %v1225_v2 = vsel %vm752_vm0, %v1223_v57, %v1224_v58  ;;  %v1107_v53 = vld [vmem:[#allocation5 + $0xa8] sm:$0xff]  ;;  %v1106_v57 = vld [vmem:[#allocation5 + $0xa0] sm:$0xff]  ;;  %v4443_v58 = vpack.c.bf16 %v1643_v52, %v1641_v51  ;;  %v4459_v48 = vpack.c.bf16 %v1659_v38, %v1657_v37  ;;  %v1658_v50 = vld [vmem:[#allocation7 + $0x310] sm:$0xff] }
 0x226   : > { %v1228_v62 = vsel %vm752_vm0, %v1226_v59, %v1227_v60  ;;  %v1640_v59 = vld [vmem:[#allocation7 + $0x280] sm:$0xff]  ;;  %v1642_v60 = vld [vmem:[#allocation7 + $0x290] sm:$0xff]  ;;  %4442 = vmatpush1.bf16.msra.mxu0 %v4441_v55  ;;  %v1127_v55 = vld [vmem:[#allocation5 + $0x148] sm:$0xff] }
 0x227   : > { %1295 = vmatprep.mubr.f32.mxu1 %v1228_v62  ;;  %v1108_v62 = vld [vmem:[#allocation5 + $0xb0] sm:$0xff]  ;;  %4444 = vmatprep.subr.bf16.mxu0 %v4443_v58  ;;  %v1147_v37 = vld [vmem:[#allocation5 + $0x1e8] sm:$0xff]  ;;  %v1149_v38 = vld [vmem:[#allocation5 + $0x1f8] sm:$0xff] }
 0x228   : > { %1296 = vmatmul.mubr.f32.vlgmr.msra.gmra.mrb[2].mxu1 %v1225_v2  ;;  %v1113_v2 = vld [vmem:[#allocation5 + $0xd8] sm:$0xff]  ;;  %v4321_v4 = vpack.c.bf16 %v1108_v62, %v1106_v57  ;;  %v1124_v52 = vld [vmem:[#allocation5 + $0x130] sm:$0xff] }
 0x229   : > { %4302 = vmatpush1.bf16.msra.mxu1 %v4301_v61  ;;  %1366 = vmatprep.mubr.f32.mxu1 %v1085_v3  ;;  %v4319_v61 = vpack.c.bf16 %v1109_v54, %v1107_v53  ;;  %v4445_v3 = vpack.c.bf16 %v1642_v60, %v1640_v59  ;;  %v4323_v9 = vpack.c.bf16 %v1113_v2, %v1111_v1  ;;  %v1661_v53 = vld [vmem:[#allocation7 + $0x328] sm:$0xff]  ;;  %v1663_v54 = vld [vmem:[#allocation7 + $0x338] sm:$0xff]  ;;  %v1126_v59 = vld [vmem:[#allocation5 + $0x140] sm:$0xff] }
 0x22a   : > { %4304 = vmatprep.subr.bf16.mxu1 %v4303_v63  ;;  %v1645_v63 = vld [vmem:[#allocation7 + $0x2a8] sm:$0xff]  ;;  %v4337_v58 = vpack.c.bf16 %v1124_v52, %v1122_v47  ;;  %v4463_v60 = vpack.c.bf16 %v1663_v54, %v1661_v53  ;;  %v1662_v62 = vld [vmem:[#allocation7 + $0x330] sm:$0xff]  ;;  %v1667_v2 = vld [vmem:[#allocation7 + $0x358] sm:$0xff] }
 0x22b   : > { %v4447_v6 = vpack.c.bf16 %v1647_v0, %v1645_v63  ;;  %4446 = vmatpush1.bf16.msra.mxu0 %v4445_v3  ;;  %v1128_v0 = vld [vmem:[#allocation5 + $0x150] sm:$0xff]  ;;  %v1665_v1 = vld [vmem:[#allocation7 + $0x348] sm:$0xff]  ;;  %v1378_v53 = vld [vmem:[#allocation5 + $0x400] sm:$0xff] }
 0x22c   : > { %v1131_v3 = vld [vmem:[#allocation5 + $0x168] sm:$0xff]  ;;  %v4467_v8 = vpack.c.bf16 %v1667_v2, %v1665_v1  ;;  %v1380_v54 = vld [vmem:[#allocation5 + $0x410] sm:$0xff]  ;;  %v1389_v1 = vld [vmem:[#allocation5 + $0x458] sm:$0xff] }
 0x22d   : > { %4306 = vmatpush1.bf16.msra.mxu1 %v4305_v11  ;;  %v1649_v11 = vld [vmem:[#allocation7 + $0x2c8] sm:$0xff]  ;;  %4448 = vmatprep.subr.bf16.mxu0 %v4447_v6  ;;  %v4341_v6 = vpack.c.bf16 %v1128_v0, %v1126_v59  ;;  %v4365_v59 = vpack.c.bf16 %v1380_v54, %v1378_v53  ;;  %v1414_v53 = vld [vmem:[#allocation5 + $0x520] sm:$0xff]  ;;  %v1416_v54 = vld [vmem:[#allocation5 + $0x530] sm:$0xff] }
 0x22e   : > { %4308 = vmatprep.subr.bf16.mxu1 %v4307_v16  ;;  %v4325_v16 = vpack.c.bf16 %v1112_v10, %v1110_v5  ;;  %v4451_v18 = vpack.c.bf16 %v1651_v12, %v1649_v11  ;;  %v1666_v10 = vld [vmem:[#allocation7 + $0x350] sm:$0xff]  ;;  %v1379_v47 = vld [vmem:[#allocation5 + $0x408] sm:$0xff] }
 0x22f   : > { %4450 = vmatpush1.bf16.msra.mxu0 %v4449_v15  ;;  %v1132_v12 = vld [vmem:[#allocation5 + $0x170] sm:$0xff]  ;;  %v1135_v15 = vld [vmem:[#allocation5 + $0x188] sm:$0xff] }
 0x230   : > { %4452 = vmatprep.subr.bf16.mxu0 %v4451_v18  ;;  %v4345_v18 = vpack.c.bf16 %v1132_v12, %v1130_v7  ;;  %v1387_v0 = vld [vmem:[#allocation5 + $0x448] sm:$0xff]  ;;  %v1392_v12 = vld [vmem:[#allocation5 + $0x470] sm:$0xff] }
 0x231   : > { %4310 = vmatpush1.bf16.msra.mxu1 %v4309_v26  ;;  %v1121_v26 = vld [vmem:[#allocation5 + $0x118] sm:$0xff]  ;;  %v1391_v7 = vld [vmem:[#allocation5 + $0x468] sm:$0xff] }
 0x232   : > { %4312 = vmatprep.subr.bf16.mxu1 %v4311_v31  ;;  %v1652_v31 = vld [vmem:[#allocation7 + $0x2e0] sm:$0xff]  ;;  %v4331_v33 = vpack.c.bf16 %v1121_v26, %v1119_v25  ;;  %v4351_v26 = vpack.c.bf16 %v1141_v24, %v1139_v23  ;;  %v1400_v24 = vld [vmem:[#allocation5 + $0x4b0] sm:$0xff] }
 0x233   : > { %4454 = vmatpush1.bf16.msra.mxu0 %v4453_v27  ;;  %v4457_v41 = vpack.c.bf16 %v1654_v32, %v1652_v31  ;;  %v1138_v27 = vld [vmem:[#allocation5 + $0x1a0] sm:$0xff] }
 0x234   : > { %4456 = vmatprep.subr.bf16.mxu0 %v4455_v30  ;;  %v1145_v30 = vld [vmem:[#allocation5 + $0x1d8] sm:$0xff]  ;;  %v1398_v23 = vld [vmem:[#allocation5 + $0x4a0] sm:$0xff] }
 0x235   : > { %4314 = vmatpush1.bf16.msra.mxu1 %v4313_v40  ;;  %v1125_v40 = vld [vmem:[#allocation5 + $0x138] sm:$0xff]  ;;  %v4355_v32 = vpack.c.bf16 %v1145_v30, %v1143_v29  ;;  %v1402_v29 = vld [vmem:[#allocation5 + $0x4c0] sm:$0xff]  ;;  %v1404_v30 = vld [vmem:[#allocation5 + $0x4d0] sm:$0xff] }
 0x236   : > { %4316 = vmatprep.subr.bf16.mxu1 %v4315_v49  ;;  %v1656_v49 = vld [vmem:[#allocation7 + $0x300] sm:$0xff]  ;;  %v4335_v51 = vpack.c.bf16 %v1125_v40, %v1123_v39  ;;  %v4359_v40 = vpack.c.bf16 %v1149_v38, %v1147_v37  ;;  %v1408_v38 = vld [vmem:[#allocation5 + $0x4f0] sm:$0xff] }
 0x237   : > { %4458 = vmatpush1.bf16.msra.mxu0 %v4457_v41  ;;  %v4461_v57 = vpack.c.bf16 %v1658_v50, %v1656_v49  ;;  %v1146_v41 = vld [vmem:[#allocation5 + $0x1e0] sm:$0xff]  ;;  %v1374_v50 = vld [vmem:[#allocation2 + $0x8] sm:$0xfc] }
 0x238   : > { %4460 = vmatprep.subr.bf16.mxu0 %v4459_v48  ;;  %v1381_v48 = vld [vmem:[#allocation5 + $0x418] sm:$0xff]  ;;  %v1406_v37 = vld [vmem:[#allocation5 + $0x4e0] sm:$0xff] }
 0x239   : > { %4318 = vmatpush1.bf16.msra.mxu1 %v4317_v56  ;;  %v1129_v56 = vld [vmem:[#allocation5 + $0x158] sm:$0xff]  ;;  %v4363_v52 = vpack.c.bf16 %v1381_v48, %v1379_v47  ;;  %v1410_v47 = vld [vmem:[#allocation5 + $0x500] sm:$0xff]  ;;  %v1412_v48 = vld [vmem:[#allocation5 + $0x510] sm:$0xff] }
 0x23a   : > { %4320 = vmatprep.subr.bf16.mxu1 %v4319_v61  ;;  %v1660_v61 = vld [vmem:[#allocation7 + $0x320] sm:$0xff]  ;;  %v4339_v63 = vpack.c.bf16 %v1129_v56, %v1127_v55  ;;  %v1383_v55 = vld [vmem:[#allocation5 + $0x428] sm:$0xff]  ;;  %v1385_v56 = vld [vmem:[#allocation5 + $0x438] sm:$0xff] }
 0x23b   : > { %4462 = vmatpush1.bf16.msra.mxu0 %v4461_v57  ;;  %v4465_v5 = vpack.c.bf16 %v1662_v62, %v1660_v61  ;;  %v1449_v57 = vrot.slane %v1374_v50, 2  ;;  %v1382_v61 = vld [vmem:[#allocation5 + $0x420] sm:$0xff]  ;;  %v1384_v62 = vld [vmem:[#allocation5 + $0x430] sm:$0xff]  ;;  %v1417_v50 = vld [vmem:[#allocation5 + $0x538] sm:$0xff] }
 0x23c   : > { %4464 = vmatprep.subr.bf16.mxu0 %v4463_v60  ;;  %v4367_v60 = vpack.c.bf16 %v1385_v56, %v1383_v55  ;;  %v1419_v55 = vld [vmem:[#allocation5 + $0x548] sm:$0xff]  ;;  %v1421_v56 = vld [vmem:[#allocation5 + $0x558] sm:$0xff] }
 0x23d   : > { %4322 = vmatpush1.bf16.msra.mxu1 %v4321_v4  ;;  %v1133_v4 = vld [vmem:[#allocation5 + $0x178] sm:$0xff] }
 0x23e   : > { %4324 = vmatprep.subr.bf16.mxu1 %v4323_v9  ;;  %v1664_v9 = vld [vmem:[#allocation7 + $0x340] sm:$0xff]  ;;  %v4343_v11 = vpack.c.bf16 %v1133_v4, %v1131_v3  ;;  %v4369_v3 = vpack.c.bf16 %v1384_v62, %v1382_v61  ;;  %v4371_v4 = vpack.c.bf16 %v1389_v1, %v1387_v0  ;;  %v1423_v61 = vld [vmem:[#allocation5 + $0x568] sm:$0xff]  ;;  %v1425_v62 = vld [vmem:[#allocation5 + $0x578] sm:$0xff] }
 0x23f   : > { %4466 = vmatpush1.bf16.msra.mxu0 %v4465_v5  ;;  %v4469_v17 = vpack.c.bf16 %v1666_v10, %v1664_v9  ;;  %v1386_v5 = vld [vmem:[#allocation5 + $0x440] sm:$0xff]  ;;  %v4407_v0 = vpack.c.bf16 %v1425_v62, %v1423_v61 }
 0x240   : > { %4468 = vmatprep.subr.bf16.mxu0 %v4467_v8  ;;  %v1393_v8 = vld [vmem:[#allocation5 + $0x478] sm:$0xff]  ;;  %v1422_v1 = vld [vmem:[#allocation5 + $0x560] sm:$0xff] }
 0x241   : > { %4326 = vmatpush1.bf16.msra.mxu1 %v4325_v16  ;;  %v1137_v16 = vld [vmem:[#allocation5 + $0x198] sm:$0xff]  ;;  %v4375_v10 = vpack.c.bf16 %v1393_v8, %v1391_v7  ;;  %v1426_v7 = vld [vmem:[#allocation5 + $0x580] sm:$0xff]  ;;  %v1428_v8 = vld [vmem:[#allocation5 + $0x590] sm:$0xff] }
 0x242   : > { %4328 = vmatprep.subr.bf16.mxu1 %v4327_v21  ;;  %v4347_v20 = vpack.c.bf16 %v1137_v16, %v1135_v15  ;;  %v1134_v21 = vld [vmem:[#allocation5 + $0x180] sm:$0xff]  ;;  %v4379_v16 = vpack.c.bf16 %v1397_v14, %v1395_v13  ;;  %v1432_v14 = vld [vmem:[#allocation5 + $0x5b0] sm:$0xff] }
 0x243   : > { %4470 = vmatpush1.bf16.msra.mxu0 %v4469_v17  ;;  %v4349_v25 = vpack.c.bf16 %v1136_v22, %v1134_v21  ;;  %v1394_v17 = vld [vmem:[#allocation5 + $0x480] sm:$0xff] }
 0x244   : > { %4472 = vmatprep.subr.bf16.mxu0 %v4471_v19  ;;  %v1399_v19 = vld [vmem:[#allocation5 + $0x4a8] sm:$0xff]  ;;  %v1430_v13 = vld [vmem:[#allocation5 + $0x5a0] sm:$0xff] }
 0x245   : > { %4330 = vmatpush1.bf16.msra.mxu1 %v4329_v28  ;;  %v1140_v28 = vld [vmem:[#allocation5 + $0x1b0] sm:$0xff] }
 0x246   : > { %4332 = vmatprep.subr.bf16.mxu1 %v4331_v33  ;;  %v4353_v31 = vpack.c.bf16 %v1140_v28, %v1138_v27  ;;  %v1142_v33 = vld [vmem:[#allocation5 + $0x1c0] sm:$0xff]  ;;  %v4385_v27 = vpack.c.bf16 %v1400_v24, %v1398_v23 }
 0x247   : > { %v4357_v39 = vpack.c.bf16 %v1144_v35, %v1142_v33  ;;  %v4389_v33 = vpack.c.bf16 %v1404_v30, %v1402_v29 }
 0x249   : > { %4334 = vmatpush1.bf16.msra.mxu1 %v4333_v42  ;;  %v1148_v42 = vld [vmem:[#allocation5 + $0x1f0] sm:$0xff] }
 0x24a   : > { %4336 = vmatprep.subr.bf16.mxu1 %v4335_v51  ;;  %v4361_v49 = vpack.c.bf16 %v1148_v42, %v1146_v41  ;;  %v1376_v51 = vld [vmem:[#allocation2 + $0x18] sm:$0x3]  ;;  %v4393_v41 = vpack.c.bf16 %v1408_v38, %v1406_v37  ;;  %v1673_v38 = vld [vmem:[#allocation7 + $0x388] sm:$0xff] }
 0x24d   : > { %4338 = vmatpush1.bf16.msra.mxu1 %v4337_v58  ;;  %v1450_v58 = vrot.slane %v1376_v51, 2  ;;  %v4397_v51 = vpack.c.bf16 %v1412_v48, %v1410_v47  ;;  %v1677_v48 = vld [vmem:[#allocation7 + $0x3a8] sm:$0xff] }
 0x24e   : > { %4340 = vmatprep.subr.bf16.mxu1 %v4339_v63  ;;  %v1084_v63 = vld [vmem:[#allocation2] sm:$0xff] }
 0x24f   : > { %v1451_v2 = vsel %vm976_vm1, %v1449_v57, %v1450_v58  ;;  %v4401_v57 = vpack.c.bf16 %v1416_v54, %v1414_v53  ;;  %v4403_v58 = vpack.c.bf16 %v1421_v56, %v1419_v55  ;;  %v1681_v53 = vld [vmem:[#allocation7 + $0x3c8] sm:$0xff]  ;;  %v1683_v55 = vld [vmem:[#allocation7 + $0x3d8] sm:$0xff]  ;;  %v1680_v56 = vld [vmem:[#allocation7 + $0x3c0] sm:$0xff] }
 0x251   : > { %4342 = vmatpush1.bf16.msra.mxu1 %v4341_v6  ;;  %v1388_v6 = vld [vmem:[#allocation5 + $0x450] sm:$0xff] }
 0x252   : > { %4344 = vmatprep.subr.bf16.mxu1 %v4343_v11  ;;  %v4373_v9 = vpack.c.bf16 %v1388_v6, %v1386_v5  ;;  %v1390_v11 = vld [vmem:[#allocation5 + $0x460] sm:$0xff] }
 0x253   : > { %v4377_v15 = vpack.c.bf16 %v1392_v12, %v1390_v11  ;;  %v4413_v11 = vpack.c.bf16 %v1428_v8, %v1426_v7 }
 0x255   : > { %4346 = vmatpush1.bf16.msra.mxu1 %v4345_v18  ;;  %v1396_v18 = vld [vmem:[#allocation5 + $0x490] sm:$0xff] }
 0x256   : > { %4348 = vmatprep.subr.bf16.mxu1 %v4347_v20  ;;  %v1401_v20 = vld [vmem:[#allocation5 + $0x4b8] sm:$0xff]  ;;  %v4381_v21 = vpack.c.bf16 %v1396_v18, %v1394_v17  ;;  %v4417_v17 = vpack.c.bf16 %v1432_v14, %v1430_v13 }
 0x257   : > { %v4383_v22 = vpack.c.bf16 %v1401_v20, %v1399_v19  ;;  %v1434_v19 = vld [vmem:[#allocation5 + $0x5c0] sm:$0xff]  ;;  %v1436_v20 = vld [vmem:[#allocation5 + $0x5d0] sm:$0xff] }
 0x258   : > { %v4421_v23 = vpack.c.bf16 %v1436_v20, %v1434_v19 }
 0x259   : > { %4350 = vmatpush1.bf16.msra.mxu1 %v4349_v25  ;;  %v1403_v25 = vld [vmem:[#allocation5 + $0x4c8] sm:$0xff] }
 0x25a   : > { %4352 = vmatprep.subr.bf16.mxu1 %v4351_v26  ;;  %v1405_v26 = vld [vmem:[#allocation5 + $0x4d8] sm:$0xff] }
 0x25b   : > { %v4387_v28 = vpack.c.bf16 %v1405_v26, %v1403_v25  ;;  %v1438_v25 = vld [vmem:[#allocation5 + $0x5e0] sm:$0xff]  ;;  %v1440_v26 = vld [vmem:[#allocation5 + $0x5f0] sm:$0xff] }
 0x25c   : > { %v4425_v29 = vpack.c.bf16 %v1440_v26, %v1438_v25 }
 0x25d   : > { %4354 = vmatpush1.bf16.msra.mxu1 %v4353_v31  ;;  %v1407_v31 = vld [vmem:[#allocation5 + $0x4e8] sm:$0xff] }
 0x25e   : > { %4356 = vmatprep.subr.bf16.mxu1 %v4355_v32  ;;  %v1409_v32 = vld [vmem:[#allocation5 + $0x4f8] sm:$0xff] }
 0x25f   : > { %v4391_v35 = vpack.c.bf16 %v1409_v32, %v1407_v31 }
 0x261   : > { %4358 = vmatpush1.bf16.msra.mxu1 %v4357_v39  ;;  %v1411_v39 = vld [vmem:[#allocation5 + $0x508] sm:$0xff] }
 0x262   : > { %4360 = vmatprep.subr.bf16.mxu1 %v4359_v40  ;;  %v1413_v40 = vld [vmem:[#allocation5 + $0x518] sm:$0xff] }
 0x263   : > { %v4395_v42 = vpack.c.bf16 %v1413_v40, %v1411_v39  ;;  %v1675_v39 = vld [vmem:[#allocation7 + $0x398] sm:$0xff] }
 0x264   : > { %v4475_v40 = vpack.c.bf16 %v1675_v39, %v1673_v38  ;;  %v1566_v38 = vld [vmem:[#allocation7 + $0x58] sm:$0xff]  ;;  %v1563_v39 = vld [vmem:[#allocation7 + $0x40] sm:$0xff] }
 0x265   : > { %4362 = vmatpush1.bf16.msra.mxu1 %v4361_v49  ;;  %v1415_v49 = vld [vmem:[#allocation5 + $0x528] sm:$0xff] }
 0x266   : > { %4364 = vmatprep.subr.bf16.mxu1 %v4363_v52  ;;  %v4399_v52 = vpack.c.bf16 %v1417_v50, %v1415_v49  ;;  %v1679_v49 = vld [vmem:[#allocation7 + $0x3b8] sm:$0xff] }
 0x267   : > { %v4479_v50 = vpack.c.bf16 %v1679_v49, %v1677_v48 }
 0x268   : > { %1367 = vmatmul.mubr.f32.vlgmr.msra.gmra.mrb[2].mxu1 %v1084_v63 }
 0x269   : > { %4366 = vmatpush1.bf16.msra.mxu1 %v4365_v59  ;;  %1518 = vmatprep.mubr.f32.mxu1 %v1451_v2  ;;  %v1418_v59 = vld [vmem:[#allocation5 + $0x540] sm:$0xff]  ;;  %v1424_v2 = vld [vmem:[#allocation5 + $0x570] sm:$0xff] }
 0x26a   : > { %4368 = vmatprep.subr.bf16.mxu1 %v4367_v60  ;;  %v1420_v60 = vld [vmem:[#allocation5 + $0x550] sm:$0xff]  ;;  %v4409_v5 = vpack.c.bf16 %v1424_v2, %v1422_v1  ;;  %v1556_v2 = vld [vmem:[#allocation7 + $0x8] sm:$0xff] }
 0x26b   : > { %v4405_v63 = vpack.c.bf16 %v1420_v60, %v1418_v59  ;;  %v1685_v59 = vld [vmem:[#allocation7 + $0x3e8] sm:$0xff]  ;;  %v1687_v60 = vld [vmem:[#allocation7 + $0x3f8] sm:$0xff] }
 0x26c   : > { %v4487_v62 = vpack.c.bf16 %v1687_v60, %v1685_v59  ;;  %v1568_v59 = vld [vmem:[#allocation7 + $0x68] sm:$0xff]  ;;  %v1570_v60 = vld [vmem:[#allocation7 + $0x78] sm:$0xff] }
 0x26d   : > { %4370 = vmatpush1.bf16.msra.mxu1 %v4369_v3  ;;  %v1427_v3 = vld [vmem:[#allocation5 + $0x588] sm:$0xff] }
 0x26e   : > { %4372 = vmatprep.subr.bf16.mxu1 %v4371_v4  ;;  %v1429_v4 = vld [vmem:[#allocation5 + $0x598] sm:$0xff] }
 0x26f   : > { %v4411_v6 = vpack.c.bf16 %v1429_v4, %v1427_v3  ;;  %v1558_v3 = vld [vmem:[#allocation7 + $0x18] sm:$0xff] }
 0x270   : > { %v4491_v4 = vpack.c.bf16 %v1558_v3, %v1556_v2  ;;  %v2103_v2 = vld [vmem:[#allocation8 + $0x240] sm:$0xff]  ;;  %v2105_v3 = vld [vmem:[#allocation8 + $0x250] sm:$0xff] }
 0x271   : > { %4374 = vmatpush1.bf16.msra.mxu1 %v4373_v9  ;;  %v1431_v9 = vld [vmem:[#allocation5 + $0x5a8] sm:$0xff] }
 0x272   : > { %4376 = vmatprep.subr.bf16.mxu1 %v4375_v10  ;;  %v1433_v10 = vld [vmem:[#allocation5 + $0x5b8] sm:$0xff] }
 0x273   : > { %v4415_v12 = vpack.c.bf16 %v1433_v10, %v1431_v9 }
 0x275   : > { %4378 = vmatpush1.bf16.msra.mxu1 %v4377_v15  ;;  %v1435_v15 = vld [vmem:[#allocation5 + $0x5c8] sm:$0xff] }
 0x276   : > { %4380 = vmatprep.subr.bf16.mxu1 %v4379_v16  ;;  %v1437_v16 = vld [vmem:[#allocation5 + $0x5d8] sm:$0xff] }
 0x277   : > { %v4419_v18 = vpack.c.bf16 %v1437_v16, %v1435_v15  ;;  %v1555_v16 = vld [vmem:[#allocation7] sm:$0xff] }
 0x279   : > { %4382 = vmatpush1.bf16.msra.mxu1 %v4381_v21  ;;  %v1439_v21 = vld [vmem:[#allocation5 + $0x5e8] sm:$0xff] }
 0x27a   : > { %4384 = vmatprep.subr.bf16.mxu1 %v4383_v22  ;;  %v1441_v22 = vld [vmem:[#allocation5 + $0x5f8] sm:$0xff] }
 0x27b   : > { %v4423_v24 = vpack.c.bf16 %v1441_v22, %v1439_v21  ;;  %v1562_v21 = vld [vmem:[#allocation7 + $0x38] sm:$0xff] }
 0x27d   : > { %4386 = vmatpush1.bf16.msra.mxu1 %v4385_v27  ;;  %v1373_v27 = vld [vmem:[#allocation2] sm:$0xfc] }
 0x27e   : > { %4388 = vmatprep.subr.bf16.mxu1 %v4387_v28  ;;  %v1375_v28 = vld [vmem:[#allocation2 + $0x10] sm:$0x3]  ;;  %v1446_v30 = vrot.slane %v1373_v27, 2 }
 0x27f   : > { %v1447_v31 = vrot.slane %v1375_v28, 2 }
 0x281   : > { %4390 = vmatpush1.bf16.msra.mxu1 %v4389_v33  ;;  %v1448_v32 = vsel %vm976_vm1, %v1446_v30, %v1447_v31  ;;  %v1668_v33 = vld [vmem:[#allocation7 + $0x360] sm:$0xff] }
 0x282   : > { %4392 = vmatprep.subr.bf16.mxu1 %v4391_v35  ;;  %v1670_v35 = vld [vmem:[#allocation7 + $0x370] sm:$0xff]  ;;  %v1559_v31 = vld [vmem:[#allocation7 + $0x20] sm:$0xff] }
 0x283   : > { %v4473_v37 = vpack.c.bf16 %v1670_v35, %v1668_v33 }
 0x285   : > { %4394 = vmatpush1.bf16.msra.mxu1 %v4393_v41  ;;  %4474 = vmatpush1.bf16.msra.mxu0 %v4473_v37  ;;  %v1672_v41 = vld [vmem:[#allocation7 + $0x380] sm:$0xff]  ;;  %v1564_v37 = vld [vmem:[#allocation7 + $0x48] sm:$0xff] }
 0x286   : > { %4396 = vmatprep.subr.bf16.mxu1 %v4395_v42  ;;  %v1674_v42 = vld [vmem:[#allocation7 + $0x390] sm:$0xff]  ;;  %4476 = vmatprep.subr.bf16.mxu0 %v4475_v40 }
 0x287   : > { %v4477_v47 = vpack.c.bf16 %v1674_v42, %v1672_v41  ;;  %v1565_v40 = vld [vmem:[#allocation7 + $0x50] sm:$0xff]  ;;  %v2096_v41 = vld [vmem:[#allocation8 + $0x208] sm:$0xff]  ;;  %v2098_v42 = vld [vmem:[#allocation8 + $0x218] sm:$0xff] }
 0x288   : > { %v4619_v49 = vpack.c.bf16 %v2098_v42, %v2096_v41  ;;  %v2117_v41 = vld [vmem:[#allocation8 + $0x2b0] sm:$0xff] }
 0x289   : > { %4398 = vmatpush1.bf16.msra.mxu1 %v4397_v51  ;;  %4478 = vmatpush1.bf16.msra.mxu0 %v4477_v47  ;;  %v1676_v51 = vld [vmem:[#allocation7 + $0x3a0] sm:$0xff] }
 0x28a   : > { %4400 = vmatprep.subr.bf16.mxu1 %v4399_v52  ;;  %v1678_v52 = vld [vmem:[#allocation7 + $0x3b0] sm:$0xff]  ;;  %4480 = vmatprep.subr.bf16.mxu0 %v4479_v50  ;;  %v2095_v47 = vld [vmem:[#allocation8 + $0x200] sm:$0xff] }
 0x28b   : > { %v4481_v54 = vpack.c.bf16 %v1678_v52, %v1676_v51  ;;  %v2097_v50 = vld [vmem:[#allocation8 + $0x210] sm:$0xff]  ;;  %v2100_v51 = vld [vmem:[#allocation8 + $0x228] sm:$0xff]  ;;  %v2102_v52 = vld [vmem:[#allocation8 + $0x238] sm:$0xff] }
 0x28d   : > { %4402 = vmatpush1.bf16.msra.mxu1 %v4401_v57  ;;  %v1682_v57 = vld [vmem:[#allocation7 + $0x3d0] sm:$0xff]  ;;  %4482 = vmatpush1.bf16.msra.mxu0 %v4481_v54  ;;  %v4621_v54 = vpack.c.bf16 %v2097_v50, %v2095_v47  ;;  %v1584_v50 = vld [vmem:[#allocation7 + $0xe8] sm:$0xff] }
 0x28e   : > { %4404 = vmatprep.subr.bf16.mxu1 %v4403_v58  ;;  %v4483_v58 = vpack.c.bf16 %v1683_v55, %v1681_v53  ;;  %v4485_v61 = vpack.c.bf16 %v1682_v57, %v1680_v56  ;;  %v4499_v53 = vpack.c.bf16 %v1566_v38, %v1564_v37  ;;  %v4623_v55 = vpack.c.bf16 %v2102_v52, %v2100_v51  ;;  %v2099_v56 = vld [vmem:[#allocation8 + $0x220] sm:$0xff]  ;;  %v2101_v57 = vld [vmem:[#allocation8 + $0x230] sm:$0xff]  ;;  %v1586_v51 = vld [vmem:[#allocation7 + $0xf8] sm:$0xff] }
 0x28f   : > { %v1579_v38 = vld [vmem:[#allocation7 + $0xc0] sm:$0xff]  ;;  %v1581_v47 = vld [vmem:[#allocation7 + $0xd0] sm:$0xff] }
 0x290   : > { %4484 = vmatprep.subr.bf16.mxu0 %v4483_v58  ;;  %v2104_v58 = vld [vmem:[#allocation8 + $0x248] sm:$0xff] }
 0x291   : > { %4406 = vmatpush1.bf16.msra.mxu1 %v4405_v63  ;;  %v1684_v63 = vld [vmem:[#allocation7 + $0x3e0] sm:$0xff]  ;;  %4486 = vmatpush1.bf16.msra.mxu0 %v4485_v61  ;;  %v2106_v61 = vld [vmem:[#allocation8 + $0x258] sm:$0xff] }
 0x292   : > { %4408 = vmatprep.subr.bf16.mxu1 %v4407_v0  ;;  %v1686_v0 = vld [vmem:[#allocation7 + $0x3f0] sm:$0xff]  ;;  %4488 = vmatprep.subr.bf16.mxu0 %v4487_v62  ;;  %v4625_v62 = vpack.c.bf16 %v2101_v57, %v2099_v56  ;;  %v2119_v56 = vld [vmem:[#allocation8 + $0x2c0] sm:$0xff] }
 0x293   : > { %v4489_v1 = vpack.c.bf16 %v1686_v0, %v1684_v63  ;;  %v4501_v63 = vpack.c.bf16 %v1565_v40, %v1563_v39  ;;  %v1567_v0 = vld [vmem:[#allocation7 + $0x60] sm:$0xff]  ;;  %v2121_v57 = vld [vmem:[#allocation8 + $0x2d0] sm:$0xff] }
 0x294   : > { %v2115_v40 = vld [vmem:[#allocation8 + $0x2a0] sm:$0xff] }
 0x295   : > { %4410 = vmatpush1.bf16.msra.mxu1 %v4409_v5  ;;  %4490 = vmatpush1.bf16.msra.mxu0 %v4489_v1  ;;  %v1527_v5 = vld [vmem:[%s6142_s4] sm:$0x3]  ;;  %v4627_v1 = vpack.c.bf16 %v2106_v61, %v2104_v58  ;;  %v4641_v52 = vpack.c.bf16 %v2117_v41, %v2115_v40  ;;  %v4519_v58 = vpack.c.bf16 %v1586_v51, %v1584_v50  ;;  %v2126_v61 = vld [vmem:[#allocation8 + $0x2f8] sm:$0xff]  ;;  %v1604_v50 = vld [vmem:[#allocation7 + $0x188] sm:$0xff] }
 0x296   : > { %4412 = vmatprep.subr.bf16.mxu1 %v4411_v6  ;;  %4492 = vmatprep.subr.bf16.mxu0 %v4491_v4  ;;  %v1532_v6 = vrot.slane %v1527_v5, %v6039_v34  ;;  %v1536_v7 = vrot.slane %v1527_v5, %v6044_v36  ;;  %v4503_v4 = vpack.c.bf16 %v1570_v60, %v1568_v59  ;;  %v1569_v5 = vld [vmem:[#allocation7 + $0x70] sm:$0xff]  ;;  %v2124_v60 = vld [vmem:[#allocation8 + $0x2e8] sm:$0xff]  ;;  %v2135_v41 = vld [vmem:[#allocation8 + $0x340] sm:$0xff] }
 0x297   : > { %v1585_v59 = vld [vmem:[#allocation7 + $0xf0] sm:$0xff]  ;;  %v1606_v51 = vld [vmem:[#allocation7 + $0x198] sm:$0xff] }
 0x299   : > { %4414 = vmatpush1.bf16.msra.mxu1 %v4413_v11 }
 0x29a   : > { %4416 = vmatprep.subr.bf16.mxu1 %v4415_v12 }
 0x29d   : > { %4418 = vmatpush1.bf16.msra.mxu1 %v4417_v17  ;;  %v1557_v17 = vld [vmem:[#allocation7 + $0x10] sm:$0xff] }
 0x29e   : > { %4420 = vmatprep.subr.bf16.mxu1 %v4419_v18  ;;  %v1560_v18 = vld [vmem:[#allocation7 + $0x28] sm:$0xff]  ;;  %v4493_v28 = vpack.c.bf16 %v1557_v17, %v1555_v16  ;;  %v1573_v17 = vld [vmem:[#allocation7 + $0x90] sm:$0xff] }
 0x29f   : > { %v4495_v30 = vpack.c.bf16 %v1562_v21, %v1560_v18  ;;  %v2112_v18 = vld [vmem:[#allocation8 + $0x288] sm:$0xff]  ;;  %v1578_v21 = vld [vmem:[#allocation7 + $0xb8] sm:$0xff] }
 0x2a1   : > { %4422 = vmatpush1.bf16.msra.mxu1 %v4421_v23 }
 0x2a2   : > { %4424 = vmatprep.subr.bf16.mxu1 %v4423_v24 }
 0x2a5   : > { %4426 = vmatpush1.bf16.msra.mxu1 %v4425_v29 }
 0x2a6   : > { %4620 = vmatprep.subr.bf16.mxu1 %v4619_v49  ;;  %v2122_v49 = vld [vmem:[#allocation8 + $0x2d8] sm:$0xff] }
 0x2a8   : > { %1519 = vmatmul.mubr.f32.vlgmr.msra.gmra.mrb[2].mxu1 %v1448_v32  ;;  %v1561_v32 = vld [vmem:[#allocation7 + $0x30] sm:$0xff] }
 0x2a9   : > { %v4497_v48 = vpack.c.bf16 %v1561_v32, %v1559_v31  ;;  %4622 = vmatpush1.bf16.msra.mxu1 %v4621_v54  ;;  %v2118_v31 = vld [vmem:[#allocation8 + $0x2b8] sm:$0xff]  ;;  %v1580_v32 = vld [vmem:[#allocation7 + $0xc8] sm:$0xff]  ;;  %v1583_v54 = vld [vmem:[#allocation7 + $0xe0] sm:$0xff] }
 0x2aa   : > { %4624 = vmatprep.subr.bf16.mxu1 %v4623_v55 }
 0x2ad   : > { %4626 = vmatpush1.bf16.msra.mxu1 %v4625_v62  ;;  %v1588_v62 = vld [vmem:[#allocation7 + $0x108] sm:$0xff] }
 0x2ae   : > { %4628 = vmatprep.subr.bf16.mxu1 %v4627_v1  ;;  %v4521_v1 = vpack.c.bf16 %v1585_v59, %v1583_v54  ;;  %v4539_v54 = vpack.c.bf16 %v1606_v51, %v1604_v50  ;;  %v1863_v51 = vld [vmem:[#allocation7 + $0x480] sm:$0xff] }
 0x37b   : > { %v1520_v8 = vpop.f32.mrb[2].mxu1 }
 0x37c   : > { %v1539_v9 = vadd.f32 %v1532_v6, %v1520_v8  ;;  %v1522_v10 = vpop.f32.mrb[3].mxu1  ;;  %v2108_v6 = vld [vmem:[#allocation8 + $0x268] sm:$0xff] }
 0x37d   : > { %v1540_v11 = vadd.f32 %v1536_v7, %v1522_v10  ;;  %v2110_v7 = vld [vmem:[#allocation8 + $0x278] sm:$0xff]  ;;  %v1572_v8 = vld [vmem:[#allocation7 + $0x88] sm:$0xff]  ;;  %v4629_v10 = vpack.c.bf16 %v2105_v3, %v2103_v2  ;;  %v1587_v2 = vld [vmem:[#allocation7 + $0x100] sm:$0xff]  ;;  %v4647_v3 = vpack.c.bf16 %v2126_v61, %v2124_v60 }
 0x37e   : > { %v1541_v12 = vmax.f32 %v1539_v9, 0.0  ;;  %v1574_v9 = vld [vmem:[#allocation7 + $0x98] sm:$0xff]  ;;  %v1607_v61 = vld [vmem:[#allocation7 + $0x1a0] sm:$0xff] }
 0x37f   : > { %v1542_v13 = vmax.f32 %v1540_v11, 0.0  ;;  %v4505_v11 = vpack.c.bf16 %v1569_v5, %v1567_v0  ;;  %v4507_v16 = vpack.c.bf16 %v1574_v9, %v1572_v8  ;;  %4630 = vmatpush1.bf16.msra.mxu1 %v4629_v10  ;;  %v4645_v0 = vpack.c.bf16 %v2121_v57, %v2119_v56  ;;  %v2125_v5 = vld [vmem:[#allocation8 + $0x2f0] sm:$0xff]  ;;  %v2128_v8 = vld [vmem:[#allocation8 + $0x308] sm:$0xff]  ;;  %v2130_v9 = vld [vmem:[#allocation8 + $0x318] sm:$0xff] }
 0x380   : > { %v1545_v14 = vrot.slane %v1541_v12, 7  ;;  %v1571_v12 = vld [vmem:[#allocation7 + $0x80] sm:$0xff]  ;;  %v1592_v10 = vld [vmem:[#allocation7 + $0x128] sm:$0xff]  ;;  %v1605_v56 = vld [vmem:[#allocation7 + $0x190] sm:$0xff] }
 0x381   : > { %v1546_v15 = vrot.slane %v1542_v13, 7  ;;  %v4631_v13 = vpack.c.bf16 %v2110_v7, %v2108_v6  ;;  %v1589_v7 = vld [vmem:[#allocation7 + $0x110] sm:$0xff]  ;;  %v1608_v57 = vld [vmem:[#allocation7 + $0x1a8] sm:$0xff] }
 0x382   : > { %1549 = vst [vmem:[#allocation2] sm:$0xfe] %v1545_v14  ;;  %1551 = vst [vmem:[#allocation2 + $0x10] sm:$0x1] %v1545_v14  ;;  %v2107_v14 = vld [vmem:[#allocation8 + $0x260] sm:$0xff] }
 0x383   : > { %1550 = vst [vmem:[#allocation2 + $0x8] sm:$0xfe] %v1546_v15  ;;  %1552 = vst [vmem:[#allocation2 + $0x18] sm:$0x1] %v1546_v15  ;;  %v2109_v15 = vld [vmem:[#allocation8 + $0x270] sm:$0xff]  ;;  %4632 = vmatprep.subr.bf16.mxu1 %v4631_v13  ;;  %v4525_v13 = vpack.c.bf16 %v1589_v7, %v1587_v2 }
 0x389   : > { %v1619_v19 = vld [vmem:[#allocation2] sm:$0xfe]  ;;  %v1621_v20 = vld [vmem:[#allocation2 + $0x10] sm:$0x1] }
 0x38a   : > { %v1620_v22 = vld [vmem:[#allocation2 + $0x8] sm:$0xfe]  ;;  %v1622_v23 = vld [vmem:[#allocation2 + $0x18] sm:$0x1]  ;;  %v1692_v24 = vrot.slane %v1619_v19, 1  ;;  %v1693_v25 = vrot.slane %v1621_v20, 1 }
 0x38b   : > { %v1695_v26 = vrot.slane %v1620_v22, 1  ;;  %v1696_v27 = vrot.slane %v1622_v23, 1  ;;  %v1554_v35 = vld [vmem:[#allocation2 + $0x8] sm:$0xff]  ;;  %v2114_v19 = vld [vmem:[#allocation8 + $0x298] sm:$0xff]  ;;  %v4633_v22 = vpack.c.bf16 %v2109_v15, %v2107_v14  ;;  %v4509_v23 = vpack.c.bf16 %v1573_v17, %v1571_v12  ;;  %v1591_v14 = vld [vmem:[#allocation7 + $0x120] sm:$0xff] }
 0x38c   : > { %v1694_v33 = vsel %vm752_vm0, %v1692_v24, %v1693_v25  ;;  %v1576_v20 = vld [vmem:[#allocation7 + $0xa8] sm:$0xff]  ;;  %v1575_v24 = vld [vmem:[#allocation7 + $0xa0] sm:$0xff]  ;;  %v4635_v25 = vpack.c.bf16 %v2114_v19, %v2112_v18  ;;  %v4651_v15 = vpack.c.bf16 %v2130_v9, %v2128_v8  ;;  %v2129_v17 = vld [vmem:[#allocation8 + $0x310] sm:$0xff] }
 0x38d   : > { %v1697_v29 = vsel %vm752_vm0, %v1695_v26, %v1696_v27  ;;  %v2111_v26 = vld [vmem:[#allocation8 + $0x280] sm:$0xff]  ;;  %v2113_v27 = vld [vmem:[#allocation8 + $0x290] sm:$0xff]  ;;  %4634 = vmatpush1.bf16.msra.mxu1 %v4633_v22  ;;  %v1596_v22 = vld [vmem:[#allocation7 + $0x148] sm:$0xff] }
 0x38e   : > { %1764 = vmatprep.mubr.f32.mxu0 %v1697_v29  ;;  %v1577_v29 = vld [vmem:[#allocation7 + $0xb0] sm:$0xff]  ;;  %4636 = vmatprep.subr.bf16.mxu1 %v4635_v25  ;;  %v1615_v9 = vld [vmem:[#allocation7 + $0x1e0] sm:$0xff] }
 0x38f   : > { %1765 = vmatmul.mubr.f32.vlgmr.msra.gmra.mrb[2].mxu0 %v1694_v33  ;;  %v1582_v33 = vld [vmem:[#allocation7 + $0xd8] sm:$0xff]  ;;  %v4513_v37 = vpack.c.bf16 %v1577_v29, %v1575_v24  ;;  %v1593_v19 = vld [vmem:[#allocation7 + $0x130] sm:$0xff] }
 0x390   : > { %4494 = vmatpush1.bf16.msra.mxu0 %v4493_v28  ;;  %1835 = vmatprep.mubr.f32.mxu0 %v1554_v35  ;;  %v4511_v28 = vpack.c.bf16 %v1578_v21, %v1576_v20  ;;  %v4637_v35 = vpack.c.bf16 %v2113_v27, %v2111_v26  ;;  %v4515_v42 = vpack.c.bf16 %v1582_v33, %v1580_v32  ;;  %v2132_v20 = vld [vmem:[#allocation8 + $0x328] sm:$0xff]  ;;  %v2134_v21 = vld [vmem:[#allocation8 + $0x338] sm:$0xff]  ;;  %v1595_v26 = vld [vmem:[#allocation7 + $0x140] sm:$0xff] }
 0x391   : > { %4496 = vmatprep.subr.bf16.mxu0 %v4495_v30  ;;  %v2116_v30 = vld [vmem:[#allocation8 + $0x2a8] sm:$0xff]  ;;  %v4529_v25 = vpack.c.bf16 %v1593_v19, %v1591_v14  ;;  %v4655_v27 = vpack.c.bf16 %v2134_v21, %v2132_v20  ;;  %v2133_v29 = vld [vmem:[#allocation8 + $0x330] sm:$0xff]  ;;  %v2138_v33 = vld [vmem:[#allocation8 + $0x358] sm:$0xff] }
 0x392   : > { %v4639_v39 = vpack.c.bf16 %v2118_v31, %v2116_v30  ;;  %4638 = vmatpush1.bf16.msra.mxu1 %v4637_v35  ;;  %v1597_v31 = vld [vmem:[#allocation7 + $0x150] sm:$0xff]  ;;  %v2136_v32 = vld [vmem:[#allocation8 + $0x348] sm:$0xff]  ;;  %v1854_v20 = vld [vmem:[#allocation7 + $0x438] sm:$0xff] }
 0x393   : > { %v1600_v35 = vld [vmem:[#allocation7 + $0x168] sm:$0xff]  ;;  %v4659_v40 = vpack.c.bf16 %v2138_v33, %v2136_v32  ;;  %v1855_v33 = vld [vmem:[#allocation7 + $0x440] sm:$0xff] }
 0x394   : > { %4498 = vmatpush1.bf16.msra.mxu0 %v4497_v48  ;;  %v2120_v48 = vld [vmem:[#allocation8 + $0x2c8] sm:$0xff]  ;;  %4640 = vmatprep.subr.bf16.mxu1 %v4639_v39  ;;  %v4533_v39 = vpack.c.bf16 %v1597_v31, %v1595_v26  ;;  %v1853_v26 = vld [vmem:[#allocation7 + $0x430] sm:$0xff] }
 0x395   : > { %4500 = vmatprep.subr.bf16.mxu0 %v4499_v53  ;;  %v4517_v53 = vpack.c.bf16 %v1581_v47, %v1579_v38  ;;  %v4643_v55 = vpack.c.bf16 %v2122_v49, %v2120_v48  ;;  %v1599_v48 = vld [vmem:[#allocation7 + $0x160] sm:$0xff]  ;;  %v1601_v49 = vld [vmem:[#allocation7 + $0x170] sm:$0xff]  ;;  %v1843_v14 = vld [vmem:[#allocation2 + $0x8] sm:$0xfc] }
 0x396   : > { %4642 = vmatpush1.bf16.msra.mxu1 %v4641_v52  ;;  %v1852_v19 = vld [vmem:[#allocation7 + $0x428] sm:$0xff]  ;;  %v1918_v21 = vrot.slane %v1843_v14, 2  ;;  %v1886_v14 = vld [vmem:[#allocation7 + $0x538] sm:$0xff] }
 0x397   : > { %4644 = vmatprep.subr.bf16.mxu1 %v4643_v55  ;;  %v1603_v55 = vld [vmem:[#allocation7 + $0x180] sm:$0xff] }
 0x398   : > { %4502 = vmatpush1.bf16.msra.mxu0 %v4501_v63  ;;  %v1590_v63 = vld [vmem:[#allocation7 + $0x118] sm:$0xff]  ;;  %v4541_v59 = vpack.c.bf16 %v1605_v56, %v1603_v55 }
 0x399   : > { %4504 = vmatprep.subr.bf16.mxu0 %v4503_v4  ;;  %v2123_v4 = vld [vmem:[#allocation8 + $0x2e0] sm:$0xff]  ;;  %v4523_v6 = vpack.c.bf16 %v1590_v63, %v1588_v62  ;;  %v1609_v62 = vld [vmem:[#allocation7 + $0x1b0] sm:$0xff]  ;;  %v1612_v63 = vld [vmem:[#allocation7 + $0x1c8] sm:$0xff] }
 0x39a   : > { %4646 = vmatpush1.bf16.msra.mxu1 %v4645_v0  ;;  %v4649_v12 = vpack.c.bf16 %v2125_v5, %v2123_v4  ;;  %v1614_v0 = vld [vmem:[#allocation7 + $0x1d8] sm:$0xff]  ;;  %v1613_v4 = vld [vmem:[#allocation7 + $0x1d0] sm:$0xff]  ;;  %v1616_v5 = vld [vmem:[#allocation7 + $0x1e8] sm:$0xff] }
 0x39b   : > { %4648 = vmatprep.subr.bf16.mxu1 %v4647_v3  ;;  %v4547_v2 = vpack.c.bf16 %v1614_v0, %v1612_v63  ;;  %v1611_v3 = vld [vmem:[#allocation7 + $0x1c0] sm:$0xff]  ;;  %v1873_v0 = vld [vmem:[#allocation7 + $0x4d0] sm:$0xff] }
 0x39c   : > { %4506 = vmatpush1.bf16.msra.mxu0 %v4505_v11  ;;  %v1594_v11 = vld [vmem:[#allocation7 + $0x138] sm:$0xff]  ;;  %v4549_v7 = vpack.c.bf16 %v1613_v4, %v1611_v3  ;;  %v1871_v63 = vld [vmem:[#allocation7 + $0x4c0] sm:$0xff] }
 0x39d   : > { %4508 = vmatprep.subr.bf16.mxu0 %v4507_v16  ;;  %v2127_v16 = vld [vmem:[#allocation8 + $0x300] sm:$0xff]  ;;  %v4527_v18 = vpack.c.bf16 %v1594_v11, %v1592_v10  ;;  %v1617_v10 = vld [vmem:[#allocation7 + $0x1f0] sm:$0xff]  ;;  %v1848_v11 = vld [vmem:[#allocation7 + $0x408] sm:$0xff]  ;;  %v4581_v3 = vpack.c.bf16 %v1873_v0, %v1871_v63 }
 0x39e   : > { %4650 = vmatpush1.bf16.msra.mxu1 %v4649_v12  ;;  %v4653_v24 = vpack.c.bf16 %v2129_v17, %v2127_v16  ;;  %v1850_v12 = vld [vmem:[#allocation7 + $0x418] sm:$0xff]  ;;  %v1847_v17 = vld [vmem:[#allocation7 + $0x400] sm:$0xff] }
 0x39f   : > { %4652 = vmatprep.subr.bf16.mxu1 %v4651_v15  ;;  %v1845_v15 = vld [vmem:[#allocation2 + $0x18] sm:$0x3]  ;;  %v4555_v16 = vpack.c.bf16 %v1850_v12, %v1848_v11  ;;  %v1879_v11 = vld [vmem:[#allocation7 + $0x500] sm:$0xff]  ;;  %v1881_v12 = vld [vmem:[#allocation7 + $0x510] sm:$0xff] }
 0x3a0   : > { %4510 = vmatpush1.bf16.msra.mxu0 %v4509_v23  ;;  %v1598_v23 = vld [vmem:[#allocation7 + $0x158] sm:$0xff] }
 0x3a1   : > { %4512 = vmatprep.subr.bf16.mxu0 %v4511_v28  ;;  %v2131_v28 = vld [vmem:[#allocation8 + $0x320] sm:$0xff]  ;;  %v4531_v30 = vpack.c.bf16 %v1598_v23, %v1596_v22  ;;  %v1919_v22 = vrot.slane %v1845_v15, 2  ;;  %v4589_v15 = vpack.c.bf16 %v1881_v12, %v1879_v11 }
 0x3a2   : > { %4654 = vmatpush1.bf16.msra.mxu1 %v4653_v24  ;;  %v4657_v38 = vpack.c.bf16 %v2133_v29, %v2131_v28  ;;  %v4559_v24 = vpack.c.bf16 %v1854_v20, %v1852_v19  ;;  %v1856_v28 = vld [vmem:[#allocation7 + $0x448] sm:$0xff]  ;;  %v1858_v29 = vld [vmem:[#allocation7 + $0x458] sm:$0xff]  ;;  %v2143_v12 = vld [vmem:[#allocation8 + $0x380] sm:$0xff] }
 0x3a3   : > { %4656 = vmatprep.subr.bf16.mxu1 %v4655_v27  ;;  %v1553_v27 = vld [vmem:[#allocation2] sm:$0xff]  ;;  %v4563_v32 = vpack.c.bf16 %v1858_v29, %v1856_v28  ;;  %v1888_v19 = vld [vmem:[#allocation7 + $0x548] sm:$0xff]  ;;  %v1890_v20 = vld [vmem:[#allocation7 + $0x558] sm:$0xff] }
 0x3a4   : > { %4514 = vmatpush1.bf16.msra.mxu0 %v4513_v37  ;;  %v1602_v37 = vld [vmem:[#allocation7 + $0x178] sm:$0xff]  ;;  %v1891_v29 = vld [vmem:[#allocation7 + $0x560] sm:$0xff] }
 0x3a5   : > { %4516 = vmatprep.subr.bf16.mxu0 %v4515_v42  ;;  %v2137_v42 = vld [vmem:[#allocation8 + $0x350] sm:$0xff]  ;;  %v4535_v47 = vpack.c.bf16 %v1602_v37, %v1600_v35  ;;  %v1860_v37 = vld [vmem:[#allocation7 + $0x468] sm:$0xff] }
 0x3a6   : > { %4658 = vmatpush1.bf16.msra.mxu1 %v4657_v38  ;;  %v4661_v52 = vpack.c.bf16 %v2137_v42, %v2135_v41  ;;  %v1857_v35 = vld [vmem:[#allocation7 + $0x450] sm:$0xff]  ;;  %v1862_v38 = vld [vmem:[#allocation7 + $0x478] sm:$0xff]  ;;  %v1859_v41 = vld [vmem:[#allocation7 + $0x460] sm:$0xff] }
 0x3a7   : > { %4660 = vmatprep.subr.bf16.mxu1 %v4659_v40  ;;  %v4567_v40 = vpack.c.bf16 %v1862_v38, %v1860_v37  ;;  %v1861_v42 = vld [vmem:[#allocation7 + $0x470] sm:$0xff]  ;;  %v1895_v37 = vld [vmem:[#allocation7 + $0x580] sm:$0xff] }
 0x3a8   : > { %4518 = vmatpush1.bf16.msra.mxu0 %v4517_v53  ;;  %v4537_v53 = vpack.c.bf16 %v1601_v49, %v1599_v48  ;;  %v1866_v48 = vld [vmem:[#allocation7 + $0x498] sm:$0xff]  ;;  %v4569_v49 = vpack.c.bf16 %v1861_v42, %v1859_v41  ;;  %v1897_v38 = vld [vmem:[#allocation7 + $0x590] sm:$0xff] }
 0x3a9   : > { %4520 = vmatprep.subr.bf16.mxu0 %v4519_v58  ;;  %v1610_v58 = vld [vmem:[#allocation7 + $0x1b8] sm:$0xff]  ;;  %v4605_v41 = vpack.c.bf16 %v1897_v38, %v1895_v37  ;;  %v1996_v38 = vld [vmem:[%s6144_s6] sm:$0x3] }
 0x3aa   : > { %4662 = vmatpush1.bf16.msra.mxu1 %v4661_v52  ;;  %v4543_v60 = vpack.c.bf16 %v1610_v58, %v1608_v57  ;;  %v1865_v52 = vld [vmem:[#allocation7 + $0x490] sm:$0xff]  ;;  %v1867_v57 = vld [vmem:[#allocation7 + $0x4a0] sm:$0xff] }
 0x3ab   : > { %v4573_v55 = vpack.c.bf16 %v1865_v52, %v1863_v51  ;;  %v1869_v58 = vld [vmem:[#allocation7 + $0x4b0] sm:$0xff] }
 0x3ac   : > { %4522 = vmatpush1.bf16.msra.mxu0 %v4521_v1  ;;  %v4545_v1 = vpack.c.bf16 %v1609_v62, %v1607_v61  ;;  %v4577_v61 = vpack.c.bf16 %v1869_v58, %v1867_v57 }
 0x3ad   : > { %4524 = vmatprep.subr.bf16.mxu0 %v4523_v6  ;;  %v1618_v6 = vld [vmem:[#allocation7 + $0x1f8] sm:$0xff] }
 0x3ae   : > { %v4551_v8 = vpack.c.bf16 %v1618_v6, %v1616_v5  ;;  %v1875_v5 = vld [vmem:[#allocation7 + $0x4e0] sm:$0xff]  ;;  %v1877_v6 = vld [vmem:[#allocation7 + $0x4f0] sm:$0xff] }
 0x3b0   : > { %4526 = vmatpush1.bf16.msra.mxu0 %v4525_v13  ;;  %v4553_v13 = vpack.c.bf16 %v1617_v10, %v1615_v9  ;;  %v4585_v9 = vpack.c.bf16 %v1877_v6, %v1875_v5  ;;  %v2139_v6 = vld [vmem:[#allocation8 + $0x360] sm:$0xff] }
 0x3b1   : > { %4528 = vmatprep.subr.bf16.mxu0 %v4527_v18  ;;  %v1849_v18 = vld [vmem:[#allocation7 + $0x410] sm:$0xff] }
 0x3b2   : > { %v4557_v23 = vpack.c.bf16 %v1849_v18, %v1847_v17  ;;  %v1883_v17 = vld [vmem:[#allocation7 + $0x520] sm:$0xff]  ;;  %v1885_v18 = vld [vmem:[#allocation7 + $0x530] sm:$0xff] }
 0x3b4   : > { %4530 = vmatpush1.bf16.msra.mxu0 %v4529_v25  ;;  %v1851_v25 = vld [vmem:[#allocation7 + $0x420] sm:$0xff] }
 0x3b5   : > { %4532 = vmatprep.subr.bf16.mxu0 %v4531_v30  ;;  %v1920_v30 = vsel %vm976_vm1, %v1918_v21, %v1919_v22  ;;  %v4561_v31 = vpack.c.bf16 %v1853_v26, %v1851_v25  ;;  %v4593_v21 = vpack.c.bf16 %v1885_v18, %v1883_v17  ;;  %v4595_v22 = vpack.c.bf16 %v1890_v20, %v1888_v19  ;;  %v1892_v25 = vld [vmem:[#allocation7 + $0x568] sm:$0xff]  ;;  %v1894_v26 = vld [vmem:[#allocation7 + $0x578] sm:$0xff]  ;;  %v2147_v18 = vld [vmem:[#allocation8 + $0x3a0] sm:$0xff] }
 0x3b6   : > { %v4599_v28 = vpack.c.bf16 %v1894_v26, %v1892_v25  ;;  %v2149_v19 = vld [vmem:[#allocation8 + $0x3b0] sm:$0xff]  ;;  %v2152_v20 = vld [vmem:[#allocation8 + $0x3c8] sm:$0xff] }
 0x3b7   : > { %v2156_v26 = vld [vmem:[#allocation8 + $0x3e8] sm:$0xff] }
 0x3b8   : > { %4534 = vmatpush1.bf16.msra.mxu0 %v4533_v39  ;;  %v4565_v39 = vpack.c.bf16 %v1857_v35, %v1855_v33 }
 0x3b9   : > { %4536 = vmatprep.subr.bf16.mxu0 %v4535_v47  ;;  %v1864_v47 = vld [vmem:[#allocation7 + $0x488] sm:$0xff] }
 0x3ba   : > { %v4571_v50 = vpack.c.bf16 %v1866_v48, %v1864_v47  ;;  %v1899_v47 = vld [vmem:[#allocation7 + $0x5a0] sm:$0xff]  ;;  %v1901_v48 = vld [vmem:[#allocation7 + $0x5b0] sm:$0xff] }
 0x3bb   : > { %v4609_v51 = vpack.c.bf16 %v1901_v48, %v1899_v47 }
 0x3bc   : > { %4538 = vmatpush1.bf16.msra.mxu0 %v4537_v53  ;;  %v1868_v53 = vld [vmem:[#allocation7 + $0x4a8] sm:$0xff] }
 0x3bd   : > { %4540 = vmatprep.subr.bf16.mxu0 %v4539_v54  ;;  %v1870_v54 = vld [vmem:[#allocation7 + $0x4b8] sm:$0xff] }
 0x3be   : > { %v4575_v56 = vpack.c.bf16 %v1870_v54, %v1868_v53  ;;  %v1903_v53 = vld [vmem:[#allocation7 + $0x5c0] sm:$0xff]  ;;  %v1905_v54 = vld [vmem:[#allocation7 + $0x5d0] sm:$0xff] }
 0x3bf   : > { %v4613_v57 = vpack.c.bf16 %v1905_v54, %v1903_v53 }
 0x3c0   : > { %4542 = vmatpush1.bf16.msra.mxu0 %v4541_v59  ;;  %v1872_v59 = vld [vmem:[#allocation7 + $0x4c8] sm:$0xff] }
 0x3c1   : > { %4544 = vmatprep.subr.bf16.mxu0 %v4543_v60  ;;  %v1874_v60 = vld [vmem:[#allocation7 + $0x4d8] sm:$0xff] }
 0x3c2   : > { %v4579_v62 = vpack.c.bf16 %v1874_v60, %v1872_v59  ;;  %v1907_v59 = vld [vmem:[#allocation7 + $0x5e0] sm:$0xff]  ;;  %v1909_v60 = vld [vmem:[#allocation7 + $0x5f0] sm:$0xff] }
 0x3c3   : > { %v4617_v63 = vpack.c.bf16 %v1909_v60, %v1907_v59  ;;  %v2033_v60 = vld [vmem:[#allocation8 + $0x38] sm:$0xff] }
 0x3c4   : > { %4546 = vmatpush1.bf16.msra.mxu0 %v4545_v1  ;;  %v1876_v1 = vld [vmem:[#allocation7 + $0x4e8] sm:$0xff] }
 0x3c5   : > { %4548 = vmatprep.subr.bf16.mxu0 %v4547_v2  ;;  %v1878_v2 = vld [vmem:[#allocation7 + $0x4f8] sm:$0xff] }
 0x3c6   : > { %v4583_v4 = vpack.c.bf16 %v1878_v2, %v1876_v1 }
 0x3c8   : > { %4550 = vmatpush1.bf16.msra.mxu0 %v4549_v7  ;;  %v1880_v7 = vld [vmem:[#allocation7 + $0x508] sm:$0xff] }
 0x3c9   : > { %4552 = vmatprep.subr.bf16.mxu0 %v4551_v8  ;;  %v1882_v8 = vld [vmem:[#allocation7 + $0x518] sm:$0xff] }
 0x3ca   : > { %v4587_v10 = vpack.c.bf16 %v1882_v8, %v1880_v7  ;;  %v2141_v7 = vld [vmem:[#allocation8 + $0x370] sm:$0xff] }
 0x3cb   : > { %v4665_v8 = vpack.c.bf16 %v2141_v7, %v2139_v6  ;;  %v2035_v6 = vld [vmem:[#allocation8 + $0x48] sm:$0xff]  ;;  %v2037_v7 = vld [vmem:[#allocation8 + $0x58] sm:$0xff] }
 0x3cc   : > { %4554 = vmatpush1.bf16.msra.mxu0 %v4553_v13  ;;  %v1884_v13 = vld [vmem:[#allocation7 + $0x528] sm:$0xff] }
 0x3cd   : > { %4556 = vmatprep.subr.bf16.mxu0 %v4555_v16  ;;  %v4591_v16 = vpack.c.bf16 %v1886_v14, %v1884_v13  ;;  %v2145_v13 = vld [vmem:[#allocation8 + $0x390] sm:$0xff] }
 0x3ce   : > { %v4669_v14 = vpack.c.bf16 %v2145_v13, %v2143_v12  ;;  %v2564_v12 = vld [vmem:[#allocation10 + $0x200] sm:$0xff] }
 0x3cf   : > { %1836 = vmatmul.mubr.f32.vlgmr.msra.gmra.mrb[2].mxu0 %v1553_v27 }
 0x3d0   : > { %4558 = vmatpush1.bf16.msra.mxu0 %v4557_v23  ;;  %1987 = vmatprep.mubr.f32.mxu0 %v1920_v30  ;;  %v1887_v23 = vld [vmem:[#allocation7 + $0x540] sm:$0xff]  ;;  %v1893_v30 = vld [vmem:[#allocation7 + $0x570] sm:$0xff] }
 0x3d1   : > { %4560 = vmatprep.subr.bf16.mxu0 %v4559_v24  ;;  %v1889_v24 = vld [vmem:[#allocation7 + $0x550] sm:$0xff]  ;;  %v4601_v33 = vpack.c.bf16 %v1893_v30, %v1891_v29  ;;  %v2155_v30 = vld [vmem:[#allocation8 + $0x3e0] sm:$0xff] }
 0x3d2   : > { %v4597_v27 = vpack.c.bf16 %v1889_v24, %v1887_v23  ;;  %v2151_v23 = vld [vmem:[#allocation8 + $0x3c0] sm:$0xff]  ;;  %v2153_v24 = vld [vmem:[#allocation8 + $0x3d0] sm:$0xff] }
 0x3d4   : > { %4562 = vmatpush1.bf16.msra.mxu0 %v4561_v31  ;;  %v1896_v31 = vld [vmem:[#allocation7 + $0x588] sm:$0xff] }
 0x3d5   : > { %4564 = vmatprep.subr.bf16.mxu0 %v4563_v32  ;;  %v1898_v32 = vld [vmem:[#allocation7 + $0x598] sm:$0xff] }
 0x3d6   : > { %v4603_v35 = vpack.c.bf16 %v1898_v32, %v1896_v31  ;;  %v2157_v31 = vld [vmem:[#allocation8 + $0x3f0] sm:$0xff] }
 0x3d7   : > { %v4681_v32 = vpack.c.bf16 %v2157_v31, %v2155_v30  ;;  %v2572_v31 = vld [vmem:[#allocation10 + $0x240] sm:$0xff] }
 0x3d8   : > { %4566 = vmatpush1.bf16.msra.mxu0 %v4565_v39  ;;  %v1900_v39 = vld [vmem:[#allocation7 + $0x5a8] sm:$0xff] }
 0x3d9   : > { %4568 = vmatprep.subr.bf16.mxu0 %v4567_v40  ;;  %v1902_v40 = vld [vmem:[#allocation7 + $0x5b8] sm:$0xff] }
 0x3da   : > { %v4607_v42 = vpack.c.bf16 %v1902_v40, %v1900_v39  ;;  %v2001_v39 = vrot.slane %v1996_v38, %v6039_v34  ;;  %v2005_v40 = vrot.slane %v1996_v38, %v6044_v36  ;;  %v2579_v38 = vld [vmem:[#allocation10 + $0x278] sm:$0xff] }
 0x3dc   : > { %4570 = vmatpush1.bf16.msra.mxu0 %v4569_v49  ;;  %v1904_v49 = vld [vmem:[#allocation7 + $0x5c8] sm:$0xff] }
 0x3dd   : > { %4572 = vmatprep.subr.bf16.mxu0 %v4571_v50  ;;  %v1906_v50 = vld [vmem:[#allocation7 + $0x5d8] sm:$0xff] }
 0x3de   : > { %v4611_v52 = vpack.c.bf16 %v1906_v50, %v1904_v49 }
 0x3e0   : > { %4574 = vmatpush1.bf16.msra.mxu0 %v4573_v55  ;;  %v1908_v55 = vld [vmem:[#allocation7 + $0x5e8] sm:$0xff] }
 0x3e1   : > { %4576 = vmatprep.subr.bf16.mxu0 %v4575_v56  ;;  %v1910_v56 = vld [vmem:[#allocation7 + $0x5f8] sm:$0xff] }
 0x3e2   : > { %v4615_v58 = vpack.c.bf16 %v1910_v56, %v1908_v55  ;;  %v2026_v55 = vld [vmem:[#allocation8] sm:$0xff]  ;;  %v2028_v56 = vld [vmem:[#allocation8 + $0x10] sm:$0xff] }
 0x3e3   : > { %v4685_v44 = vpack.c.bf16 %v2028_v56, %v2026_v55  ;;  %v2047_v55 = vld [vmem:[#allocation8 + $0xa8] sm:$0xff]  ;;  %v2049_v56 = vld [vmem:[#allocation8 + $0xb8] sm:$0xff] }
 0x3e4   : > { %4578 = vmatpush1.bf16.msra.mxu0 %v4577_v61  ;;  %v1842_v61 = vld [vmem:[#allocation2] sm:$0xfc] }
 0x3e5   : > { %4580 = vmatprep.subr.bf16.mxu0 %v4579_v62  ;;  %v1844_v62 = vld [vmem:[#allocation2 + $0x10] sm:$0x3]  ;;  %v1915_v0 = vrot.slane %v1842_v61, 2 }
 0x3e6   : > { %v1916_v1 = vrot.slane %v1844_v62, 2 }
 0x3e8   : > { %4582 = vmatpush1.bf16.msra.mxu0 %v4581_v3  ;;  %v1917_v2 = vsel %vm976_vm1, %v1915_v0, %v1916_v1  ;;  %v2140_v3 = vld [vmem:[#allocation8 + $0x368] sm:$0xff] }
 0x3e9   : > { %4584 = vmatprep.subr.bf16.mxu0 %v4583_v4  ;;  %v2142_v4 = vld [vmem:[#allocation8 + $0x378] sm:$0xff] }
 0x3ea   : > { %v4663_v5 = vpack.c.bf16 %v2142_v4, %v2140_v3  ;;  %v2032_v3 = vld [vmem:[#allocation8 + $0x30] sm:$0xff] }
 0x3ec   : > { %4586 = vmatpush1.bf16.msra.mxu0 %v4585_v9  ;;  %4664 = vmatprep.subr.bf16.mxu1 %v4663_v5  ;;  %v2144_v9 = vld [vmem:[#allocation8 + $0x388] sm:$0xff] }
 0x3ed   : > { %4588 = vmatprep.subr.bf16.mxu0 %v4587_v10  ;;  %4666 = vmatpush1.bf16.msra.mxu1 %v4665_v8  ;;  %v2146_v10 = vld [vmem:[#allocation8 + $0x398] sm:$0xff]  ;;  %v2034_v8 = vld [vmem:[#allocation8 + $0x40] sm:$0xff] }
 0x3ee   : > { %v4667_v11 = vpack.c.bf16 %v2146_v10, %v2144_v9  ;;  %v2036_v9 = vld [vmem:[#allocation8 + $0x50] sm:$0xff]  ;;  %v2565_v10 = vld [vmem:[#allocation10 + $0x208] sm:$0xff] }
 0x3f0   : > { %4590 = vmatpush1.bf16.msra.mxu0 %v4589_v15  ;;  %4668 = vmatprep.subr.bf16.mxu1 %v4667_v11  ;;  %v2148_v15 = vld [vmem:[#allocation8 + $0x3a8] sm:$0xff]  ;;  %v2567_v11 = vld [vmem:[#allocation10 + $0x218] sm:$0xff] }
 0x3f1   : > { %4592 = vmatprep.subr.bf16.mxu0 %v4591_v16  ;;  %4670 = vmatpush1.bf16.msra.mxu1 %v4669_v14  ;;  %v2150_v16 = vld [vmem:[#allocation8 + $0x3b8] sm:$0xff]  ;;  %v4811_v14 = vpack.c.bf16 %v2567_v11, %v2565_v10  ;;  %v2055_v11 = vld [vmem:[#allocation8 + $0xe8] sm:$0xff] }
 0x3f2   : > { %v4671_v17 = vpack.c.bf16 %v2150_v16, %v2148_v15  ;;  %v2566_v15 = vld [vmem:[#allocation10 + $0x210] sm:$0xff]  ;;  %v2569_v16 = vld [vmem:[#allocation10 + $0x228] sm:$0xff]  ;;  %v2591_v10 = vld [vmem:[#allocation10 + $0x2d8] sm:$0xff] }
 0x3f4   : > { %4594 = vmatpush1.bf16.msra.mxu0 %v4593_v21  ;;  %v4673_v21 = vpack.c.bf16 %v2149_v19, %v2147_v18  ;;  %4672 = vmatprep.subr.bf16.mxu1 %v4671_v17  ;;  %v2571_v17 = vld [vmem:[#allocation10 + $0x238] sm:$0xff]  ;;  %v4691_v18 = vpack.c.bf16 %v2037_v7, %v2035_v6  ;;  %v4813_v19 = vpack.c.bf16 %v2566_v15, %v2564_v12  ;;  %v2586_v6 = vld [vmem:[#allocation10 + $0x2b0] sm:$0xff]  ;;  %v2054_v15 = vld [vmem:[#allocation8 + $0xe0] sm:$0xff] }
 0x3f5   : > { %4596 = vmatprep.subr.bf16.mxu0 %v4595_v22  ;;  %v2154_v22 = vld [vmem:[#allocation8 + $0x3d8] sm:$0xff] }
 0x3f6   : > { %v4675_v25 = vpack.c.bf16 %v2154_v22, %v2152_v20  ;;  %4674 = vmatpush1.bf16.msra.mxu1 %v4673_v21  ;;  %v4815_v20 = vpack.c.bf16 %v2571_v17, %v2569_v16  ;;  %v2568_v21 = vld [vmem:[#allocation10 + $0x220] sm:$0xff]  ;;  %v2570_v22 = vld [vmem:[#allocation10 + $0x230] sm:$0xff]  ;;  %v2057_v12 = vld [vmem:[#allocation8 + $0xf8] sm:$0xff] }
 0x3f7   : > { %v2588_v17 = vld [vmem:[#allocation10 + $0x2c0] sm:$0xff] }
 0x3f8   : > { %4598 = vmatpush1.bf16.msra.mxu0 %v4597_v27  ;;  %v2158_v27 = vld [vmem:[#allocation8 + $0x3f8] sm:$0xff]  ;;  %4676 = vmatprep.subr.bf16.mxu1 %v4675_v25 }
 0x3f9   : > { %4600 = vmatprep.subr.bf16.mxu0 %v4599_v28  ;;  %v4677_v28 = vpack.c.bf16 %v2153_v24, %v2151_v23  ;;  %v4679_v29 = vpack.c.bf16 %v2158_v27, %v2156_v26  ;;  %v2573_v23 = vld [vmem:[#allocation10 + $0x248] sm:$0xff]  ;;  %v2041_v25 = vld [vmem:[#allocation8 + $0x78] sm:$0xff]  ;;  %v4817_v27 = vpack.c.bf16 %v2570_v22, %v2568_v21 }
 0x3fa   : > { %v2039_v24 = vld [vmem:[#allocation8 + $0x68] sm:$0xff]  ;;  %v2575_v26 = vld [vmem:[#allocation10 + $0x258] sm:$0xff] }
 0x3fb   : > { %4678 = vmatpush1.bf16.msra.mxu1 %v4677_v28  ;;  %v4693_v28 = vpack.c.bf16 %v2036_v9, %v2034_v8  ;;  %v4819_v30 = vpack.c.bf16 %v2575_v26, %v2573_v23  ;;  %v2052_v8 = vld [vmem:[#allocation8 + $0xd0] sm:$0xff]  ;;  %v2589_v9 = vld [vmem:[#allocation10 + $0x2c8] sm:$0xff]  ;;  %v2595_v22 = vld [vmem:[#allocation10 + $0x2f8] sm:$0xff] }
 0x3fc   : > { %4602 = vmatpush1.bf16.msra.mxu0 %v4601_v33  ;;  %4680 = vmatprep.subr.bf16.mxu1 %v4679_v29  ;;  %v2027_v33 = vld [vmem:[#allocation8 + $0x8] sm:$0xff]  ;;  %v2038_v29 = vld [vmem:[#allocation8 + $0x60] sm:$0xff]  ;;  %v4835_v16 = vpack.c.bf16 %v2591_v10, %v2589_v9  ;;  %v2077_v10 = vld [vmem:[#allocation8 + $0x198] sm:$0xff] }
 0x3fd   : > { %4604 = vmatprep.subr.bf16.mxu0 %v4603_v35  ;;  %v2029_v35 = vld [vmem:[#allocation8 + $0x18] sm:$0xff]  ;;  %v2593_v21 = vld [vmem:[#allocation10 + $0x2e8] sm:$0xff] }
 0x3fe   : > { %v4683_v37 = vpack.c.bf16 %v2029_v35, %v2027_v33  ;;  %v4695_v33 = vpack.c.bf16 %v2041_v25, %v2039_v24  ;;  %v2040_v35 = vld [vmem:[#allocation8 + $0x70] sm:$0xff]  ;;  %v2059_v23 = vld [vmem:[#allocation8 + $0x108] sm:$0xff]  ;;  %v2061_v24 = vld [vmem:[#allocation8 + $0x118] sm:$0xff] }
 0x3ff   : > { %4682 = vmatpush1.bf16.msra.mxu1 %v4681_v32  ;;  %v2574_v32 = vld [vmem:[#allocation10 + $0x250] sm:$0xff]  ;;  %v2075_v9 = vld [vmem:[#allocation8 + $0x188] sm:$0xff] }
 0x400   : > { %4606 = vmatpush1.bf16.msra.mxu0 %v4605_v41  ;;  %4684 = vmatprep.subr.bf16.mxu1 %v4683_v37  ;;  %v2577_v37 = vld [vmem:[#allocation10 + $0x268] sm:$0xff] }
 0x401   : > { %4608 = vmatprep.subr.bf16.mxu0 %v4607_v42 }
 0x404   : > { %4610 = vmatpush1.bf16.msra.mxu0 %v4609_v51 }
 0x405   : > { %4612 = vmatprep.subr.bf16.mxu0 %v4611_v52 }
 0x408   : > { %4614 = vmatpush1.bf16.msra.mxu0 %v4613_v57  ;;  %v2031_v57 = vld [vmem:[#allocation8 + $0x28] sm:$0xff] }
 0x409   : > { %4616 = vmatprep.subr.bf16.mxu0 %v4615_v58  ;;  %v4687_v1 = vpack.c.bf16 %v2033_v60, %v2031_v57 }
 0x40c   : > { %4618 = vmatpush1.bf16.msra.mxu0 %v4617_v63 }
 0x40d   : > { %4812 = vmatprep.subr.bf16.mxu0 %v4811_v14 }
 0x40f   : > { %1988 = vmatmul.mubr.f32.vlgmr.msra.gmra.mrb[2].mxu0 %v1917_v2  ;;  %v2030_v2 = vld [vmem:[#allocation8 + $0x20] sm:$0xff] }
 0x410   : > { %v4689_v13 = vpack.c.bf16 %v2032_v3, %v2030_v2  ;;  %4814 = vmatpush1.bf16.msra.mxu0 %v4813_v19  ;;  %v2050_v3 = vld [vmem:[#allocation8 + $0xc0] sm:$0xff]  ;;  %v4711_v19 = vpack.c.bf16 %v2057_v12, %v2055_v11 }
 0x411   : > { %4816 = vmatprep.subr.bf16.mxu0 %v4815_v20  ;;  %v4709_v14 = vpack.c.bf16 %v2052_v8, %v2050_v3  ;;  %v2056_v20 = vld [vmem:[#allocation8 + $0xf0] sm:$0xff]  ;;  %v2604_v3 = vld [vmem:[#allocation10 + $0x340] sm:$0xff]  ;;  %v2611_v8 = vld [vmem:[#allocation10 + $0x378] sm:$0xff] }
 0x412   : > { %v4713_v26 = vpack.c.bf16 %v2056_v20, %v2054_v15  ;;  %v2074_v15 = vld [vmem:[#allocation8 + $0x180] sm:$0xff] }
 0x414   : > { %4818 = vmatpush1.bf16.msra.mxu0 %v4817_v27  ;;  %v2058_v27 = vld [vmem:[#allocation8 + $0x100] sm:$0xff] }
 0x415   : > { %4820 = vmatprep.subr.bf16.mxu0 %v4819_v30  ;;  %v2594_v30 = vld [vmem:[#allocation10 + $0x2f0] sm:$0xff] }
 0x4e2   : > { %v1989_v41 = vpop.f32.mrb[2].mxu0 }
 0x4e3   : > { %v2008_v42 = vadd.f32 %v2001_v39, %v1989_v41  ;;  %v1991_v47 = vpop.f32.mrb[3].mxu0  ;;  %v2043_v39 = vld [vmem:[#allocation8 + $0x88] sm:$0xff]  ;;  %v4821_v41 = vpack.c.bf16 %v2574_v32, %v2572_v31  ;;  %v4715_v31 = vpack.c.bf16 %v2061_v24, %v2059_v23  ;;  %v2060_v32 = vld [vmem:[#allocation8 + $0x110] sm:$0xff]  ;;  %v2085_v24 = vld [vmem:[#allocation8 + $0x1d8] sm:$0xff] }
 0x4e4   : > { %v2009_v48 = vadd.f32 %v2005_v40, %v1991_v47  ;;  %v2045_v40 = vld [vmem:[#allocation8 + $0x98] sm:$0xff]  ;;  %v2042_v47 = vld [vmem:[#allocation8 + $0x80] sm:$0xff]  ;;  %v2083_v23 = vld [vmem:[#allocation8 + $0x1c8] sm:$0xff] }
 0x4e5   : > { %v2010_v49 = vmax.f32 %v2008_v42, 0.0  ;;  %v4697_v42 = vpack.c.bf16 %v2040_v35, %v2038_v29  ;;  %4822 = vmatpush1.bf16.msra.mxu0 %v4821_v41  ;;  %v2592_v29 = vld [vmem:[#allocation10 + $0x2e0] sm:$0xff]  ;;  %v2599_v35 = vld [vmem:[#allocation10 + $0x318] sm:$0xff] }
 0x4e6   : > { %v2011_v50 = vmax.f32 %v2009_v48, 0.0  ;;  %v4823_v48 = vpack.c.bf16 %v2579_v38, %v2577_v37  ;;  %v2063_v37 = vld [vmem:[#allocation8 + $0x128] sm:$0xff]  ;;  %v2065_v38 = vld [vmem:[#allocation8 + $0x138] sm:$0xff]  ;;  %v2062_v41 = vld [vmem:[#allocation8 + $0x120] sm:$0xff] }
 0x4e7   : > { %v2012_v51 = vadd.f32 %v2010_v49, %v1072_v45  ;;  %v2576_v49 = vld [vmem:[#allocation10 + $0x260] sm:$0xff] }
 0x4e8   : > { %v2013_v52 = vadd.f32 %v2011_v50, %v1073_v46  ;;  %v2578_v50 = vld [vmem:[#allocation10 + $0x270] sm:$0xff]  ;;  %4824 = vmatprep.subr.bf16.mxu0 %v4823_v48 }
 0x4e9   : > { %v2016_v53 = vrot.slane %v2012_v51, 7  ;;  %v4699_v51 = vpack.c.bf16 %v2045_v40, %v2043_v39  ;;  %v4825_v57 = vpack.c.bf16 %v2578_v50, %v2576_v49  ;;  %v4841_v39 = vpack.c.bf16 %v2594_v30, %v2592_v29  ;;  %v2598_v48 = vld [vmem:[#allocation10 + $0x310] sm:$0xff]  ;;  %v2087_v29 = vld [vmem:[#allocation8 + $0x1e8] sm:$0xff]  ;;  %v2089_v30 = vld [vmem:[#allocation8 + $0x1f8] sm:$0xff] }
 0x4ea   : > { %v2017_v54 = vrot.slane %v2013_v52, 7  ;;  %v2044_v52 = vld [vmem:[#allocation8 + $0x90] sm:$0xff]  ;;  %v4717_v40 = vpack.c.bf16 %v2060_v32, %v2058_v27  ;;  %v4719_v49 = vpack.c.bf16 %v2065_v38, %v2063_v37  ;;  %v2082_v27 = vld [vmem:[#allocation8 + $0x1c0] sm:$0xff]  ;;  %v4743_v32 = vpack.c.bf16 %v2089_v30, %v2087_v29  ;;  %v2319_v37 = vld [vmem:[#allocation8 + $0x408] sm:$0xff] }
 0x4eb   : > { %2020 = vst [vmem:[#allocation2] sm:$0xfe] %v2016_v53  ;;  %2022 = vst [vmem:[#allocation2 + $0x10] sm:$0x1] %v2016_v53  ;;  %v2581_v53 = vld [vmem:[#allocation10 + $0x288] sm:$0xff]  ;;  %4826 = vmatpush1.bf16.msra.mxu0 %v4825_v57  ;;  %v2064_v50 = vld [vmem:[#allocation8 + $0x130] sm:$0xff] }
 0x4ec   : > { %2021 = vst [vmem:[#allocation2 + $0x8] sm:$0xfe] %v2017_v54  ;;  %2023 = vst [vmem:[#allocation2 + $0x18] sm:$0x1] %v2017_v54  ;;  %v2583_v54 = vld [vmem:[#allocation10 + $0x298] sm:$0xff]  ;;  %v2066_v57 = vld [vmem:[#allocation8 + $0x140] sm:$0xff] }
 0x4ed   : > { %v4827_v60 = vpack.c.bf16 %v2583_v54, %v2581_v53  ;;  %v2067_v53 = vld [vmem:[#allocation8 + $0x148] sm:$0xff]  ;;  %v2069_v54 = vld [vmem:[#allocation8 + $0x158] sm:$0xff] }
 0x4ee   : > { %v2321_v38 = vld [vmem:[#allocation8 + $0x418] sm:$0xff] }
 0x4ef   : > { %4828 = vmatprep.subr.bf16.mxu0 %v4827_v60  ;;  %v2602_v60 = vld [vmem:[#allocation10 + $0x330] sm:$0xff] }
 0x4f2   : > { %v2090_v58 = vld [vmem:[#allocation2] sm:$0xfe]  ;;  %v2092_v59 = vld [vmem:[#allocation2 + $0x10] sm:$0x1] }
 0x4f3   : > { %v2091_v61 = vld [vmem:[#allocation2 + $0x8] sm:$0xfe]  ;;  %v2093_v62 = vld [vmem:[#allocation2 + $0x18] sm:$0x1]  ;;  %v2163_v63 = vrot.slane %v2090_v58, 1  ;;  %v2164_v43 = vrot.slane %v2092_v59, 1  ;;  %v4701_v58 = vpack.c.bf16 %v2044_v52, %v2042_v47 }
 0x4f4   : > { %v2166_v45 = vrot.slane %v2091_v61, 1  ;;  %v2167_v0 = vrot.slane %v2093_v62, 1  ;;  %v2025_v5 = vld [vmem:[#allocation2 + $0x8] sm:$0xff]  ;;  %v2046_v59 = vld [vmem:[#allocation8 + $0xa0] sm:$0xff]  ;;  %v2582_v62 = vld [vmem:[#allocation10 + $0x290] sm:$0xff] }
 0x4f5   : > { %v2165_v4 = vsel %vm752_vm0, %v2163_v63, %v2164_v43  ;;  %v2580_v61 = vld [vmem:[#allocation10 + $0x280] sm:$0xff]  ;;  %v4703_v63 = vpack.c.bf16 %v2049_v56, %v2047_v55  ;;  %v2048_v43 = vld [vmem:[#allocation8 + $0xb0] sm:$0xff]  ;;  %v2603_v52 = vld [vmem:[#allocation10 + $0x338] sm:$0xff]  ;;  %v4721_v56 = vpack.c.bf16 %v2064_v50, %v2062_v41 }
 0x4f6   : > { %v2168_v46 = vsel %vm752_vm0, %v2166_v45, %v2167_v0  ;;  %v2585_v45 = vld [vmem:[#allocation10 + $0x2a8] sm:$0xff]  ;;  %v2587_v0 = vld [vmem:[#allocation10 + $0x2b8] sm:$0xff]  ;;  %v4705_v2 = vpack.c.bf16 %v2048_v43, %v2046_v59  ;;  %v2596_v47 = vld [vmem:[#allocation10 + $0x300] sm:$0xff] }
 0x4f7   : > { %2235 = vmatprep.mubr.f32.mxu1 %v2168_v46  ;;  %v2053_v46 = vld [vmem:[#allocation8 + $0xd8] sm:$0xff]  ;;  %v4845_v55 = vpack.c.bf16 %v2598_v48, %v2596_v47  ;;  %v2600_v59 = vld [vmem:[#allocation10 + $0x320] sm:$0xff]  ;;  %v2320_v48 = vld [vmem:[#allocation8 + $0x410] sm:$0xff] }
 0x4f8   : > { %2236 = vmatmul.mubr.f32.vlgmr.msra.gmra.mrb[4].mxu1 %v2165_v4  ;;  %v4831_v4 = vpack.c.bf16 %v2587_v0, %v2585_v45  ;;  %v2607_v43 = vld [vmem:[#allocation10 + $0x358] sm:$0xff]  ;;  %v2071_v45 = vld [vmem:[#allocation8 + $0x168] sm:$0xff]  ;;  %v2318_v47 = vld [vmem:[#allocation8 + $0x400] sm:$0xff] }
 0x4f9   : > { %4686 = vmatpush1.bf16.msra.mxu1 %v4685_v44  ;;  %2306 = vmatprep.mubr.f32.mxu1 %v2025_v5  ;;  %v2051_v44 = vld [vmem:[#allocation8 + $0xc8] sm:$0xff]  ;;  %v2584_v5 = vld [vmem:[#allocation10 + $0x2a0] sm:$0xff]  ;;  %v2073_v0 = vld [vmem:[#allocation8 + $0x178] sm:$0xff] }
 0x4fa   : > { %4688 = vmatprep.subr.bf16.mxu1 %v4687_v1  ;;  %v4829_v1 = vpack.c.bf16 %v2582_v62, %v2580_v61  ;;  %v4707_v7 = vpack.c.bf16 %v2053_v46, %v2051_v44  ;;  %v4723_v61 = vpack.c.bf16 %v2069_v54, %v2067_v53  ;;  %v2068_v62 = vld [vmem:[#allocation8 + $0x150] sm:$0xff]  ;;  %v4849_v44 = vpack.c.bf16 %v2602_v60, %v2600_v59  ;;  %v2316_v41 = vld [vmem:[#allocation2 + $0x18] sm:$0x3] }
 0x4fb   : > { %v4725_v46 = vpack.c.bf16 %v2068_v62, %v2066_v57  ;;  %v2325_v50 = vld [vmem:[#allocation8 + $0x438] sm:$0xff]  ;;  %v4749_v53 = vpack.c.bf16 %v2320_v48, %v2318_v47  ;;  %v2024_v57 = vld [vmem:[#allocation2] sm:$0xff] }
 0x4fc   : > { %4830 = vmatpush1.bf16.msra.mxu0 %v4829_v1  ;;  %v2070_v1 = vld [vmem:[#allocation8 + $0x160] sm:$0xff]  ;;  %v2329_v59 = vld [vmem:[#allocation8 + $0x458] sm:$0xff] }
 0x4fd   : > { %4690 = vmatpush1.bf16.msra.mxu1 %v4689_v13  ;;  %v4833_v13 = vpack.c.bf16 %v2586_v6, %v2584_v5  ;;  %4832 = vmatprep.subr.bf16.mxu0 %v4831_v4  ;;  %v2606_v4 = vld [vmem:[#allocation10 + $0x350] sm:$0xff]  ;;  %v4727_v5 = vpack.c.bf16 %v2073_v0, %v2071_v45  ;;  %v2331_v45 = vld [vmem:[#allocation8 + $0x468] sm:$0xff]  ;;  %v2333_v0 = vld [vmem:[#allocation8 + $0x478] sm:$0xff] }
 0x4fe   : > { %4692 = vmatprep.subr.bf16.mxu1 %v4691_v18  ;;  %v2590_v18 = vld [vmem:[#allocation10 + $0x2d0] sm:$0xff]  ;;  %v4853_v11 = vpack.c.bf16 %v2606_v4, %v2604_v3  ;;  %v2335_v3 = vld [vmem:[#allocation8 + $0x488] sm:$0xff]  ;;  %v2337_v4 = vld [vmem:[#allocation8 + $0x498] sm:$0xff] }
 0x4ff   : > { %v4837_v25 = vpack.c.bf16 %v2590_v18, %v2588_v17  ;;  %v2072_v6 = vld [vmem:[#allocation8 + $0x170] sm:$0xff]  ;;  %v2079_v17 = vld [vmem:[#allocation8 + $0x1a8] sm:$0xff]  ;;  %v2081_v18 = vld [vmem:[#allocation8 + $0x1b8] sm:$0xff] }
 0x500   : > { %4834 = vmatpush1.bf16.msra.mxu0 %v4833_v13  ;;  %v4729_v12 = vpack.c.bf16 %v2072_v6, %v2070_v1  ;;  %v4735_v20 = vpack.c.bf16 %v2081_v18, %v2079_v17  ;;  %v2330_v1 = vld [vmem:[#allocation8 + $0x460] sm:$0xff]  ;;  %v4763_v6 = vpack.c.bf16 %v2337_v4, %v2335_v3 }
 0x501   : > { %4694 = vmatpush1.bf16.msra.mxu1 %v4693_v28  ;;  %4836 = vmatprep.subr.bf16.mxu0 %v4835_v16  ;;  %v4839_v28 = vpack.c.bf16 %v2595_v22, %v2593_v21  ;;  %v2076_v16 = vld [vmem:[#allocation8 + $0x190] sm:$0xff]  ;;  %v2078_v21 = vld [vmem:[#allocation8 + $0x1a0] sm:$0xff] }
 0x502   : > { %4696 = vmatprep.subr.bf16.mxu1 %v4695_v33  ;;  %v2597_v33 = vld [vmem:[#allocation10 + $0x308] sm:$0xff]  ;;  %v2080_v22 = vld [vmem:[#allocation8 + $0x1b0] sm:$0xff] }
 0x504   : > { %4838 = vmatpush1.bf16.msra.mxu0 %v4837_v25  ;;  %v4737_v25 = vpack.c.bf16 %v2080_v22, %v2078_v21  ;;  %v2347_v21 = vld [vmem:[#allocation8 + $0x4e8] sm:$0xff]  ;;  %v2349_v22 = vld [vmem:[#allocation8 + $0x4f8] sm:$0xff] }
 0x505   : > { %4698 = vmatpush1.bf16.msra.mxu1 %v4697_v42  ;;  %4840 = vmatprep.subr.bf16.mxu0 %v4839_v28  ;;  %v4843_v42 = vpack.c.bf16 %v2599_v35, %v2597_v33  ;;  %v2084_v28 = vld [vmem:[#allocation8 + $0x1d0] sm:$0xff]  ;;  %v2086_v33 = vld [vmem:[#allocation8 + $0x1e0] sm:$0xff] }
 0x506   : > { %4700 = vmatprep.subr.bf16.mxu1 %v4699_v51  ;;  %v2601_v51 = vld [vmem:[#allocation10 + $0x328] sm:$0xff]  ;;  %v2088_v35 = vld [vmem:[#allocation8 + $0x1f0] sm:$0xff] }
 0x508   : > { %4842 = vmatpush1.bf16.msra.mxu0 %v4841_v39  ;;  %v4745_v39 = vpack.c.bf16 %v2088_v35, %v2086_v33  ;;  %v2355_v33 = vld [vmem:[#allocation8 + $0x528] sm:$0xff]  ;;  %v2357_v35 = vld [vmem:[#allocation8 + $0x538] sm:$0xff] }
 0x509   : > { %4702 = vmatpush1.bf16.msra.mxu1 %v4701_v58  ;;  %4844 = vmatprep.subr.bf16.mxu0 %v4843_v42  ;;  %v4847_v58 = vpack.c.bf16 %v2603_v52, %v2601_v51  ;;  %v4747_v42 = vpack.c.bf16 %v2321_v38, %v2319_v37  ;;  %v2390_v52 = vrot.slane %v2316_v41, 2  ;;  %v4783_v38 = vpack.c.bf16 %v2357_v35, %v2355_v33  ;;  %v2359_v41 = vld [vmem:[#allocation8 + $0x548] sm:$0xff] }
 0x50a   : > { %4704 = vmatprep.subr.bf16.mxu1 %v4703_v63  ;;  %v2605_v63 = vld [vmem:[#allocation10 + $0x348] sm:$0xff] }
 0x50b   : > { %v2621_v33 = vld [vmem:[#allocation10 + $0x3c8] sm:$0xff] }
 0x50c   : > { %4846 = vmatpush1.bf16.msra.mxu0 %v4845_v55  ;;  %v2322_v55 = vld [vmem:[#allocation8 + $0x420] sm:$0xff] }
 0x50d   : > { %4706 = vmatpush1.bf16.msra.mxu1 %v4705_v2  ;;  %4848 = vmatprep.subr.bf16.mxu0 %v4847_v58  ;;  %v4851_v2 = vpack.c.bf16 %v2607_v43, %v2605_v63  ;;  %v2327_v58 = vld [vmem:[#allocation8 + $0x448] sm:$0xff]  ;;  %v2326_v63 = vld [vmem:[#allocation8 + $0x440] sm:$0xff]  ;;  %v2328_v43 = vld [vmem:[#allocation8 + $0x450] sm:$0xff] }
 0x50e   : > { %4708 = vmatprep.subr.bf16.mxu1 %v4707_v7  ;;  %v2609_v7 = vld [vmem:[#allocation10 + $0x368] sm:$0xff]  ;;  %v4755_v62 = vpack.c.bf16 %v2329_v59, %v2327_v58  ;;  %v2369_v58 = vld [vmem:[#allocation8 + $0x598] sm:$0xff] }
 0x50f   : > { %v4855_v13 = vpack.c.bf16 %v2611_v8, %v2609_v7  ;;  %v2334_v7 = vld [vmem:[#allocation8 + $0x480] sm:$0xff]  ;;  %v2336_v8 = vld [vmem:[#allocation8 + $0x490] sm:$0xff] }
 0x510   : > { %4850 = vmatpush1.bf16.msra.mxu0 %v4849_v44  ;;  %v4757_v44 = vpack.c.bf16 %v2328_v43, %v2326_v63  ;;  %v2371_v63 = vld [vmem:[#allocation8 + $0x5a8] sm:$0xff]  ;;  %v2373_v43 = vld [vmem:[#allocation8 + $0x5b8] sm:$0xff] }
 0x511   : > { %4710 = vmatpush1.bf16.msra.mxu1 %v4709_v14  ;;  %4852 = vmatprep.subr.bf16.mxu0 %v4851_v2  ;;  %v4731_v14 = vpack.c.bf16 %v2077_v10, %v2075_v9  ;;  %v2332_v2 = vld [vmem:[#allocation8 + $0x470] sm:$0xff]  ;;  %v2339_v9 = vld [vmem:[#allocation8 + $0x4a8] sm:$0xff]  ;;  %v2341_v10 = vld [vmem:[#allocation8 + $0x4b8] sm:$0xff] }
 0x512   : > { %4712 = vmatprep.subr.bf16.mxu1 %v4711_v19  ;;  %v4733_v19 = vpack.c.bf16 %v2076_v16, %v2074_v15  ;;  %v2343_v15 = vld [vmem:[#allocation8 + $0x4c8] sm:$0xff]  ;;  %v2345_v16 = vld [vmem:[#allocation8 + $0x4d8] sm:$0xff] }
 0x513   : > { %v4771_v18 = vpack.c.bf16 %v2345_v16, %v2343_v15 }
 0x514   : > { %4854 = vmatpush1.bf16.msra.mxu0 %v4853_v11  ;;  %v4765_v11 = vpack.c.bf16 %v2336_v8, %v2334_v7  ;;  %v2379_v7 = vld [vmem:[#allocation8 + $0x5e8] sm:$0xff]  ;;  %v2381_v8 = vld [vmem:[#allocation8 + $0x5f8] sm:$0xff] }
 0x515   : > { %4714 = vmatpush1.bf16.msra.mxu1 %v4713_v26  ;;  %4856 = vmatprep.subr.bf16.mxu0 %v4855_v13  ;;  %v4739_v26 = vpack.c.bf16 %v2085_v24, %v2083_v23  ;;  %v2338_v13 = vld [vmem:[#allocation8 + $0x4a0] sm:$0xff]  ;;  %v4775_v24 = vpack.c.bf16 %v2349_v22, %v2347_v21  ;;  %v2613_v22 = vld [vmem:[#allocation10 + $0x388] sm:$0xff] }
 0x516   : > { %4716 = vmatprep.subr.bf16.mxu1 %v4715_v31  ;;  %v4741_v31 = vpack.c.bf16 %v2084_v28, %v2082_v27  ;;  %v2351_v27 = vld [vmem:[#allocation8 + $0x508] sm:$0xff]  ;;  %v2353_v28 = vld [vmem:[#allocation8 + $0x518] sm:$0xff] }
 0x517   : > { %v4779_v30 = vpack.c.bf16 %v2353_v28, %v2351_v27  ;;  %v2617_v28 = vld [vmem:[#allocation10 + $0x3a8] sm:$0xff] }
 0x519   : > { %4718 = vmatpush1.bf16.msra.mxu1 %v4717_v40  ;;  %v2314_v40 = vld [vmem:[#allocation2 + $0x8] sm:$0xfc] }
 0x51a   : > { %4720 = vmatprep.subr.bf16.mxu1 %v4719_v49  ;;  %v2323_v49 = vld [vmem:[#allocation8 + $0x428] sm:$0xff]  ;;  %v2389_v51 = vrot.slane %v2314_v40, 2  ;;  %v2356_v40 = vld [vmem:[#allocation8 + $0x530] sm:$0xff] }
 0x51b   : > { %v4751_v54 = vpack.c.bf16 %v2325_v50, %v2323_v49  ;;  %v2358_v49 = vld [vmem:[#allocation8 + $0x540] sm:$0xff]  ;;  %v2360_v50 = vld [vmem:[#allocation8 + $0x550] sm:$0xff] }
 0x51c   : > { %v2391_v60 = vsel %vm976_vm1, %v2389_v51, %v2390_v52  ;;  %v2363_v51 = vld [vmem:[#allocation8 + $0x568] sm:$0xff]  ;;  %v2365_v52 = vld [vmem:[#allocation8 + $0x578] sm:$0xff] }
 0x51d   : > { %4722 = vmatpush1.bf16.msra.mxu1 %v4721_v56  ;;  %v2324_v56 = vld [vmem:[#allocation8 + $0x430] sm:$0xff] }
 0x51e   : > { %4724 = vmatprep.subr.bf16.mxu1 %v4723_v61  ;;  %v4753_v61 = vpack.c.bf16 %v2324_v56, %v2322_v55  ;;  %v2362_v55 = vld [vmem:[#allocation8 + $0x560] sm:$0xff]  ;;  %v2364_v56 = vld [vmem:[#allocation8 + $0x570] sm:$0xff] }
 0x51f   : > { %v4793_v59 = vpack.c.bf16 %v2364_v56, %v2362_v55  ;;  %v2467_v55 = vld [vmem:[%s6146_s8] sm:$0x3] }
 0x520   : > { %v2472_v56 = vrot.slane %v2467_v55, %v6039_v34 }
 0x521   : > { %4726 = vmatpush1.bf16.msra.mxu1 %v4725_v46  ;;  %v4759_v46 = vpack.c.bf16 %v2333_v0, %v2331_v45  ;;  %v4799_v0 = vpack.c.bf16 %v2373_v43, %v2371_v63 }
 0x522   : > { %4728 = vmatprep.subr.bf16.mxu1 %v4727_v5  ;;  %v4761_v5 = vpack.c.bf16 %v2332_v2, %v2330_v1  ;;  %v2375_v1 = vld [vmem:[#allocation8 + $0x5c8] sm:$0xff]  ;;  %v2377_v2 = vld [vmem:[#allocation8 + $0x5d8] sm:$0xff] }
 0x523   : > { %v4803_v4 = vpack.c.bf16 %v2377_v2, %v2375_v1 }
 0x525   : > { %4730 = vmatpush1.bf16.msra.mxu1 %v4729_v12  ;;  %v4767_v12 = vpack.c.bf16 %v2341_v10, %v2339_v9  ;;  %v4807_v10 = vpack.c.bf16 %v2381_v8, %v2379_v7 }
 0x526   : > { %4732 = vmatprep.subr.bf16.mxu1 %v4731_v14  ;;  %v2340_v14 = vld [vmem:[#allocation8 + $0x4b0] sm:$0xff] }
 0x527   : > { %v4769_v17 = vpack.c.bf16 %v2340_v14, %v2338_v13  ;;  %v2313_v13 = vld [vmem:[#allocation2] sm:$0xfc]  ;;  %v2315_v14 = vld [vmem:[#allocation2 + $0x10] sm:$0x3] }
 0x528   : > { %v2386_v16 = vrot.slane %v2313_v13, 2  ;;  %v2499_v13 = vld [vmem:[#allocation10 + $0x20] sm:$0xff] }
 0x529   : > { %4734 = vmatpush1.bf16.msra.mxu1 %v4733_v19  ;;  %v2342_v19 = vld [vmem:[#allocation8 + $0x4c0] sm:$0xff] }
 0x52a   : > { %4736 = vmatprep.subr.bf16.mxu1 %v4735_v20  ;;  %v2344_v20 = vld [vmem:[#allocation8 + $0x4d0] sm:$0xff] }
 0x52b   : > { %v4773_v23 = vpack.c.bf16 %v2344_v20, %v2342_v19  ;;  %v2608_v19 = vld [vmem:[#allocation10 + $0x360] sm:$0xff]  ;;  %v2610_v20 = vld [vmem:[#allocation10 + $0x370] sm:$0xff] }
 0x52c   : > { %v4857_v21 = vpack.c.bf16 %v2610_v20, %v2608_v19  ;;  %v2503_v19 = vld [vmem:[#allocation10 + $0x40] sm:$0xff]  ;;  %v2505_v20 = vld [vmem:[#allocation10 + $0x50] sm:$0xff] }
 0x52d   : > { %4738 = vmatpush1.bf16.msra.mxu1 %v4737_v25  ;;  %v2346_v25 = vld [vmem:[#allocation8 + $0x4e0] sm:$0xff] }
 0x52e   : > { %4740 = vmatprep.subr.bf16.mxu1 %v4739_v26  ;;  %v2348_v26 = vld [vmem:[#allocation8 + $0x4f0] sm:$0xff]  ;;  %4858 = vmatpush1.bf16.msra.mxu0 %v4857_v21  ;;  %v3034_v21 = vld [vmem:[#allocation11 + $0x208] sm:$0xff] }
 0x52f   : > { %v4777_v29 = vpack.c.bf16 %v2348_v26, %v2346_v25  ;;  %v2612_v25 = vld [vmem:[#allocation10 + $0x380] sm:$0xff]  ;;  %v2614_v26 = vld [vmem:[#allocation10 + $0x390] sm:$0xff] }
 0x530   : > { %v4861_v27 = vpack.c.bf16 %v2614_v26, %v2612_v25  ;;  %v3035_v26 = vld [vmem:[#allocation11 + $0x210] sm:$0xff] }
 0x531   : > { %4742 = vmatpush1.bf16.msra.mxu1 %v4741_v31  ;;  %v2350_v31 = vld [vmem:[#allocation8 + $0x500] sm:$0xff] }
 0x532   : > { %4744 = vmatprep.subr.bf16.mxu1 %v4743_v32  ;;  %v2352_v32 = vld [vmem:[#allocation8 + $0x510] sm:$0xff] }
 0x533   : > { %v4781_v37 = vpack.c.bf16 %v2352_v32, %v2350_v31  ;;  %v2616_v31 = vld [vmem:[#allocation10 + $0x3a0] sm:$0xff]  ;;  %v2618_v32 = vld [vmem:[#allocation10 + $0x3b0] sm:$0xff] }
 0x534   : > { %v4865_v35 = vpack.c.bf16 %v2618_v32, %v2616_v31  ;;  %v3037_v32 = vld [vmem:[#allocation11 + $0x220] sm:$0xff] }
 0x535   : > { %4746 = vmatpush1.bf16.msra.mxu1 %v4745_v39  ;;  %v2354_v39 = vld [vmem:[#allocation8 + $0x520] sm:$0xff] }
 0x536   : > { %4748 = vmatprep.subr.bf16.mxu1 %v4747_v42  ;;  %v2361_v42 = vld [vmem:[#allocation8 + $0x558] sm:$0xff]  ;;  %v4785_v47 = vpack.c.bf16 %v2356_v40, %v2354_v39  ;;  %v2622_v39 = vld [vmem:[#allocation10 + $0x3d0] sm:$0xff] }
 0x537   : > { %v4787_v48 = vpack.c.bf16 %v2361_v42, %v2359_v41  ;;  %v2625_v41 = vld [vmem:[#allocation10 + $0x3e8] sm:$0xff]  ;;  %v2627_v42 = vld [vmem:[#allocation10 + $0x3f8] sm:$0xff] }
 0x538   : > { %2307 = vmatmul.mubr.f32.vlgmr.msra.gmra.mrb[4].mxu1 %v2024_v57  ;;  %v2367_v57 = vld [vmem:[#allocation8 + $0x588] sm:$0xff] }
 0x539   : > { %4750 = vmatpush1.bf16.msra.mxu1 %v4749_v53  ;;  %2458 = vmatprep.mubr.f32.mxu1 %v2391_v60  ;;  %v4789_v53 = vpack.c.bf16 %v2360_v50, %v2358_v49  ;;  %v4795_v60 = vpack.c.bf16 %v2369_v58, %v2367_v57  ;;  %v2624_v49 = vld [vmem:[#allocation10 + $0x3e0] sm:$0xff]  ;;  %v2626_v50 = vld [vmem:[#allocation10 + $0x3f0] sm:$0xff]  ;;  %v2476_v57 = vrot.slane %v2467_v55, %v6044_v36  ;;  %v2514_v55 = vld [vmem:[#allocation10 + $0x98] sm:$0xff] }
 0x53a   : > { %4752 = vmatprep.subr.bf16.mxu1 %v4751_v54  ;;  %v4791_v54 = vpack.c.bf16 %v2365_v52, %v2363_v51  ;;  %v4873_v51 = vpack.c.bf16 %v2626_v50, %v2624_v49  ;;  %v2496_v52 = vld [vmem:[#allocation10 + $0x8] sm:$0xff]  ;;  %v3043_v49 = vld [vmem:[#allocation11 + $0x250] sm:$0xff] }
 0x53d   : > { %4754 = vmatpush1.bf16.msra.mxu1 %v4753_v61  ;;  %v2366_v61 = vld [vmem:[#allocation8 + $0x580] sm:$0xff] }
 0x53e   : > { %4756 = vmatprep.subr.bf16.mxu1 %v4755_v62  ;;  %v2368_v62 = vld [vmem:[#allocation8 + $0x590] sm:$0xff] }
 0x53f   : > { %v4797_v45 = vpack.c.bf16 %v2368_v62, %v2366_v61 }
 0x541   : > { %4758 = vmatpush1.bf16.msra.mxu1 %v4757_v44  ;;  %v2370_v44 = vld [vmem:[#allocation8 + $0x5a0] sm:$0xff] }
 0x542   : > { %4760 = vmatprep.subr.bf16.mxu1 %v4759_v46  ;;  %v2372_v46 = vld [vmem:[#allocation8 + $0x5b0] sm:$0xff] }
 0x543   : > { %v4801_v3 = vpack.c.bf16 %v2372_v46, %v2370_v44  ;;  %v2497_v44 = vld [vmem:[#allocation10 + $0x10] sm:$0xff]  ;;  %v2500_v46 = vld [vmem:[#allocation10 + $0x28] sm:$0xff] }
 0x545   : > { %4762 = vmatpush1.bf16.msra.mxu1 %v4761_v5  ;;  %v2374_v5 = vld [vmem:[#allocation8 + $0x5c0] sm:$0xff] }
 0x546   : > { %4764 = vmatprep.subr.bf16.mxu1 %v4763_v6  ;;  %v2376_v6 = vld [vmem:[#allocation8 + $0x5d0] sm:$0xff] }
 0x547   : > { %v4805_v9 = vpack.c.bf16 %v2376_v6, %v2374_v5 }
 0x549   : > { %4766 = vmatpush1.bf16.msra.mxu1 %v4765_v11  ;;  %v2378_v11 = vld [vmem:[#allocation8 + $0x5e0] sm:$0xff] }
 0x54a   : > { %4768 = vmatprep.subr.bf16.mxu1 %v4767_v12  ;;  %v2380_v12 = vld [vmem:[#allocation8 + $0x5f0] sm:$0xff] }
 0x54b   : > { %v4809_v15 = vpack.c.bf16 %v2380_v12, %v2378_v11 }
 0x54d   : > { %4770 = vmatpush1.bf16.msra.mxu1 %v4769_v17  ;;  %v2387_v17 = vrot.slane %v2315_v14, 2  ;;  %v2501_v14 = vld [vmem:[#allocation10 + $0x30] sm:$0xff] }
 0x54e   : > { %4772 = vmatprep.subr.bf16.mxu1 %v4771_v18 }
 0x54f   : > { %v2388_v18 = vsel %vm976_vm1, %v2386_v16, %v2387_v17  ;;  %v2504_v17 = vld [vmem:[#allocation10 + $0x48] sm:$0xff] }
 0x551   : > { %4774 = vmatpush1.bf16.msra.mxu1 %v4773_v23  ;;  %v2615_v23 = vld [vmem:[#allocation10 + $0x398] sm:$0xff] }
 0x552   : > { %4776 = vmatprep.subr.bf16.mxu1 %v4775_v24  ;;  %v4859_v24 = vpack.c.bf16 %v2615_v23, %v2613_v22  ;;  %v3036_v22 = vld [vmem:[#allocation11 + $0x218] sm:$0xff]  ;;  %v3033_v23 = vld [vmem:[#allocation11 + $0x200] sm:$0xff] }
 0x553   : > { %v5003_v25 = vpack.c.bf16 %v3036_v22, %v3034_v21  ;;  %v3055_v21 = vld [vmem:[#allocation11 + $0x2b0] sm:$0xff] }
 0x554   : > { %4860 = vmatprep.subr.bf16.mxu0 %v4859_v24  ;;  %v4881_v24 = vpack.c.bf16 %v2501_v14, %v2499_v13  ;;  %v3056_v13 = vld [vmem:[#allocation11 + $0x2b8] sm:$0xff]  ;;  %v2520_v14 = vld [vmem:[#allocation10 + $0xc8] sm:$0xff] }
 0x555   : > { %4778 = vmatpush1.bf16.msra.mxu1 %v4777_v29  ;;  %4862 = vmatpush1.bf16.msra.mxu0 %v4861_v27  ;;  %v2619_v29 = vld [vmem:[#allocation10 + $0x3b8] sm:$0xff]  ;;  %v3038_v27 = vld [vmem:[#allocation11 + $0x228] sm:$0xff] }
 0x556   : > { %4780 = vmatprep.subr.bf16.mxu1 %v4779_v30  ;;  %v4863_v30 = vpack.c.bf16 %v2619_v29, %v2617_v28  ;;  %v3040_v28 = vld [vmem:[#allocation11 + $0x238] sm:$0xff] }
 0x557   : > { %v5007_v31 = vpack.c.bf16 %v3040_v28, %v3038_v27  ;;  %v2526_v27 = vld [vmem:[#allocation10 + $0xf8] sm:$0xff] }
 0x558   : > { %4864 = vmatprep.subr.bf16.mxu0 %v4863_v30  ;;  %v5005_v30 = vpack.c.bf16 %v3035_v26, %v3033_v23  ;;  %v2521_v23 = vld [vmem:[#allocation10 + $0xd0] sm:$0xff]  ;;  %v2524_v26 = vld [vmem:[#allocation10 + $0xe8] sm:$0xff] }
 0x559   : > { %4782 = vmatpush1.bf16.msra.mxu1 %v4781_v37  ;;  %v2623_v37 = vld [vmem:[#allocation10 + $0x3d8] sm:$0xff]  ;;  %4866 = vmatpush1.bf16.msra.mxu0 %v4865_v35  ;;  %v3042_v35 = vld [vmem:[#allocation11 + $0x248] sm:$0xff] }
 0x55a   : > { %4784 = vmatprep.subr.bf16.mxu1 %v4783_v38  ;;  %v2620_v38 = vld [vmem:[#allocation10 + $0x3c0] sm:$0xff]  ;;  %v4867_v40 = vpack.c.bf16 %v2623_v37, %v2621_v33  ;;  %v3039_v33 = vld [vmem:[#allocation11 + $0x230] sm:$0xff]  ;;  %v2508_v37 = vld [vmem:[#allocation10 + $0x68] sm:$0xff] }
 0x55c   : > { %4868 = vmatprep.subr.bf16.mxu0 %v4867_v40  ;;  %v5009_v40 = vpack.c.bf16 %v3039_v33, %v3037_v32  ;;  %v3057_v32 = vld [vmem:[#allocation11 + $0x2c0] sm:$0xff]  ;;  %v3059_v33 = vld [vmem:[#allocation11 + $0x2d0] sm:$0xff] }
 0x55d   : > { %4786 = vmatpush1.bf16.msra.mxu1 %v4785_v47  ;;  %v4869_v47 = vpack.c.bf16 %v2622_v39, %v2620_v38  ;;  %v2510_v38 = vld [vmem:[#allocation10 + $0x78] sm:$0xff] }
 0x55e   : > { %4788 = vmatprep.subr.bf16.mxu1 %v4787_v48  ;;  %v4871_v48 = vpack.c.bf16 %v2627_v42, %v2625_v41  ;;  %v3044_v39 = vld [vmem:[#allocation11 + $0x258] sm:$0xff]  ;;  %v4885_v41 = vpack.c.bf16 %v2505_v20, %v2503_v19  ;;  %v2507_v42 = vld [vmem:[#allocation10 + $0x60] sm:$0xff]  ;;  %v4887_v50 = vpack.c.bf16 %v2510_v38, %v2508_v37  ;;  %v2525_v37 = vld [vmem:[#allocation10 + $0xf0] sm:$0xff] }
 0x55f   : > { %4870 = vmatpush1.bf16.msra.mxu0 %v4869_v47  ;;  %v5011_v47 = vpack.c.bf16 %v3044_v39, %v3042_v35  ;;  %v3053_v20 = vld [vmem:[#allocation11 + $0x2a0] sm:$0xff]  ;;  %v4903_v35 = vpack.c.bf16 %v2526_v27, %v2524_v26  ;;  %v3062_v38 = vld [vmem:[#allocation11 + $0x2e8] sm:$0xff]  ;;  %v3064_v39 = vld [vmem:[#allocation11 + $0x2f8] sm:$0xff] }
 0x560   : > { %4872 = vmatprep.subr.bf16.mxu0 %v4871_v48  ;;  %v3041_v48 = vld [vmem:[#allocation11 + $0x240] sm:$0xff]  ;;  %v5025_v28 = vpack.c.bf16 %v3055_v21, %v3053_v20  ;;  %v3078_v26 = vld [vmem:[#allocation11 + $0x368] sm:$0xff]  ;;  %v3080_v27 = vld [vmem:[#allocation11 + $0x378] sm:$0xff] }
 0x561   : > { %4790 = vmatpush1.bf16.msra.mxu1 %v4789_v53  ;;  %v2498_v53 = vld [vmem:[#allocation10 + $0x18] sm:$0xff]  ;;  %v2539_v20 = vld [vmem:[#allocation10 + $0x160] sm:$0xff] }
 0x562   : > { %4792 = vmatprep.subr.bf16.mxu1 %v4791_v54  ;;  %v4875_v54 = vpack.c.bf16 %v2498_v53, %v2496_v52  ;;  %v3046_v52 = vld [vmem:[#allocation11 + $0x268] sm:$0xff]  ;;  %v3048_v53 = vld [vmem:[#allocation11 + $0x278] sm:$0xff] }
 0x563   : > { %4874 = vmatpush1.bf16.msra.mxu0 %v4873_v51  ;;  %v2509_v51 = vld [vmem:[#allocation10 + $0x70] sm:$0xff] }
 0x564   : > { %4876 = vmatprep.subr.bf16.mxu0 %v4875_v54  ;;  %v2512_v54 = vld [vmem:[#allocation10 + $0x88] sm:$0xff] }
 0x565   : > { %4794 = vmatpush1.bf16.msra.mxu1 %v4793_v59 }
 0x566   : > { %4796 = vmatprep.subr.bf16.mxu1 %v4795_v60 }
 0x569   : > { %4798 = vmatpush1.bf16.msra.mxu1 %v4797_v45 }
 0x56a   : > { %4800 = vmatprep.subr.bf16.mxu1 %v4799_v0  ;;  %v2495_v0 = vld [vmem:[#allocation10] sm:$0xff] }
 0x56d   : > { %4802 = vmatpush1.bf16.msra.mxu1 %v4801_v3  ;;  %v2502_v3 = vld [vmem:[#allocation10 + $0x38] sm:$0xff] }
 0x56e   : > { %4804 = vmatprep.subr.bf16.mxu1 %v4803_v4  ;;  %v4879_v12 = vpack.c.bf16 %v2502_v3, %v2500_v46  ;;  %v3050_v46 = vld [vmem:[#allocation11 + $0x288] sm:$0xff]  ;;  %v2518_v3 = vld [vmem:[#allocation10 + $0xb8] sm:$0xff] }
 0x571   : > { %4806 = vmatpush1.bf16.msra.mxu1 %v4805_v9 }
 0x572   : > { %4808 = vmatprep.subr.bf16.mxu1 %v4807_v10  ;;  %v4877_v10 = vpack.c.bf16 %v2497_v44, %v2495_v0  ;;  %v4891_v0 = vpack.c.bf16 %v2514_v55, %v2512_v54  ;;  %v2513_v44 = vld [vmem:[#allocation10 + $0x90] sm:$0xff]  ;;  %v3066_v54 = vld [vmem:[#allocation11 + $0x308] sm:$0xff]  ;;  %v3068_v55 = vld [vmem:[#allocation11 + $0x318] sm:$0xff] }
 0x575   : > { %4810 = vmatpush1.bf16.msra.mxu1 %v4809_v15 }
 0x576   : > { %5004 = vmatprep.subr.bf16.mxu1 %v5003_v25  ;;  %v3060_v25 = vld [vmem:[#allocation11 + $0x2d8] sm:$0xff] }
 0x578   : > { %2459 = vmatmul.mubr.f32.vlgmr.msra.gmra.mrb[4].mxu1 %v2388_v18  ;;  %v2506_v18 = vld [vmem:[#allocation10 + $0x58] sm:$0xff] }
 0x579   : > { %v4883_v29 = vpack.c.bf16 %v2506_v18, %v2504_v17  ;;  %5006 = vmatpush1.bf16.msra.mxu1 %v5005_v30  ;;  %v2519_v18 = vld [vmem:[#allocation10 + $0xc0] sm:$0xff] }
 0x57a   : > { %5008 = vmatprep.subr.bf16.mxu1 %v5007_v31  ;;  %v2523_v30 = vld [vmem:[#allocation10 + $0xe0] sm:$0xff] }
 0x57d   : > { %5010 = vmatpush1.bf16.msra.mxu1 %v5009_v40  ;;  %v2528_v40 = vld [vmem:[#allocation10 + $0x108] sm:$0xff] }
 0x57e   : > { %5012 = vmatprep.subr.bf16.mxu1 %v5011_v47  ;;  %v4905_v47 = vpack.c.bf16 %v2525_v37, %v2523_v30  ;;  %v2545_v37 = vld [vmem:[#allocation10 + $0x190] sm:$0xff] }
 0x64b   : > { %v2460_v58 = vpop.f32.mrb[4].mxu1 }
 0x64c   : > { %v6089_v59 = vadd.f32 %v2472_v56, %v2460_v58  ;;  %v2462_v60 = vpop.f32.mrb[5].mxu1  ;;  %v5013_v56 = vpack.c.bf16 %v3043_v49, %v3041_v48  ;;  %v2511_v58 = vld [vmem:[#allocation10 + $0x80] sm:$0xff]  ;;  %v5031_v49 = vpack.c.bf16 %v3064_v39, %v3062_v38  ;;  %v2548_v38 = vld [vmem:[#allocation10 + $0x1a8] sm:$0xff]  ;;  %v2550_v39 = vld [vmem:[#allocation10 + $0x1b8] sm:$0xff] }
 0x64d   : > { %v6091_v61 = vadd.f32 %v2476_v57, %v2462_v60  ;;  %v4889_v57 = vpack.c.bf16 %v2509_v51, %v2507_v42  ;;  %v5015_v60 = vpack.c.bf16 %v3048_v53, %v3046_v52  ;;  %v5029_v42 = vpack.c.bf16 %v3059_v33, %v3057_v32  ;;  %v2527_v48 = vld [vmem:[#allocation10 + $0x100] sm:$0xff]  ;;  %v3063_v51 = vld [vmem:[#allocation11 + $0x2f0] sm:$0xff] }
 0x64e   : > { %v2481_v62 = vmax.f32 %v6089_v59, 0.0  ;;  %5014 = vmatpush1.bf16.msra.mxu1 %v5013_v56  ;;  %v2529_v53 = vld [vmem:[#allocation10 + $0x110] sm:$0xff]  ;;  %v2532_v56 = vld [vmem:[#allocation10 + $0x128] sm:$0xff]  ;;  %v5047_v32 = vpack.c.bf16 %v3080_v27, %v3078_v26  ;;  %v2806_v27 = vld [vmem:[#allocation10 + $0x498] sm:$0xff] }
 0x64f   : > { %v2482_v63 = vmax.f32 %v6091_v61, 0.0  ;;  %5016 = vmatprep.subr.bf16.mxu1 %v5015_v60  ;;  %v4909_v60 = vpack.c.bf16 %v2529_v53, %v2527_v48  ;;  %v2552_v48 = vld [vmem:[#allocation10 + $0x1c8] sm:$0xff]  ;;  %v2553_v53 = vld [vmem:[#allocation10 + $0x1d0] sm:$0xff] }
 0x650   : > { %v2485_v43 = vrot.slane %v2481_v62, 7  ;;  %v2804_v26 = vld [vmem:[#allocation10 + $0x488] sm:$0xff] }
 0x651   : > { %v2486_v45 = vrot.slane %v2482_v63, 7 }
 0x652   : > { %2489 = vst [vmem:[#allocation2] sm:$0xfe] %v2485_v43  ;;  %2491 = vst [vmem:[#allocation2 + $0x10] sm:$0x1] %v2485_v43  ;;  %v3045_v43 = vld [vmem:[#allocation11 + $0x260] sm:$0xff] }
 0x653   : > { %2490 = vst [vmem:[#allocation2 + $0x8] sm:$0xfe] %v2486_v45  ;;  %2492 = vst [vmem:[#allocation2 + $0x18] sm:$0x1] %v2486_v45  ;;  %v3047_v45 = vld [vmem:[#allocation11 + $0x270] sm:$0xff] }
 0x659   : > { %v2559_v1 = vld [vmem:[#allocation2] sm:$0xfe]  ;;  %v2561_v2 = vld [vmem:[#allocation2 + $0x10] sm:$0x1] }
 0x65a   : > { %v2560_v4 = vld [vmem:[#allocation2 + $0x8] sm:$0xfe]  ;;  %v2562_v5 = vld [vmem:[#allocation2 + $0x18] sm:$0x1]  ;;  %v2632_v6 = vrot.slane %v2559_v1, 1  ;;  %v2633_v7 = vrot.slane %v2561_v2, 1 }
 0x65b   : > { %v2635_v8 = vrot.slane %v2560_v4, 1  ;;  %v2636_v9 = vrot.slane %v2562_v5, 1  ;;  %v2494_v16 = vld [vmem:[#allocation2 + $0x8] sm:$0xff]  ;;  %v3052_v1 = vld [vmem:[#allocation11 + $0x298] sm:$0xff]  ;;  %v5017_v4 = vpack.c.bf16 %v3047_v45, %v3045_v43  ;;  %v4893_v5 = vpack.c.bf16 %v2513_v44, %v2511_v58  ;;  %v2531_v43 = vld [vmem:[#allocation10 + $0x120] sm:$0xff] }
 0x65c   : > { %v2634_v15 = vsel %vm752_vm0, %v2632_v6, %v2633_v7  ;;  %v2516_v2 = vld [vmem:[#allocation10 + $0xa8] sm:$0xff]  ;;  %v2515_v6 = vld [vmem:[#allocation10 + $0xa0] sm:$0xff]  ;;  %v5019_v7 = vpack.c.bf16 %v3052_v1, %v3050_v46  ;;  %v5035_v45 = vpack.c.bf16 %v3068_v55, %v3066_v54  ;;  %v3067_v44 = vld [vmem:[#allocation11 + $0x310] sm:$0xff] }
 0x65d   : > { %v2637_v11 = vsel %vm752_vm0, %v2635_v8, %v2636_v9  ;;  %v3049_v8 = vld [vmem:[#allocation11 + $0x280] sm:$0xff]  ;;  %v3051_v9 = vld [vmem:[#allocation11 + $0x290] sm:$0xff]  ;;  %5018 = vmatpush1.bf16.msra.mxu1 %v5017_v4  ;;  %v2536_v4 = vld [vmem:[#allocation10 + $0x148] sm:$0xff] }
 0x65e   : > { %2704 = vmatprep.mubr.f32.mxu0 %v2637_v11  ;;  %v2517_v11 = vld [vmem:[#allocation10 + $0xb0] sm:$0xff]  ;;  %5020 = vmatprep.subr.bf16.mxu1 %v5019_v7  ;;  %v2556_v54 = vld [vmem:[#allocation10 + $0x1e8] sm:$0xff]  ;;  %v2558_v55 = vld [vmem:[#allocation10 + $0x1f8] sm:$0xff] }
 0x65f   : > { %2705 = vmatmul.mubr.f32.vlgmr.msra.gmra.mrb[4].mxu0 %v2634_v15  ;;  %v2522_v15 = vld [vmem:[#allocation10 + $0xd8] sm:$0xff]  ;;  %v4897_v17 = vpack.c.bf16 %v2517_v11, %v2515_v6  ;;  %v2533_v1 = vld [vmem:[#allocation10 + $0x130] sm:$0xff] }
 0x660   : > { %4878 = vmatpush1.bf16.msra.mxu0 %v4877_v10  ;;  %2775 = vmatprep.mubr.f32.mxu0 %v2494_v16  ;;  %v4895_v10 = vpack.c.bf16 %v2518_v3, %v2516_v2  ;;  %v5021_v16 = vpack.c.bf16 %v3051_v9, %v3049_v8  ;;  %v4899_v22 = vpack.c.bf16 %v2522_v15, %v2520_v14  ;;  %v3070_v2 = vld [vmem:[#allocation11 + $0x328] sm:$0xff]  ;;  %v3072_v3 = vld [vmem:[#allocation11 + $0x338] sm:$0xff]  ;;  %v2535_v8 = vld [vmem:[#allocation10 + $0x140] sm:$0xff] }
 0x661   : > { %4880 = vmatprep.subr.bf16.mxu0 %v4879_v12  ;;  %v3054_v12 = vld [vmem:[#allocation11 + $0x2a8] sm:$0xff]  ;;  %v4913_v7 = vpack.c.bf16 %v2533_v1, %v2531_v43  ;;  %v5039_v9 = vpack.c.bf16 %v3072_v3, %v3070_v2  ;;  %v3071_v11 = vld [vmem:[#allocation11 + $0x330] sm:$0xff]  ;;  %v3076_v15 = vld [vmem:[#allocation11 + $0x358] sm:$0xff] }
 0x662   : > { %v5023_v19 = vpack.c.bf16 %v3056_v13, %v3054_v12  ;;  %5022 = vmatpush1.bf16.msra.mxu1 %v5021_v16  ;;  %v2537_v13 = vld [vmem:[#allocation10 + $0x150] sm:$0xff]  ;;  %v3074_v14 = vld [vmem:[#allocation11 + $0x348] sm:$0xff]  ;;  %v2787_v2 = vld [vmem:[#allocation10 + $0x400] sm:$0xff] }
 0x663   : > { %v2540_v16 = vld [vmem:[#allocation10 + $0x168] sm:$0xff]  ;;  %v5043_v21 = vpack.c.bf16 %v3076_v15, %v3074_v14  ;;  %v2789_v3 = vld [vmem:[#allocation10 + $0x410] sm:$0xff]  ;;  %v2798_v14 = vld [vmem:[#allocation10 + $0x458] sm:$0xff] }
 0x664   : > { %4882 = vmatpush1.bf16.msra.mxu0 %v4881_v24  ;;  %v3058_v24 = vld [vmem:[#allocation11 + $0x2c8] sm:$0xff]  ;;  %5024 = vmatprep.subr.bf16.mxu1 %v5023_v19  ;;  %v4917_v19 = vpack.c.bf16 %v2537_v13, %v2535_v8  ;;  %v4941_v8 = vpack.c.bf16 %v2789_v3, %v2787_v2  ;;  %v2823_v2 = vld [vmem:[#allocation10 + $0x520] sm:$0xff]  ;;  %v2825_v3 = vld [vmem:[#allocation10 + $0x530] sm:$0xff] }
 0x665   : > { %4884 = vmatprep.subr.bf16.mxu0 %v4883_v29  ;;  %v4901_v29 = vpack.c.bf16 %v2521_v23, %v2519_v18  ;;  %v5027_v31 = vpack.c.bf16 %v3060_v25, %v3058_v24  ;;  %v3075_v23 = vld [vmem:[#allocation11 + $0x350] sm:$0xff]  ;;  %v2788_v43 = vld [vmem:[#allocation10 + $0x408] sm:$0xff] }
 0x666   : > { %5026 = vmatpush1.bf16.msra.mxu1 %v5025_v28  ;;  %v2541_v25 = vld [vmem:[#allocation10 + $0x170] sm:$0xff]  ;;  %v2544_v28 = vld [vmem:[#allocation10 + $0x188] sm:$0xff] }
 0x667   : > { %5028 = vmatprep.subr.bf16.mxu1 %v5027_v31  ;;  %v4921_v31 = vpack.c.bf16 %v2541_v25, %v2539_v20  ;;  %v2796_v13 = vld [vmem:[#allocation10 + $0x448] sm:$0xff]  ;;  %v2801_v25 = vld [vmem:[#allocation10 + $0x470] sm:$0xff] }
 0x668   : > { %4886 = vmatpush1.bf16.msra.mxu0 %v4885_v41  ;;  %v2530_v41 = vld [vmem:[#allocation10 + $0x118] sm:$0xff]  ;;  %v2800_v20 = vld [vmem:[#allocation10 + $0x468] sm:$0xff] }
 0x669   : > { %4888 = vmatprep.subr.bf16.mxu0 %v4887_v50  ;;  %v3061_v50 = vld [vmem:[#allocation11 + $0x2e0] sm:$0xff]  ;;  %v4907_v52 = vpack.c.bf16 %v2530_v41, %v2528_v40  ;;  %v4927_v41 = vpack.c.bf16 %v2550_v39, %v2548_v38  ;;  %v2809_v39 = vld [vmem:[#allocation10 + $0x4b0] sm:$0xff] }
 0x66a   : > { %5030 = vmatpush1.bf16.msra.mxu1 %v5029_v42  ;;  %v5033_v58 = vpack.c.bf16 %v3063_v51, %v3061_v50  ;;  %v2547_v42 = vld [vmem:[#allocation10 + $0x1a0] sm:$0xff] }
 0x66b   : > { %5032 = vmatprep.subr.bf16.mxu1 %v5031_v49  ;;  %v2554_v49 = vld [vmem:[#allocation10 + $0x1d8] sm:$0xff]  ;;  %v2807_v38 = vld [vmem:[#allocation10 + $0x4a0] sm:$0xff] }
 0x66c   : > { %4890 = vmatpush1.bf16.msra.mxu0 %v4889_v57  ;;  %v2534_v57 = vld [vmem:[#allocation10 + $0x138] sm:$0xff]  ;;  %v4931_v51 = vpack.c.bf16 %v2554_v49, %v2552_v48  ;;  %v2811_v48 = vld [vmem:[#allocation10 + $0x4c0] sm:$0xff]  ;;  %v2813_v49 = vld [vmem:[#allocation10 + $0x4d0] sm:$0xff] }
 0x66d   : > { %4892 = vmatprep.subr.bf16.mxu0 %v4891_v0  ;;  %v3065_v0 = vld [vmem:[#allocation11 + $0x300] sm:$0xff]  ;;  %v4911_v46 = vpack.c.bf16 %v2534_v57, %v2532_v56  ;;  %v4935_v57 = vpack.c.bf16 %v2558_v55, %v2556_v54  ;;  %v2817_v55 = vld [vmem:[#allocation10 + $0x4f0] sm:$0xff] }
 0x66e   : > { %5034 = vmatpush1.bf16.msra.mxu1 %v5033_v58  ;;  %v5037_v6 = vpack.c.bf16 %v3067_v44, %v3065_v0  ;;  %v2555_v58 = vld [vmem:[#allocation10 + $0x1e0] sm:$0xff]  ;;  %v2783_v44 = vld [vmem:[#allocation2 + $0x8] sm:$0xfc] }
 0x66f   : > { %5036 = vmatprep.subr.bf16.mxu1 %v5035_v45  ;;  %v2790_v45 = vld [vmem:[#allocation10 + $0x418] sm:$0xff]  ;;  %v2815_v54 = vld [vmem:[#allocation10 + $0x4e0] sm:$0xff] }
 0x670   : > { %4894 = vmatpush1.bf16.msra.mxu0 %v4893_v5  ;;  %v2538_v5 = vld [vmem:[#allocation10 + $0x158] sm:$0xff]  ;;  %v4939_v1 = vpack.c.bf16 %v2790_v45, %v2788_v43  ;;  %v2819_v43 = vld [vmem:[#allocation10 + $0x500] sm:$0xff]  ;;  %v2821_v45 = vld [vmem:[#allocation10 + $0x510] sm:$0xff] }
 0x671   : > { %4896 = vmatprep.subr.bf16.mxu0 %v4895_v10  ;;  %v3069_v10 = vld [vmem:[#allocation11 + $0x320] sm:$0xff]  ;;  %v4915_v12 = vpack.c.bf16 %v2538_v5, %v2536_v4  ;;  %v2792_v4 = vld [vmem:[#allocation10 + $0x428] sm:$0xff]  ;;  %v2794_v5 = vld [vmem:[#allocation10 + $0x438] sm:$0xff] }
 0x672   : > { %5038 = vmatpush1.bf16.msra.mxu1 %v5037_v6  ;;  %v5041_v18 = vpack.c.bf16 %v3071_v11, %v3069_v10  ;;  %v2858_v6 = vrot.slane %v2783_v44, 2  ;;  %v2791_v10 = vld [vmem:[#allocation10 + $0x420] sm:$0xff]  ;;  %v2793_v11 = vld [vmem:[#allocation10 + $0x430] sm:$0xff]  ;;  %v2826_v44 = vld [vmem:[#allocation10 + $0x538] sm:$0xff] }
 0x673   : > { %5040 = vmatprep.subr.bf16.mxu1 %v5039_v9  ;;  %v4943_v9 = vpack.c.bf16 %v2794_v5, %v2792_v4  ;;  %v2828_v4 = vld [vmem:[#allocation10 + $0x548] sm:$0xff]  ;;  %v2830_v5 = vld [vmem:[#allocation10 + $0x558] sm:$0xff] }
 0x674   : > { %4898 = vmatpush1.bf16.msra.mxu0 %v4897_v17  ;;  %v2542_v17 = vld [vmem:[#allocation10 + $0x178] sm:$0xff] }
 0x675   : > { %4900 = vmatprep.subr.bf16.mxu0 %v4899_v22  ;;  %v3073_v22 = vld [vmem:[#allocation11 + $0x340] sm:$0xff]  ;;  %v4919_v24 = vpack.c.bf16 %v2542_v17, %v2540_v16  ;;  %v4945_v16 = vpack.c.bf16 %v2793_v11, %v2791_v10  ;;  %v4947_v17 = vpack.c.bf16 %v2798_v14, %v2796_v13  ;;  %v2832_v10 = vld [vmem:[#allocation10 + $0x568] sm:$0xff]  ;;  %v2834_v11 = vld [vmem:[#allocation10 + $0x578] sm:$0xff] }
 0x676   : > { %5042 = vmatpush1.bf16.msra.mxu1 %v5041_v18  ;;  %v5045_v30 = vpack.c.bf16 %v3075_v23, %v3073_v22  ;;  %v2795_v18 = vld [vmem:[#allocation10 + $0x440] sm:$0xff]  ;;  %v4983_v13 = vpack.c.bf16 %v2834_v11, %v2832_v10 }
 0x677   : > { %5044 = vmatprep.subr.bf16.mxu1 %v5043_v21  ;;  %v2802_v21 = vld [vmem:[#allocation10 + $0x478] sm:$0xff]  ;;  %v2831_v14 = vld [vmem:[#allocation10 + $0x560] sm:$0xff] }
 0x678   : > { %4902 = vmatpush1.bf16.msra.mxu0 %v4901_v29  ;;  %v2546_v29 = vld [vmem:[#allocation10 + $0x198] sm:$0xff]  ;;  %v4951_v23 = vpack.c.bf16 %v2802_v21, %v2800_v20  ;;  %v2835_v20 = vld [vmem:[#allocation10 + $0x580] sm:$0xff]  ;;  %v2837_v21 = vld [vmem:[#allocation10 + $0x590] sm:$0xff] }
 0x679   : > { %4904 = vmatprep.subr.bf16.mxu0 %v4903_v35  ;;  %v4923_v33 = vpack.c.bf16 %v2546_v29, %v2544_v28  ;;  %v2543_v35 = vld [vmem:[#allocation10 + $0x180] sm:$0xff]  ;;  %v4955_v29 = vpack.c.bf16 %v2806_v27, %v2804_v26  ;;  %v2841_v27 = vld [vmem:[#allocation10 + $0x5b0] sm:$0xff] }
 0x67a   : > { %5046 = vmatpush1.bf16.msra.mxu1 %v5045_v30  ;;  %v4925_v40 = vpack.c.bf16 %v2545_v37, %v2543_v35  ;;  %v2803_v30 = vld [vmem:[#allocation10 + $0x480] sm:$0xff] }
 0x67b   : > { %5048 = vmatprep.subr.bf16.mxu1 %v5047_v32  ;;  %v2808_v32 = vld [vmem:[#allocation10 + $0x4a8] sm:$0xff]  ;;  %v2839_v26 = vld [vmem:[#allocation10 + $0x5a0] sm:$0xff] }
 0x67c   : > { %4906 = vmatpush1.bf16.msra.mxu0 %v4905_v47  ;;  %v2549_v47 = vld [vmem:[#allocation10 + $0x1b0] sm:$0xff] }
 0x67d   : > { %4908 = vmatprep.subr.bf16.mxu0 %v4907_v52  ;;  %v4929_v50 = vpack.c.bf16 %v2549_v47, %v2547_v42  ;;  %v2551_v52 = vld [vmem:[#allocation10 + $0x1c0] sm:$0xff]  ;;  %v4961_v42 = vpack.c.bf16 %v2809_v39, %v2807_v38 }
 0x67e   : > { %v4933_v56 = vpack.c.bf16 %v2553_v53, %v2551_v52  ;;  %v4965_v52 = vpack.c.bf16 %v2813_v49, %v2811_v48 }
 0x680   : > { %4910 = vmatpush1.bf16.msra.mxu0 %v4909_v60  ;;  %v2557_v60 = vld [vmem:[#allocation10 + $0x1f0] sm:$0xff] }
 0x681   : > { %4912 = vmatprep.subr.bf16.mxu0 %v4911_v46  ;;  %v4937_v0 = vpack.c.bf16 %v2557_v60, %v2555_v58  ;;  %v2785_v46 = vld [vmem:[#allocation2 + $0x18] sm:$0x3]  ;;  %v4969_v58 = vpack.c.bf16 %v2817_v55, %v2815_v54  ;;  %v3082_v55 = vld [vmem:[#allocation11 + $0x388] sm:$0xff] }
 0x684   : > { %4914 = vmatpush1.bf16.msra.mxu0 %v4913_v7  ;;  %v2859_v7 = vrot.slane %v2785_v46, 2  ;;  %v4973_v46 = vpack.c.bf16 %v2821_v45, %v2819_v43  ;;  %v3086_v45 = vld [vmem:[#allocation11 + $0x3a8] sm:$0xff] }
 0x685   : > { %4916 = vmatprep.subr.bf16.mxu0 %v4915_v12  ;;  %v2493_v12 = vld [vmem:[#allocation2] sm:$0xff] }
 0x686   : > { %v2860_v15 = vsel %vm976_vm1, %v2858_v6, %v2859_v7  ;;  %v4977_v6 = vpack.c.bf16 %v2825_v3, %v2823_v2  ;;  %v4979_v7 = vpack.c.bf16 %v2830_v5, %v2828_v4  ;;  %v3090_v2 = vld [vmem:[#allocation11 + $0x3c8] sm:$0xff]  ;;  %v3092_v4 = vld [vmem:[#allocation11 + $0x3d8] sm:$0xff]  ;;  %v3089_v5 = vld [vmem:[#allocation11 + $0x3c0] sm:$0xff] }
 0x688   : > { %4918 = vmatpush1.bf16.msra.mxu0 %v4917_v19  ;;  %v2797_v19 = vld [vmem:[#allocation10 + $0x450] sm:$0xff] }
 0x689   : > { %4920 = vmatprep.subr.bf16.mxu0 %v4919_v24  ;;  %v4949_v22 = vpack.c.bf16 %v2797_v19, %v2795_v18  ;;  %v2799_v24 = vld [vmem:[#allocation10 + $0x460] sm:$0xff] }
 0x68a   : > { %v4953_v28 = vpack.c.bf16 %v2801_v25, %v2799_v24  ;;  %v4989_v24 = vpack.c.bf16 %v2837_v21, %v2835_v20 }
 0x68c   : > { %4922 = vmatpush1.bf16.msra.mxu0 %v4921_v31  ;;  %v2805_v31 = vld [vmem:[#allocation10 + $0x490] sm:$0xff] }
 0x68d   : > { %4924 = vmatprep.subr.bf16.mxu0 %v4923_v33  ;;  %v2810_v33 = vld [vmem:[#allocation10 + $0x4b8] sm:$0xff]  ;;  %v4957_v35 = vpack.c.bf16 %v2805_v31, %v2803_v30  ;;  %v4993_v30 = vpack.c.bf16 %v2841_v27, %v2839_v26 }
 0x68e   : > { %v4959_v37 = vpack.c.bf16 %v2810_v33, %v2808_v32  ;;  %v2843_v32 = vld [vmem:[#allocation10 + $0x5c0] sm:$0xff]  ;;  %v2845_v33 = vld [vmem:[#allocation10 + $0x5d0] sm:$0xff] }
 0x68f   : > { %v4997_v38 = vpack.c.bf16 %v2845_v33, %v2843_v32 }
 0x690   : > { %4926 = vmatpush1.bf16.msra.mxu0 %v4925_v40  ;;  %v2812_v40 = vld [vmem:[#allocation10 + $0x4c8] sm:$0xff] }
 0x691   : > { %4928 = vmatprep.subr.bf16.mxu0 %v4927_v41  ;;  %v2814_v41 = vld [vmem:[#allocation10 + $0x4d8] sm:$0xff] }
 0x692   : > { %v4963_v47 = vpack.c.bf16 %v2814_v41, %v2812_v40  ;;  %v2847_v40 = vld [vmem:[#allocation10 + $0x5e0] sm:$0xff]  ;;  %v2849_v41 = vld [vmem:[#allocation10 + $0x5f0] sm:$0xff] }
 0x693   : > { %v5001_v48 = vpack.c.bf16 %v2849_v41, %v2847_v40 }
 0x694   : > { %4930 = vmatpush1.bf16.msra.mxu0 %v4929_v50  ;;  %v2816_v50 = vld [vmem:[#allocation10 + $0x4e8] sm:$0xff] }
 0x695   : > { %4932 = vmatprep.subr.bf16.mxu0 %v4931_v51  ;;  %v2818_v51 = vld [vmem:[#allocation10 + $0x4f8] sm:$0xff] }
 0x696   : > { %v4967_v53 = vpack.c.bf16 %v2818_v51, %v2816_v50 }
 0x698   : > { %4934 = vmatpush1.bf16.msra.mxu0 %v4933_v56  ;;  %v2820_v56 = vld [vmem:[#allocation10 + $0x508] sm:$0xff] }
 0x699   : > { %4936 = vmatprep.subr.bf16.mxu0 %v4935_v57  ;;  %v2822_v57 = vld [vmem:[#allocation10 + $0x518] sm:$0xff] }
 0x69a   : > { %v4971_v60 = vpack.c.bf16 %v2822_v57, %v2820_v56  ;;  %v3084_v56 = vld [vmem:[#allocation11 + $0x398] sm:$0xff] }
 0x69b   : > { %v5051_v57 = vpack.c.bf16 %v3084_v56, %v3082_v55  ;;  %v2975_v55 = vld [vmem:[#allocation11 + $0x58] sm:$0xff]  ;;  %v2972_v56 = vld [vmem:[#allocation11 + $0x40] sm:$0xff] }
 0x69c   : > { %4938 = vmatpush1.bf16.msra.mxu0 %v4937_v0  ;;  %v2824_v0 = vld [vmem:[#allocation10 + $0x528] sm:$0xff] }
 0x69d   : > { %4940 = vmatprep.subr.bf16.mxu0 %v4939_v1  ;;  %v4975_v1 = vpack.c.bf16 %v2826_v44, %v2824_v0  ;;  %v3088_v0 = vld [vmem:[#allocation11 + $0x3b8] sm:$0xff] }
 0x69e   : > { %v5055_v44 = vpack.c.bf16 %v3088_v0, %v3086_v45 }
 0x69f   : > { %2776 = vmatmul.mubr.f32.vlgmr.msra.gmra.mrb[4].mxu0 %v2493_v12 }
 0x6a0   : > { %4942 = vmatpush1.bf16.msra.mxu0 %v4941_v8  ;;  %2927 = vmatprep.mubr.f32.mxu0 %v2860_v15  ;;  %v2827_v8 = vld [vmem:[#allocation10 + $0x540] sm:$0xff]  ;;  %v2833_v15 = vld [vmem:[#allocation10 + $0x570] sm:$0xff] }
 0x6a1   : > { %4944 = vmatprep.subr.bf16.mxu0 %v4943_v9  ;;  %v2829_v9 = vld [vmem:[#allocation10 + $0x550] sm:$0xff]  ;;  %v4985_v18 = vpack.c.bf16 %v2833_v15, %v2831_v14  ;;  %v2965_v15 = vld [vmem:[#allocation11 + $0x8] sm:$0xff] }
 0x6a2   : > { %v4981_v12 = vpack.c.bf16 %v2829_v9, %v2827_v8  ;;  %v3094_v8 = vld [vmem:[#allocation11 + $0x3e8] sm:$0xff]  ;;  %v3096_v9 = vld [vmem:[#allocation11 + $0x3f8] sm:$0xff] }
 0x6a3   : > { %v5063_v11 = vpack.c.bf16 %v3096_v9, %v3094_v8  ;;  %v2977_v8 = vld [vmem:[#allocation11 + $0x68] sm:$0xff]  ;;  %v2979_v9 = vld [vmem:[#allocation11 + $0x78] sm:$0xff] }
 0x6a4   : > { %4946 = vmatpush1.bf16.msra.mxu0 %v4945_v16  ;;  %v2836_v16 = vld [vmem:[#allocation10 + $0x588] sm:$0xff] }
 0x6a5   : > { %4948 = vmatprep.subr.bf16.mxu0 %v4947_v17  ;;  %v2838_v17 = vld [vmem:[#allocation10 + $0x598] sm:$0xff] }
 0x6a6   : > { %v4987_v19 = vpack.c.bf16 %v2838_v17, %v2836_v16  ;;  %v2967_v16 = vld [vmem:[#allocation11 + $0x18] sm:$0xff] }
 0x6a7   : > { %v5067_v17 = vpack.c.bf16 %v2967_v16, %v2965_v15  ;;  %v3512_v15 = vld [vmem:[#allocation13 + $0x240] sm:$0xff]  ;;  %v3514_v16 = vld [vmem:[#allocation13 + $0x250] sm:$0xff] }
 0x6a8   : > { %4950 = vmatpush1.bf16.msra.mxu0 %v4949_v22  ;;  %v2840_v22 = vld [vmem:[#allocation10 + $0x5a8] sm:$0xff] }
 0x6a9   : > { %4952 = vmatprep.subr.bf16.mxu0 %v4951_v23  ;;  %v2842_v23 = vld [vmem:[#allocation10 + $0x5b8] sm:$0xff] }
 0x6aa   : > { %v4991_v25 = vpack.c.bf16 %v2842_v23, %v2840_v22 }
 0x6ac   : > { %4954 = vmatpush1.bf16.msra.mxu0 %v4953_v28  ;;  %v2844_v28 = vld [vmem:[#allocation10 + $0x5c8] sm:$0xff] }
 0x6ad   : > { %4956 = vmatprep.subr.bf16.mxu0 %v4955_v29  ;;  %v2846_v29 = vld [vmem:[#allocation10 + $0x5d8] sm:$0xff] }
 0x6ae   : > { %v4995_v31 = vpack.c.bf16 %v2846_v29, %v2844_v28  ;;  %v2964_v29 = vld [vmem:[#allocation11] sm:$0xff] }
 0x6b0   : > { %4958 = vmatpush1.bf16.msra.mxu0 %v4957_v35  ;;  %v2848_v35 = vld [vmem:[#allocation10 + $0x5e8] sm:$0xff] }
 0x6b1   : > { %4960 = vmatprep.subr.bf16.mxu0 %v4959_v37  ;;  %v2850_v37 = vld [vmem:[#allocation10 + $0x5f8] sm:$0xff] }
 0x6b2   : > { %v4999_v39 = vpack.c.bf16 %v2850_v37, %v2848_v35  ;;  %v2971_v35 = vld [vmem:[#allocation11 + $0x38] sm:$0xff] }
 0x6b4   : > { %4962 = vmatpush1.bf16.msra.mxu0 %v4961_v42  ;;  %v2782_v42 = vld [vmem:[#allocation2] sm:$0xfc] }
 0x6b5   : > { %4964 = vmatprep.subr.bf16.mxu0 %v4963_v47  ;;  %v2784_v47 = vld [vmem:[#allocation2 + $0x10] sm:$0x3]  ;;  %v2855_v49 = vrot.slane %v2782_v42, 2 }
 0x6b6   : > { %v2856_v50 = vrot.slane %v2784_v47, 2 }
 0x6b8   : > { %4966 = vmatpush1.bf16.msra.mxu0 %v4965_v52  ;;  %v2857_v51 = vsel %vm976_vm1, %v2855_v49, %v2856_v50  ;;  %v3077_v52 = vld [vmem:[#allocation11 + $0x360] sm:$0xff] }
 0x6b9   : > { %4968 = vmatprep.subr.bf16.mxu0 %v4967_v53  ;;  %v3079_v53 = vld [vmem:[#allocation11 + $0x370] sm:$0xff]  ;;  %v2968_v50 = vld [vmem:[#allocation11 + $0x20] sm:$0xff] }
 0x6ba   : > { %v5049_v54 = vpack.c.bf16 %v3079_v53, %v3077_v52 }
 0x6bc   : > { %4970 = vmatpush1.bf16.msra.mxu0 %v4969_v58  ;;  %5050 = vmatpush1.bf16.msra.mxu1 %v5049_v54  ;;  %v3081_v58 = vld [vmem:[#allocation11 + $0x380] sm:$0xff]  ;;  %v2973_v54 = vld [vmem:[#allocation11 + $0x48] sm:$0xff] }
 0x6bd   : > { %4972 = vmatprep.subr.bf16.mxu0 %v4971_v60  ;;  %v3083_v60 = vld [vmem:[#allocation11 + $0x390] sm:$0xff]  ;;  %5052 = vmatprep.subr.bf16.mxu1 %v5051_v57 }
 0x6be   : > { %v5053_v43 = vpack.c.bf16 %v3083_v60, %v3081_v58  ;;  %v2974_v57 = vld [vmem:[#allocation11 + $0x50] sm:$0xff]  ;;  %v3505_v58 = vld [vmem:[#allocation13 + $0x208] sm:$0xff]  ;;  %v3507_v60 = vld [vmem:[#allocation13 + $0x218] sm:$0xff] }
 0x6bf   : > { %v5195_v0 = vpack.c.bf16 %v3507_v60, %v3505_v58  ;;  %v3526_v58 = vld [vmem:[#allocation13 + $0x2b0] sm:$0xff] }
 0x6c0   : > { %4974 = vmatpush1.bf16.msra.mxu0 %v4973_v46  ;;  %5054 = vmatpush1.bf16.msra.mxu1 %v5053_v43  ;;  %v3085_v46 = vld [vmem:[#allocation11 + $0x3a0] sm:$0xff] }
 0x6c1   : > { %4976 = vmatprep.subr.bf16.mxu0 %v4975_v1  ;;  %v3087_v1 = vld [vmem:[#allocation11 + $0x3b0] sm:$0xff]  ;;  %5056 = vmatprep.subr.bf16.mxu1 %v5055_v44  ;;  %v3504_v43 = vld [vmem:[#allocation13 + $0x200] sm:$0xff] }
 0x6c2   : > { %v5057_v3 = vpack.c.bf16 %v3087_v1, %v3085_v46  ;;  %v3506_v44 = vld [vmem:[#allocation13 + $0x210] sm:$0xff]  ;;  %v3509_v46 = vld [vmem:[#allocation13 + $0x228] sm:$0xff]  ;;  %v3511_v1 = vld [vmem:[#allocation13 + $0x238] sm:$0xff] }
 0x6c4   : > { %4978 = vmatpush1.bf16.msra.mxu0 %v4977_v6  ;;  %v3091_v6 = vld [vmem:[#allocation11 + $0x3d0] sm:$0xff]  ;;  %5058 = vmatpush1.bf16.msra.mxu1 %v5057_v3  ;;  %v5197_v3 = vpack.c.bf16 %v3506_v44, %v3504_v43  ;;  %v2993_v44 = vld [vmem:[#allocation11 + $0xe8] sm:$0xff] }
 0x6c5   : > { %4980 = vmatprep.subr.bf16.mxu0 %v4979_v7  ;;  %v5059_v7 = vpack.c.bf16 %v3092_v4, %v3090_v2  ;;  %v5061_v10 = vpack.c.bf16 %v3091_v6, %v3089_v5  ;;  %v5075_v2 = vpack.c.bf16 %v2975_v55, %v2973_v54  ;;  %v5199_v4 = vpack.c.bf16 %v3511_v1, %v3509_v46  ;;  %v3508_v5 = vld [vmem:[#allocation13 + $0x220] sm:$0xff]  ;;  %v3510_v6 = vld [vmem:[#allocation13 + $0x230] sm:$0xff]  ;;  %v2995_v46 = vld [vmem:[#allocation11 + $0xf8] sm:$0xff] }
 0x6c6   : > { %v2988_v55 = vld [vmem:[#allocation11 + $0xc0] sm:$0xff]  ;;  %v2990_v43 = vld [vmem:[#allocation11 + $0xd0] sm:$0xff] }
 0x6c7   : > { %5060 = vmatprep.subr.bf16.mxu1 %v5059_v7  ;;  %v3513_v7 = vld [vmem:[#allocation13 + $0x248] sm:$0xff] }
 0x6c8   : > { %4982 = vmatpush1.bf16.msra.mxu0 %v4981_v12  ;;  %v3093_v12 = vld [vmem:[#allocation11 + $0x3e0] sm:$0xff]  ;;  %5062 = vmatpush1.bf16.msra.mxu1 %v5061_v10  ;;  %v3515_v10 = vld [vmem:[#allocation13 + $0x258] sm:$0xff] }
 0x6c9   : > { %4984 = vmatprep.subr.bf16.mxu0 %v4983_v13  ;;  %v3095_v13 = vld [vmem:[#allocation11 + $0x3f0] sm:$0xff]  ;;  %5064 = vmatprep.subr.bf16.mxu1 %v5063_v11  ;;  %v5201_v11 = vpack.c.bf16 %v3510_v6, %v3508_v5  ;;  %v3528_v5 = vld [vmem:[#allocation13 + $0x2c0] sm:$0xff] }
 0x6ca   : > { %v5065_v14 = vpack.c.bf16 %v3095_v13, %v3093_v12  ;;  %v5077_v12 = vpack.c.bf16 %v2974_v57, %v2972_v56  ;;  %v2976_v13 = vld [vmem:[#allocation11 + $0x60] sm:$0xff]  ;;  %v3530_v6 = vld [vmem:[#allocation13 + $0x2d0] sm:$0xff] }
 0x6cb   : > { %v3524_v57 = vld [vmem:[#allocation13 + $0x2a0] sm:$0xff] }
 0x6cc   : > { %4986 = vmatpush1.bf16.msra.mxu0 %v4985_v18  ;;  %5066 = vmatpush1.bf16.msra.mxu1 %v5065_v14  ;;  %v2936_v18 = vld [vmem:[%s6174_s30] sm:$0x3]  ;;  %v5203_v14 = vpack.c.bf16 %v3515_v10, %v3513_v7  ;;  %v5217_v1 = vpack.c.bf16 %v3526_v58, %v3524_v57  ;;  %v5095_v7 = vpack.c.bf16 %v2995_v46, %v2993_v44  ;;  %v3535_v10 = vld [vmem:[#allocation13 + $0x2f8] sm:$0xff]  ;;  %v3013_v44 = vld [vmem:[#allocation11 + $0x188] sm:$0xff] }
 0x6cd   : > { %4988 = vmatprep.subr.bf16.mxu0 %v4987_v19  ;;  %5068 = vmatprep.subr.bf16.mxu1 %v5067_v17  ;;  %v2941_v19 = vrot.slane %v2936_v18, %v6039_v34  ;;  %v2945_v20 = vrot.slane %v2936_v18, %v6044_v36  ;;  %v5079_v17 = vpack.c.bf16 %v2979_v9, %v2977_v8  ;;  %v2978_v18 = vld [vmem:[#allocation11 + $0x70] sm:$0xff]  ;;  %v3533_v9 = vld [vmem:[#allocation13 + $0x2e8] sm:$0xff]  ;;  %v3544_v58 = vld [vmem:[#allocation13 + $0x340] sm:$0xff] }
 0x6ce   : > { %v2994_v8 = vld [vmem:[#allocation11 + $0xf0] sm:$0xff]  ;;  %v3015_v46 = vld [vmem:[#allocation11 + $0x198] sm:$0xff] }
 0x6d0   : > { %4990 = vmatpush1.bf16.msra.mxu0 %v4989_v24 }
 0x6d1   : > { %4992 = vmatprep.subr.bf16.mxu0 %v4991_v25 }
 0x6d4   : > { %4994 = vmatpush1.bf16.msra.mxu0 %v4993_v30  ;;  %v2966_v30 = vld [vmem:[#allocation11 + $0x10] sm:$0xff] }
 0x6d5   : > { %4996 = vmatprep.subr.bf16.mxu0 %v4995_v31  ;;  %v2969_v31 = vld [vmem:[#allocation11 + $0x28] sm:$0xff]  ;;  %v5069_v47 = vpack.c.bf16 %v2966_v30, %v2964_v29  ;;  %v2982_v30 = vld [vmem:[#allocation11 + $0x90] sm:$0xff] }
 0x6d6   : > { %v5071_v49 = vpack.c.bf16 %v2971_v35, %v2969_v31  ;;  %v3521_v31 = vld [vmem:[#allocation13 + $0x288] sm:$0xff]  ;;  %v2987_v35 = vld [vmem:[#allocation11 + $0xb8] sm:$0xff] }
 0x6d8   : > { %4998 = vmatpush1.bf16.msra.mxu0 %v4997_v38 }
 0x6d9   : > { %5000 = vmatprep.subr.bf16.mxu0 %v4999_v39 }
 0x6dc   : > { %5002 = vmatpush1.bf16.msra.mxu0 %v5001_v48 }
 0x6dd   : > { %5196 = vmatprep.subr.bf16.mxu0 %v5195_v0  ;;  %v3531_v0 = vld [vmem:[#allocation13 + $0x2d8] sm:$0xff] }
 0x6df   : > { %2928 = vmatmul.mubr.f32.vlgmr.msra.gmra.mrb[4].mxu0 %v2857_v51  ;;  %v2970_v51 = vld [vmem:[#allocation11 + $0x30] sm:$0xff] }
 0x6e0   : > { %v5073_v45 = vpack.c.bf16 %v2970_v51, %v2968_v50  ;;  %5198 = vmatpush1.bf16.msra.mxu0 %v5197_v3  ;;  %v3527_v50 = vld [vmem:[#allocation13 + $0x2b8] sm:$0xff]  ;;  %v2989_v51 = vld [vmem:[#allocation11 + $0xc8] sm:$0xff]  ;;  %v2992_v3 = vld [vmem:[#allocation11 + $0xe0] sm:$0xff] }
 0x6e1   : > { %5200 = vmatprep.subr.bf16.mxu0 %v5199_v4 }
 0x6e4   : > { %5202 = vmatpush1.bf16.msra.mxu0 %v5201_v11  ;;  %v2997_v11 = vld [vmem:[#allocation11 + $0x108] sm:$0xff] }
 0x6e5   : > { %5204 = vmatprep.subr.bf16.mxu0 %v5203_v14  ;;  %v5097_v14 = vpack.c.bf16 %v2994_v8, %v2992_v3  ;;  %v5115_v3 = vpack.c.bf16 %v3015_v46, %v3013_v44  ;;  %v3272_v46 = vld [vmem:[#allocation11 + $0x480] sm:$0xff] }
 0x7b2   : > { %v2929_v21 = vpop.f32.mrb[4].mxu0 }
 0x7b3   : > { %v2948_v22 = vadd.f32 %v2941_v19, %v2929_v21  ;;  %v2931_v23 = vpop.f32.mrb[5].mxu0  ;;  %v3517_v19 = vld [vmem:[#allocation13 + $0x268] sm:$0xff] }
 0x7b4   : > { %v2949_v24 = vadd.f32 %v2945_v20, %v2931_v23  ;;  %v3519_v20 = vld [vmem:[#allocation13 + $0x278] sm:$0xff]  ;;  %v2981_v21 = vld [vmem:[#allocation11 + $0x88] sm:$0xff]  ;;  %v5205_v23 = vpack.c.bf16 %v3514_v16, %v3512_v15  ;;  %v2996_v15 = vld [vmem:[#allocation11 + $0x100] sm:$0xff]  ;;  %v5223_v16 = vpack.c.bf16 %v3535_v10, %v3533_v9 }
 0x7b5   : > { %v2950_v25 = vmax.f32 %v2948_v22, 0.0  ;;  %v2983_v22 = vld [vmem:[#allocation11 + $0x98] sm:$0xff]  ;;  %v3016_v10 = vld [vmem:[#allocation11 + $0x1a0] sm:$0xff] }
 0x7b6   : > { %v2951_v26 = vmax.f32 %v2949_v24, 0.0  ;;  %v5081_v24 = vpack.c.bf16 %v2978_v18, %v2976_v13  ;;  %v5083_v29 = vpack.c.bf16 %v2983_v22, %v2981_v21  ;;  %5206 = vmatpush1.bf16.msra.mxu0 %v5205_v23  ;;  %v5221_v13 = vpack.c.bf16 %v3530_v6, %v3528_v5  ;;  %v3534_v18 = vld [vmem:[#allocation13 + $0x2f0] sm:$0xff]  ;;  %v3537_v21 = vld [vmem:[#allocation13 + $0x308] sm:$0xff]  ;;  %v3539_v22 = vld [vmem:[#allocation13 + $0x318] sm:$0xff] }
 0x7b7   : > { %v2954_v27 = vrot.slane %v2950_v25, 7  ;;  %v2980_v25 = vld [vmem:[#allocation11 + $0x80] sm:$0xff]  ;;  %v3001_v23 = vld [vmem:[#allocation11 + $0x128] sm:$0xff]  ;;  %v3014_v5 = vld [vmem:[#allocation11 + $0x190] sm:$0xff] }
 0x7b8   : > { %v2955_v28 = vrot.slane %v2951_v26, 7  ;;  %v5207_v26 = vpack.c.bf16 %v3519_v20, %v3517_v19  ;;  %v2998_v20 = vld [vmem:[#allocation11 + $0x110] sm:$0xff]  ;;  %v3017_v6 = vld [vmem:[#allocation11 + $0x1a8] sm:$0xff] }
 0x7b9   : > { %2958 = vst [vmem:[#allocation2] sm:$0xfe] %v2954_v27  ;;  %2960 = vst [vmem:[#allocation2 + $0x10] sm:$0x1] %v2954_v27  ;;  %v3516_v27 = vld [vmem:[#allocation13 + $0x260] sm:$0xff] }
 0x7ba   : > { %2959 = vst [vmem:[#allocation2 + $0x8] sm:$0xfe] %v2955_v28  ;;  %2961 = vst [vmem:[#allocation2 + $0x18] sm:$0x1] %v2955_v28  ;;  %v3518_v28 = vld [vmem:[#allocation13 + $0x270] sm:$0xff]  ;;  %5208 = vmatprep.subr.bf16.mxu0 %v5207_v26  ;;  %v5101_v26 = vpack.c.bf16 %v2998_v20, %v2996_v15 }
 0x7c0   : > { %v3028_v32 = vld [vmem:[#allocation2] sm:$0xfe]  ;;  %v3030_v33 = vld [vmem:[#allocation2 + $0x10] sm:$0x1] }
 0x7c1   : > { %v3029_v37 = vld [vmem:[#allocation2 + $0x8] sm:$0xfe]  ;;  %v3031_v38 = vld [vmem:[#allocation2 + $0x18] sm:$0x1]  ;;  %v3101_v39 = vrot.slane %v3028_v32, 1  ;;  %v3102_v40 = vrot.slane %v3030_v33, 1 }
 0x7c2   : > { %v3104_v41 = vrot.slane %v3029_v37, 1  ;;  %v3105_v42 = vrot.slane %v3031_v38, 1  ;;  %v2963_v53 = vld [vmem:[#allocation2 + $0x8] sm:$0xff]  ;;  %v3523_v32 = vld [vmem:[#allocation13 + $0x298] sm:$0xff]  ;;  %v5209_v37 = vpack.c.bf16 %v3518_v28, %v3516_v27  ;;  %v5085_v38 = vpack.c.bf16 %v2982_v30, %v2980_v25  ;;  %v3000_v27 = vld [vmem:[#allocation11 + $0x120] sm:$0xff] }
 0x7c3   : > { %v3103_v52 = vsel %vm752_vm0, %v3101_v39, %v3102_v40  ;;  %v2985_v33 = vld [vmem:[#allocation11 + $0xa8] sm:$0xff]  ;;  %v2984_v39 = vld [vmem:[#allocation11 + $0xa0] sm:$0xff]  ;;  %v5211_v40 = vpack.c.bf16 %v3523_v32, %v3521_v31  ;;  %v5227_v28 = vpack.c.bf16 %v3539_v22, %v3537_v21  ;;  %v3538_v30 = vld [vmem:[#allocation13 + $0x310] sm:$0xff] }
 0x7c4   : > { %v3106_v48 = vsel %vm752_vm0, %v3104_v41, %v3105_v42  ;;  %v3520_v41 = vld [vmem:[#allocation13 + $0x280] sm:$0xff]  ;;  %v3522_v42 = vld [vmem:[#allocation13 + $0x290] sm:$0xff]  ;;  %5210 = vmatpush1.bf16.msra.mxu0 %v5209_v37  ;;  %v3005_v37 = vld [vmem:[#allocation11 + $0x148] sm:$0xff] }
 0x7c5   : > { %3173 = vmatprep.mubr.f32.mxu1 %v3106_v48  ;;  %v2986_v48 = vld [vmem:[#allocation11 + $0xb0] sm:$0xff]  ;;  %5212 = vmatprep.subr.bf16.mxu0 %v5211_v40  ;;  %v3024_v22 = vld [vmem:[#allocation11 + $0x1e0] sm:$0xff] }
 0x7c6   : > { %3174 = vmatmul.mubr.f32.vlgmr.msra.gmra.mrb[6].mxu1 %v3103_v52  ;;  %v2991_v52 = vld [vmem:[#allocation11 + $0xd8] sm:$0xff]  ;;  %v5089_v54 = vpack.c.bf16 %v2986_v48, %v2984_v39  ;;  %v3002_v32 = vld [vmem:[#allocation11 + $0x130] sm:$0xff] }
 0x7c7   : > { %5070 = vmatpush1.bf16.msra.mxu1 %v5069_v47  ;;  %3244 = vmatprep.mubr.f32.mxu1 %v2963_v53  ;;  %v5087_v47 = vpack.c.bf16 %v2987_v35, %v2985_v33  ;;  %v5213_v53 = vpack.c.bf16 %v3522_v42, %v3520_v41  ;;  %v5091_v60 = vpack.c.bf16 %v2991_v52, %v2989_v51  ;;  %v3541_v33 = vld [vmem:[#allocation13 + $0x328] sm:$0xff]  ;;  %v3543_v35 = vld [vmem:[#allocation13 + $0x338] sm:$0xff]  ;;  %v3004_v41 = vld [vmem:[#allocation11 + $0x140] sm:$0xff] }
 0x7c8   : > { %5072 = vmatprep.subr.bf16.mxu1 %v5071_v49  ;;  %v3525_v49 = vld [vmem:[#allocation13 + $0x2a8] sm:$0xff]  ;;  %v5105_v40 = vpack.c.bf16 %v3002_v32, %v3000_v27  ;;  %v5231_v42 = vpack.c.bf16 %v3543_v35, %v3541_v33  ;;  %v3542_v48 = vld [vmem:[#allocation13 + $0x330] sm:$0xff]  ;;  %v3547_v52 = vld [vmem:[#allocation13 + $0x358] sm:$0xff] }
 0x7c9   : > { %v5215_v56 = vpack.c.bf16 %v3527_v50, %v3525_v49  ;;  %5214 = vmatpush1.bf16.msra.mxu0 %v5213_v53  ;;  %v3006_v50 = vld [vmem:[#allocation11 + $0x150] sm:$0xff]  ;;  %v3545_v51 = vld [vmem:[#allocation13 + $0x348] sm:$0xff]  ;;  %v3263_v33 = vld [vmem:[#allocation11 + $0x438] sm:$0xff] }
 0x7ca   : > { %v3009_v53 = vld [vmem:[#allocation11 + $0x168] sm:$0xff]  ;;  %v5235_v57 = vpack.c.bf16 %v3547_v52, %v3545_v51  ;;  %v3264_v52 = vld [vmem:[#allocation11 + $0x440] sm:$0xff] }
 0x7cb   : > { %5074 = vmatpush1.bf16.msra.mxu1 %v5073_v45  ;;  %v3529_v45 = vld [vmem:[#allocation13 + $0x2c8] sm:$0xff]  ;;  %5216 = vmatprep.subr.bf16.mxu0 %v5215_v56  ;;  %v5109_v56 = vpack.c.bf16 %v3006_v50, %v3004_v41  ;;  %v3262_v41 = vld [vmem:[#allocation11 + $0x430] sm:$0xff] }
 0x7cc   : > { %5076 = vmatprep.subr.bf16.mxu1 %v5075_v2  ;;  %v5093_v2 = vpack.c.bf16 %v2990_v43, %v2988_v55  ;;  %v5219_v4 = vpack.c.bf16 %v3531_v0, %v3529_v45  ;;  %v3008_v45 = vld [vmem:[#allocation11 + $0x160] sm:$0xff]  ;;  %v3010_v0 = vld [vmem:[#allocation11 + $0x170] sm:$0xff]  ;;  %v3252_v27 = vld [vmem:[#allocation2 + $0x8] sm:$0xfc] }
 0x7cd   : > { %5218 = vmatpush1.bf16.msra.mxu0 %v5217_v1  ;;  %v3261_v32 = vld [vmem:[#allocation11 + $0x428] sm:$0xff]  ;;  %v3327_v35 = vrot.slane %v3252_v27, 2  ;;  %v3295_v27 = vld [vmem:[#allocation11 + $0x538] sm:$0xff] }
 0x7ce   : > { %5220 = vmatprep.subr.bf16.mxu0 %v5219_v4  ;;  %v3012_v4 = vld [vmem:[#allocation11 + $0x180] sm:$0xff] }
 0x7cf   : > { %5078 = vmatpush1.bf16.msra.mxu1 %v5077_v12  ;;  %v2999_v12 = vld [vmem:[#allocation11 + $0x118] sm:$0xff]  ;;  %v5117_v8 = vpack.c.bf16 %v3014_v5, %v3012_v4 }
 0x7d0   : > { %5080 = vmatprep.subr.bf16.mxu1 %v5079_v17  ;;  %v3532_v17 = vld [vmem:[#allocation13 + $0x2e0] sm:$0xff]  ;;  %v5099_v19 = vpack.c.bf16 %v2999_v12, %v2997_v11  ;;  %v3018_v11 = vld [vmem:[#allocation11 + $0x1b0] sm:$0xff]  ;;  %v3021_v12 = vld [vmem:[#allocation11 + $0x1c8] sm:$0xff] }
 0x7d1   : > { %5222 = vmatpush1.bf16.msra.mxu0 %v5221_v13  ;;  %v5225_v25 = vpack.c.bf16 %v3534_v18, %v3532_v17  ;;  %v3023_v13 = vld [vmem:[#allocation11 + $0x1d8] sm:$0xff]  ;;  %v3022_v17 = vld [vmem:[#allocation11 + $0x1d0] sm:$0xff]  ;;  %v3025_v18 = vld [vmem:[#allocation11 + $0x1e8] sm:$0xff] }
 0x7d2   : > { %5224 = vmatprep.subr.bf16.mxu0 %v5223_v16  ;;  %v5123_v15 = vpack.c.bf16 %v3023_v13, %v3021_v12  ;;  %v3020_v16 = vld [vmem:[#allocation11 + $0x1c0] sm:$0xff]  ;;  %v3282_v13 = vld [vmem:[#allocation11 + $0x4d0] sm:$0xff] }
 0x7d3   : > { %5082 = vmatpush1.bf16.msra.mxu1 %v5081_v24  ;;  %v3003_v24 = vld [vmem:[#allocation11 + $0x138] sm:$0xff]  ;;  %v5125_v20 = vpack.c.bf16 %v3022_v17, %v3020_v16  ;;  %v3280_v12 = vld [vmem:[#allocation11 + $0x4c0] sm:$0xff] }
 0x7d4   : > { %5084 = vmatprep.subr.bf16.mxu1 %v5083_v29  ;;  %v3536_v29 = vld [vmem:[#allocation13 + $0x300] sm:$0xff]  ;;  %v5103_v31 = vpack.c.bf16 %v3003_v24, %v3001_v23  ;;  %v3026_v23 = vld [vmem:[#allocation11 + $0x1f0] sm:$0xff]  ;;  %v3257_v24 = vld [vmem:[#allocation11 + $0x408] sm:$0xff]  ;;  %v5157_v16 = vpack.c.bf16 %v3282_v13, %v3280_v12 }
 0x7d5   : > { %5226 = vmatpush1.bf16.msra.mxu0 %v5225_v25  ;;  %v5229_v39 = vpack.c.bf16 %v3538_v30, %v3536_v29  ;;  %v3259_v25 = vld [vmem:[#allocation11 + $0x418] sm:$0xff]  ;;  %v3256_v30 = vld [vmem:[#allocation11 + $0x400] sm:$0xff] }
 0x7d6   : > { %5228 = vmatprep.subr.bf16.mxu0 %v5227_v28  ;;  %v3254_v28 = vld [vmem:[#allocation2 + $0x18] sm:$0x3]  ;;  %v5131_v29 = vpack.c.bf16 %v3259_v25, %v3257_v24  ;;  %v3288_v24 = vld [vmem:[#allocation11 + $0x500] sm:$0xff]  ;;  %v3290_v25 = vld [vmem:[#allocation11 + $0x510] sm:$0xff] }
 0x7d7   : > { %5086 = vmatpush1.bf16.msra.mxu1 %v5085_v38  ;;  %v3007_v38 = vld [vmem:[#allocation11 + $0x158] sm:$0xff] }
 0x7d8   : > { %5088 = vmatprep.subr.bf16.mxu1 %v5087_v47  ;;  %v3540_v47 = vld [vmem:[#allocation13 + $0x320] sm:$0xff]  ;;  %v5107_v49 = vpack.c.bf16 %v3007_v38, %v3005_v37  ;;  %v3328_v37 = vrot.slane %v3254_v28, 2  ;;  %v5165_v28 = vpack.c.bf16 %v3290_v25, %v3288_v24 }
 0x7d9   : > { %5230 = vmatpush1.bf16.msra.mxu0 %v5229_v39  ;;  %v5233_v55 = vpack.c.bf16 %v3542_v48, %v3540_v47  ;;  %v5135_v39 = vpack.c.bf16 %v3263_v33, %v3261_v32  ;;  %v3265_v47 = vld [vmem:[#allocation11 + $0x448] sm:$0xff]  ;;  %v3267_v48 = vld [vmem:[#allocation11 + $0x458] sm:$0xff]  ;;  %v3552_v25 = vld [vmem:[#allocation13 + $0x380] sm:$0xff] }
 0x7da   : > { %5232 = vmatprep.subr.bf16.mxu0 %v5231_v42  ;;  %v2962_v42 = vld [vmem:[#allocation2] sm:$0xff]  ;;  %v5139_v51 = vpack.c.bf16 %v3267_v48, %v3265_v47  ;;  %v3297_v32 = vld [vmem:[#allocation11 + $0x548] sm:$0xff]  ;;  %v3299_v33 = vld [vmem:[#allocation11 + $0x558] sm:$0xff] }
 0x7db   : > { %5090 = vmatpush1.bf16.msra.mxu1 %v5089_v54  ;;  %v3011_v54 = vld [vmem:[#allocation11 + $0x178] sm:$0xff]  ;;  %v3300_v48 = vld [vmem:[#allocation11 + $0x560] sm:$0xff] }
 0x7dc   : > { %5092 = vmatprep.subr.bf16.mxu1 %v5091_v60  ;;  %v3546_v60 = vld [vmem:[#allocation13 + $0x350] sm:$0xff]  ;;  %v5111_v43 = vpack.c.bf16 %v3011_v54, %v3009_v53  ;;  %v3269_v54 = vld [vmem:[#allocation11 + $0x468] sm:$0xff] }
 0x7dd   : > { %5234 = vmatpush1.bf16.msra.mxu0 %v5233_v55  ;;  %v5237_v1 = vpack.c.bf16 %v3546_v60, %v3544_v58  ;;  %v3266_v53 = vld [vmem:[#allocation11 + $0x450] sm:$0xff]  ;;  %v3271_v55 = vld [vmem:[#allocation11 + $0x478] sm:$0xff]  ;;  %v3268_v58 = vld [vmem:[#allocation11 + $0x460] sm:$0xff] }
 0x7de   : > { %5236 = vmatprep.subr.bf16.mxu0 %v5235_v57  ;;  %v5143_v57 = vpack.c.bf16 %v3271_v55, %v3269_v54  ;;  %v3270_v60 = vld [vmem:[#allocation11 + $0x470] sm:$0xff]  ;;  %v3304_v54 = vld [vmem:[#allocation11 + $0x580] sm:$0xff] }
 0x7df   : > { %5094 = vmatpush1.bf16.msra.mxu1 %v5093_v2  ;;  %v5113_v2 = vpack.c.bf16 %v3010_v0, %v3008_v45  ;;  %v3275_v45 = vld [vmem:[#allocation11 + $0x498] sm:$0xff]  ;;  %v5145_v0 = vpack.c.bf16 %v3270_v60, %v3268_v58  ;;  %v3306_v55 = vld [vmem:[#allocation11 + $0x590] sm:$0xff] }
 0x7e0   : > { %5096 = vmatprep.subr.bf16.mxu1 %v5095_v7  ;;  %v3019_v7 = vld [vmem:[#allocation11 + $0x1b8] sm:$0xff]  ;;  %v5181_v58 = vpack.c.bf16 %v3306_v55, %v3304_v54  ;;  %v3405_v55 = vld [vmem:[%s6175_s10] sm:$0x3] }
 0x7e1   : > { %5238 = vmatpush1.bf16.msra.mxu0 %v5237_v1  ;;  %v5119_v9 = vpack.c.bf16 %v3019_v7, %v3017_v6  ;;  %v3274_v1 = vld [vmem:[#allocation11 + $0x490] sm:$0xff]  ;;  %v3276_v6 = vld [vmem:[#allocation11 + $0x4a0] sm:$0xff] }
 0x7e2   : > { %v5149_v4 = vpack.c.bf16 %v3274_v1, %v3272_v46  ;;  %v3278_v7 = vld [vmem:[#allocation11 + $0x4b0] sm:$0xff] }
 0x7e3   : > { %5098 = vmatpush1.bf16.msra.mxu1 %v5097_v14  ;;  %v5121_v14 = vpack.c.bf16 %v3018_v11, %v3016_v10  ;;  %v5153_v10 = vpack.c.bf16 %v3278_v7, %v3276_v6 }
 0x7e4   : > { %5100 = vmatprep.subr.bf16.mxu1 %v5099_v19  ;;  %v3027_v19 = vld [vmem:[#allocation11 + $0x1f8] sm:$0xff] }
 0x7e5   : > { %v5127_v21 = vpack.c.bf16 %v3027_v19, %v3025_v18  ;;  %v3284_v18 = vld [vmem:[#allocation11 + $0x4e0] sm:$0xff]  ;;  %v3286_v19 = vld [vmem:[#allocation11 + $0x4f0] sm:$0xff] }
 0x7e7   : > { %5102 = vmatpush1.bf16.msra.mxu1 %v5101_v26  ;;  %v5129_v26 = vpack.c.bf16 %v3026_v23, %v3024_v22  ;;  %v5161_v22 = vpack.c.bf16 %v3286_v19, %v3284_v18  ;;  %v3548_v19 = vld [vmem:[#allocation13 + $0x360] sm:$0xff] }
 0x7e8   : > { %5104 = vmatprep.subr.bf16.mxu1 %v5103_v31  ;;  %v3258_v31 = vld [vmem:[#allocation11 + $0x410] sm:$0xff] }
 0x7e9   : > { %v5133_v38 = vpack.c.bf16 %v3258_v31, %v3256_v30  ;;  %v3292_v30 = vld [vmem:[#allocation11 + $0x520] sm:$0xff]  ;;  %v3294_v31 = vld [vmem:[#allocation11 + $0x530] sm:$0xff] }
 0x7eb   : > { %5106 = vmatpush1.bf16.msra.mxu1 %v5105_v40  ;;  %v3260_v40 = vld [vmem:[#allocation11 + $0x420] sm:$0xff] }
 0x7ec   : > { %5108 = vmatprep.subr.bf16.mxu1 %v5107_v49  ;;  %v3329_v49 = vsel %vm976_vm1, %v3327_v35, %v3328_v37  ;;  %v5137_v50 = vpack.c.bf16 %v3262_v41, %v3260_v40  ;;  %v5169_v35 = vpack.c.bf16 %v3294_v31, %v3292_v30  ;;  %v5171_v37 = vpack.c.bf16 %v3299_v33, %v3297_v32  ;;  %v3301_v40 = vld [vmem:[#allocation11 + $0x568] sm:$0xff]  ;;  %v3303_v41 = vld [vmem:[#allocation11 + $0x578] sm:$0xff]  ;;  %v3556_v31 = vld [vmem:[#allocation13 + $0x3a0] sm:$0xff] }
 0x7ed   : > { %v5175_v47 = vpack.c.bf16 %v3303_v41, %v3301_v40  ;;  %v3558_v32 = vld [vmem:[#allocation13 + $0x3b0] sm:$0xff]  ;;  %v3561_v33 = vld [vmem:[#allocation13 + $0x3c8] sm:$0xff] }
 0x7ee   : > { %v3565_v41 = vld [vmem:[#allocation13 + $0x3e8] sm:$0xff] }
 0x7ef   : > { %5110 = vmatpush1.bf16.msra.mxu1 %v5109_v56  ;;  %v5141_v56 = vpack.c.bf16 %v3266_v53, %v3264_v52 }
 0x7f0   : > { %5112 = vmatprep.subr.bf16.mxu1 %v5111_v43  ;;  %v3273_v43 = vld [vmem:[#allocation11 + $0x488] sm:$0xff] }
 0x7f1   : > { %v5147_v44 = vpack.c.bf16 %v3275_v45, %v3273_v43  ;;  %v3308_v43 = vld [vmem:[#allocation11 + $0x5a0] sm:$0xff]  ;;  %v3310_v45 = vld [vmem:[#allocation11 + $0x5b0] sm:$0xff] }
 0x7f2   : > { %v5185_v46 = vpack.c.bf16 %v3310_v45, %v3308_v43 }
 0x7f3   : > { %5114 = vmatpush1.bf16.msra.mxu1 %v5113_v2  ;;  %v3277_v2 = vld [vmem:[#allocation11 + $0x4a8] sm:$0xff] }
 0x7f4   : > { %5116 = vmatprep.subr.bf16.mxu1 %v5115_v3  ;;  %v3279_v3 = vld [vmem:[#allocation11 + $0x4b8] sm:$0xff] }
 0x7f5   : > { %v5151_v5 = vpack.c.bf16 %v3279_v3, %v3277_v2  ;;  %v3312_v2 = vld [vmem:[#allocation11 + $0x5c0] sm:$0xff]  ;;  %v3314_v3 = vld [vmem:[#allocation11 + $0x5d0] sm:$0xff] }
 0x7f6   : > { %v5189_v6 = vpack.c.bf16 %v3314_v3, %v3312_v2 }
 0x7f7   : > { %5118 = vmatpush1.bf16.msra.mxu1 %v5117_v8  ;;  %v3281_v8 = vld [vmem:[#allocation11 + $0x4c8] sm:$0xff] }
 0x7f8   : > { %5120 = vmatprep.subr.bf16.mxu1 %v5119_v9  ;;  %v3283_v9 = vld [vmem:[#allocation11 + $0x4d8] sm:$0xff] }
 0x7f9   : > { %v5155_v11 = vpack.c.bf16 %v3283_v9, %v3281_v8  ;;  %v3316_v8 = vld [vmem:[#allocation11 + $0x5e0] sm:$0xff]  ;;  %v3318_v9 = vld [vmem:[#allocation11 + $0x5f0] sm:$0xff] }
 0x7fa   : > { %v5193_v12 = vpack.c.bf16 %v3318_v9, %v3316_v8  ;;  %v3442_v9 = vld [vmem:[#allocation13 + $0x38] sm:$0xff] }
 0x7fb   : > { %5122 = vmatpush1.bf16.msra.mxu1 %v5121_v14  ;;  %v3285_v14 = vld [vmem:[#allocation11 + $0x4e8] sm:$0xff] }
 0x7fc   : > { %5124 = vmatprep.subr.bf16.mxu1 %v5123_v15  ;;  %v3287_v15 = vld [vmem:[#allocation11 + $0x4f8] sm:$0xff] }
 0x7fd   : > { %v5159_v17 = vpack.c.bf16 %v3287_v15, %v3285_v14 }
 0x7ff   : > { %5126 = vmatpush1.bf16.msra.mxu1 %v5125_v20  ;;  %v3289_v20 = vld [vmem:[#allocation11 + $0x508] sm:$0xff] }
 0x800   : > { %5128 = vmatprep.subr.bf16.mxu1 %v5127_v21  ;;  %v3291_v21 = vld [vmem:[#allocation11 + $0x518] sm:$0xff] }
 0x801   : > { %v5163_v23 = vpack.c.bf16 %v3291_v21, %v3289_v20  ;;  %v3550_v20 = vld [vmem:[#allocation13 + $0x370] sm:$0xff] }
 0x802   : > { %v5241_v21 = vpack.c.bf16 %v3550_v20, %v3548_v19  ;;  %v3446_v19 = vld [vmem:[#allocation13 + $0x58] sm:$0xff] }
 0x803   : > { %5130 = vmatpush1.bf16.msra.mxu1 %v5129_v26  ;;  %v3293_v26 = vld [vmem:[#allocation11 + $0x528] sm:$0xff] }
 0x804   : > { %5132 = vmatprep.subr.bf16.mxu1 %v5131_v29  ;;  %v5167_v29 = vpack.c.bf16 %v3295_v27, %v3293_v26  ;;  %v3554_v26 = vld [vmem:[#allocation13 + $0x390] sm:$0xff] }
 0x805   : > { %v5245_v27 = vpack.c.bf16 %v3554_v26, %v3552_v25  ;;  %v3448_v25 = vld [vmem:[#allocation13 + $0x68] sm:$0xff]  ;;  %v3450_v26 = vld [vmem:[#allocation13 + $0x78] sm:$0xff] }
 0x806   : > { %3245 = vmatmul.mubr.f32.vlgmr.msra.gmra.mrb[6].mxu1 %v2962_v42 }
 0x807   : > { %5134 = vmatpush1.bf16.msra.mxu1 %v5133_v38  ;;  %3396 = vmatprep.mubr.f32.mxu1 %v3329_v49  ;;  %v3296_v38 = vld [vmem:[#allocation11 + $0x540] sm:$0xff]  ;;  %v3302_v49 = vld [vmem:[#allocation11 + $0x570] sm:$0xff] }
 0x808   : > { %5136 = vmatprep.subr.bf16.mxu1 %v5135_v39  ;;  %v3298_v39 = vld [vmem:[#allocation11 + $0x550] sm:$0xff]  ;;  %v5177_v52 = vpack.c.bf16 %v3302_v49, %v3300_v48  ;;  %v3564_v49 = vld [vmem:[#allocation13 + $0x3e0] sm:$0xff] }
 0x809   : > { %v5173_v42 = vpack.c.bf16 %v3298_v39, %v3296_v38  ;;  %v3560_v38 = vld [vmem:[#allocation13 + $0x3c0] sm:$0xff]  ;;  %v3562_v39 = vld [vmem:[#allocation13 + $0x3d0] sm:$0xff] }
 0x80b   : > { %5138 = vmatpush1.bf16.msra.mxu1 %v5137_v50  ;;  %v3305_v50 = vld [vmem:[#allocation11 + $0x588] sm:$0xff] }
 0x80c   : > { %5140 = vmatprep.subr.bf16.mxu1 %v5139_v51  ;;  %v3307_v51 = vld [vmem:[#allocation11 + $0x598] sm:$0xff] }
 0x80d   : > { %v5179_v53 = vpack.c.bf16 %v3307_v51, %v3305_v50  ;;  %v3566_v50 = vld [vmem:[#allocation13 + $0x3f0] sm:$0xff] }
 0x80e   : > { %v5257_v51 = vpack.c.bf16 %v3566_v50, %v3564_v49  ;;  %v3460_v49 = vld [vmem:[#allocation13 + $0xc8] sm:$0xff]  ;;  %v3462_v50 = vld [vmem:[#allocation13 + $0xd8] sm:$0xff] }
 0x80f   : > { %5142 = vmatpush1.bf16.msra.mxu1 %v5141_v56  ;;  %v3309_v56 = vld [vmem:[#allocation11 + $0x5a8] sm:$0xff] }
 0x810   : > { %5144 = vmatprep.subr.bf16.mxu1 %v5143_v57  ;;  %v3311_v57 = vld [vmem:[#allocation11 + $0x5b8] sm:$0xff] }
 0x811   : > { %v5183_v60 = vpack.c.bf16 %v3311_v57, %v3309_v56  ;;  %v3410_v56 = vrot.slane %v3405_v55, %v6039_v34  ;;  %v3414_v57 = vrot.slane %v3405_v55, %v6044_v36  ;;  %v3464_v55 = vld [vmem:[#allocation13 + $0xe8] sm:$0xff] }
 0x813   : > { %5146 = vmatpush1.bf16.msra.mxu1 %v5145_v0  ;;  %v3313_v0 = vld [vmem:[#allocation11 + $0x5c8] sm:$0xff] }
 0x814   : > { %5148 = vmatprep.subr.bf16.mxu1 %v5147_v44  ;;  %v3315_v44 = vld [vmem:[#allocation11 + $0x5d8] sm:$0xff] }
 0x815   : > { %v5187_v1 = vpack.c.bf16 %v3315_v44, %v3313_v0 }
 0x817   : > { %5150 = vmatpush1.bf16.msra.mxu1 %v5149_v4  ;;  %v3317_v4 = vld [vmem:[#allocation11 + $0x5e8] sm:$0xff] }
 0x818   : > { %5152 = vmatprep.subr.bf16.mxu1 %v5151_v5  ;;  %v3319_v5 = vld [vmem:[#allocation11 + $0x5f8] sm:$0xff] }
 0x819   : > { %v5191_v7 = vpack.c.bf16 %v3319_v5, %v3317_v4  ;;  %v3435_v4 = vld [vmem:[#allocation13] sm:$0xff]  ;;  %v3437_v5 = vld [vmem:[#allocation13 + $0x10] sm:$0xff] }
 0x81a   : > { %v5261_v61 = vpack.c.bf16 %v3437_v5, %v3435_v4  ;;  %v3474_v4 = vld [vmem:[#allocation13 + $0x138] sm:$0xff] }
 0x81b   : > { %5154 = vmatpush1.bf16.msra.mxu1 %v5153_v10  ;;  %v3251_v10 = vld [vmem:[#allocation2] sm:$0xfc] }
 0x81c   : > { %5156 = vmatprep.subr.bf16.mxu1 %v5155_v11  ;;  %v3253_v11 = vld [vmem:[#allocation2 + $0x10] sm:$0x3]  ;;  %v3324_v13 = vrot.slane %v3251_v10, 2 }
 0x81d   : > { %v3325_v14 = vrot.slane %v3253_v11, 2 }
 0x81f   : > { %5158 = vmatpush1.bf16.msra.mxu1 %v5157_v16  ;;  %v3326_v15 = vsel %vm976_vm1, %v3324_v13, %v3325_v14  ;;  %v3549_v16 = vld [vmem:[#allocation13 + $0x368] sm:$0xff] }
 0x820   : > { %5160 = vmatprep.subr.bf16.mxu1 %v5159_v17  ;;  %v3551_v17 = vld [vmem:[#allocation13 + $0x378] sm:$0xff] }
 0x821   : > { %v5239_v18 = vpack.c.bf16 %v3551_v17, %v3549_v16  ;;  %v3441_v16 = vld [vmem:[#allocation13 + $0x30] sm:$0xff] }
 0x823   : > { %5162 = vmatpush1.bf16.msra.mxu1 %v5161_v22  ;;  %5240 = vmatprep.subr.bf16.mxu0 %v5239_v18  ;;  %v3553_v22 = vld [vmem:[#allocation13 + $0x388] sm:$0xff] }
 0x824   : > { %5164 = vmatprep.subr.bf16.mxu1 %v5163_v23  ;;  %5242 = vmatpush1.bf16.msra.mxu0 %v5241_v21  ;;  %v3555_v23 = vld [vmem:[#allocation13 + $0x398] sm:$0xff]  ;;  %v3444_v18 = vld [vmem:[#allocation13 + $0x48] sm:$0xff] }
 0x825   : > { %v5243_v24 = vpack.c.bf16 %v3555_v23, %v3553_v22  ;;  %v5267_v22 = vpack.c.bf16 %v3446_v19, %v3444_v18  ;;  %v3443_v23 = vld [vmem:[#allocation13 + $0x40] sm:$0xff]  ;;  %v3486_v18 = vld [vmem:[#allocation13 + $0x198] sm:$0xff] }
 0x827   : > { %5166 = vmatpush1.bf16.msra.mxu1 %v5165_v28  ;;  %5244 = vmatprep.subr.bf16.mxu0 %v5243_v24  ;;  %v3557_v28 = vld [vmem:[#allocation13 + $0x3a8] sm:$0xff]  ;;  %v3445_v24 = vld [vmem:[#allocation13 + $0x50] sm:$0xff] }
 0x828   : > { %5168 = vmatprep.subr.bf16.mxu1 %v5167_v29  ;;  %5246 = vmatpush1.bf16.msra.mxu0 %v5245_v27  ;;  %v3559_v29 = vld [vmem:[#allocation13 + $0x3b8] sm:$0xff]  ;;  %v5269_v27 = vpack.c.bf16 %v3445_v24, %v3443_v23  ;;  %v3488_v23 = vld [vmem:[#allocation13 + $0x1a8] sm:$0xff] }
 0x829   : > { %v5247_v30 = vpack.c.bf16 %v3559_v29, %v3557_v28  ;;  %v5271_v28 = vpack.c.bf16 %v3450_v26, %v3448_v25  ;;  %v3447_v29 = vld [vmem:[#allocation13 + $0x60] sm:$0xff]  ;;  %v3490_v24 = vld [vmem:[#allocation13 + $0x1b8] sm:$0xff] }
 0x82a   : > { %v5311_v26 = vpack.c.bf16 %v3490_v24, %v3488_v23 }
 0x82b   : > { %5170 = vmatpush1.bf16.msra.mxu1 %v5169_v35  ;;  %v5249_v35 = vpack.c.bf16 %v3558_v32, %v3556_v31  ;;  %5248 = vmatprep.subr.bf16.mxu0 %v5247_v30  ;;  %v3449_v30 = vld [vmem:[#allocation13 + $0x70] sm:$0xff]  ;;  %v3452_v31 = vld [vmem:[#allocation13 + $0x88] sm:$0xff]  ;;  %v3454_v32 = vld [vmem:[#allocation13 + $0x98] sm:$0xff] }
 0x82c   : > { %5172 = vmatprep.subr.bf16.mxu1 %v5171_v37  ;;  %v3563_v37 = vld [vmem:[#allocation13 + $0x3d8] sm:$0xff] }
 0x82d   : > { %v5251_v40 = vpack.c.bf16 %v3563_v37, %v3561_v33  ;;  %5250 = vmatpush1.bf16.msra.mxu0 %v5249_v35  ;;  %v5273_v33 = vpack.c.bf16 %v3449_v30, %v3447_v29  ;;  %v5275_v35 = vpack.c.bf16 %v3454_v32, %v3452_v31  ;;  %v3451_v37 = vld [vmem:[#allocation13 + $0x80] sm:$0xff]  ;;  %v3492_v29 = vld [vmem:[#allocation13 + $0x1c8] sm:$0xff]  ;;  %v3494_v30 = vld [vmem:[#allocation13 + $0x1d8] sm:$0xff] }
 0x82e   : > { %v5315_v32 = vpack.c.bf16 %v3494_v30, %v3492_v29 }
 0x82f   : > { %5174 = vmatpush1.bf16.msra.mxu1 %v5173_v42  ;;  %v3567_v42 = vld [vmem:[#allocation13 + $0x3f8] sm:$0xff]  ;;  %5252 = vmatprep.subr.bf16.mxu0 %v5251_v40 }
 0x830   : > { %5176 = vmatprep.subr.bf16.mxu1 %v5175_v47  ;;  %v5253_v47 = vpack.c.bf16 %v3562_v39, %v3560_v38  ;;  %v5255_v48 = vpack.c.bf16 %v3567_v42, %v3565_v41  ;;  %v3453_v38 = vld [vmem:[#allocation13 + $0x90] sm:$0xff]  ;;  %v3456_v39 = vld [vmem:[#allocation13 + $0xa8] sm:$0xff]  ;;  %v3458_v40 = vld [vmem:[#allocation13 + $0xb8] sm:$0xff] }
 0x831   : > { %v5277_v41 = vpack.c.bf16 %v3453_v38, %v3451_v37  ;;  %v5279_v42 = vpack.c.bf16 %v3458_v40, %v3456_v39  ;;  %v3496_v37 = vld [vmem:[#allocation13 + $0x1e8] sm:$0xff]  ;;  %v3498_v38 = vld [vmem:[#allocation13 + $0x1f8] sm:$0xff] }
 0x832   : > { %5254 = vmatpush1.bf16.msra.mxu0 %v5253_v47  ;;  %v3455_v47 = vld [vmem:[#allocation13 + $0xa0] sm:$0xff]  ;;  %v5319_v40 = vpack.c.bf16 %v3498_v38, %v3496_v37 }
 0x833   : > { %5178 = vmatpush1.bf16.msra.mxu1 %v5177_v52  ;;  %5256 = vmatprep.subr.bf16.mxu0 %v5255_v48  ;;  %v3436_v52 = vld [vmem:[#allocation13 + $0x8] sm:$0xff]  ;;  %v3457_v48 = vld [vmem:[#allocation13 + $0xb0] sm:$0xff] }
 0x834   : > { %5180 = vmatprep.subr.bf16.mxu1 %v5179_v53  ;;  %v3438_v53 = vld [vmem:[#allocation13 + $0x18] sm:$0xff] }
 0x835   : > { %v5259_v54 = vpack.c.bf16 %v3438_v53, %v3436_v52  ;;  %v5283_v52 = vpack.c.bf16 %v3462_v50, %v3460_v49  ;;  %v3459_v53 = vld [vmem:[#allocation13 + $0xc0] sm:$0xff] }
 0x836   : > { %5258 = vmatpush1.bf16.msra.mxu0 %v5257_v51  ;;  %v5281_v51 = vpack.c.bf16 %v3457_v48, %v3455_v47  ;;  %v3728_v47 = vld [vmem:[#allocation13 + $0x408] sm:$0xff]  ;;  %v3730_v48 = vld [vmem:[#allocation13 + $0x418] sm:$0xff] }
 0x837   : > { %5182 = vmatpush1.bf16.msra.mxu1 %v5181_v58  ;;  %5260 = vmatprep.subr.bf16.mxu0 %v5259_v54  ;;  %v3461_v54 = vld [vmem:[#allocation13 + $0xd0] sm:$0xff] }
 0x838   : > { %5184 = vmatprep.subr.bf16.mxu1 %v5183_v60 }
 0x83b   : > { %5186 = vmatpush1.bf16.msra.mxu1 %v5185_v46 }
 0x83c   : > { %5188 = vmatprep.subr.bf16.mxu1 %v5187_v1 }
 0x83f   : > { %5190 = vmatpush1.bf16.msra.mxu1 %v5189_v6  ;;  %v3440_v6 = vld [vmem:[#allocation13 + $0x28] sm:$0xff] }
 0x840   : > { %5192 = vmatprep.subr.bf16.mxu1 %v5191_v7  ;;  %v5263_v14 = vpack.c.bf16 %v3442_v9, %v3440_v6  ;;  %v3476_v9 = vld [vmem:[#allocation13 + $0x148] sm:$0xff] }
 0x843   : > { %5194 = vmatpush1.bf16.msra.mxu1 %v5193_v12 }
 0x846   : > { %3397 = vmatmul.mubr.f32.vlgmr.msra.gmra.mrb[6].mxu1 %v3326_v15  ;;  %v3439_v15 = vld [vmem:[#allocation13 + $0x20] sm:$0xff] }
 0x847   : > { %v5265_v21 = vpack.c.bf16 %v3441_v16, %v3439_v15  ;;  %v3479_v15 = vld [vmem:[#allocation13 + $0x160] sm:$0xff]  ;;  %v3481_v16 = vld [vmem:[#allocation13 + $0x170] sm:$0xff] }
 0x848   : > { %v5305_v19 = vpack.c.bf16 %v3481_v16, %v3479_v15  ;;  %v3748_v15 = vld [vmem:[#allocation13 + $0x4a8] sm:$0xff]  ;;  %v3750_v16 = vld [vmem:[#allocation13 + $0x4b8] sm:$0xff] }
 0x919   : > { %v3398_v58 = vpop.f32.mrb[6].mxu1 }
 0x91a   : > { %v3417_v60 = vadd.f32 %v3410_v56, %v3398_v58  ;;  %v3400_v43 = vpop.f32.mrb[7].mxu1  ;;  %v3466_v56 = vld [vmem:[#allocation13 + $0xf8] sm:$0xff] }
 0x91b   : > { %v3418_v45 = vadd.f32 %v3414_v57, %v3400_v43  ;;  %v5285_v57 = vpack.c.bf16 %v3461_v54, %v3459_v53  ;;  %v5287_v58 = vpack.c.bf16 %v3466_v56, %v3464_v55  ;;  %v3465_v43 = vld [vmem:[#allocation13 + $0xf0] sm:$0xff]  ;;  %v3727_v53 = vld [vmem:[#allocation13 + $0x400] sm:$0xff]  ;;  %v3732_v55 = vld [vmem:[#allocation13 + $0x428] sm:$0xff] }
 0x91c   : > { %v3419_v0 = vmax.f32 %v3417_v60, 0.0  ;;  %v3463_v60 = vld [vmem:[#allocation13 + $0xe0] sm:$0xff]  ;;  %v3729_v54 = vld [vmem:[#allocation13 + $0x410] sm:$0xff]  ;;  %v3734_v56 = vld [vmem:[#allocation13 + $0x438] sm:$0xff] }
 0x91d   : > { %v3420_v44 = vmax.f32 %v3418_v45, 0.0  ;;  %v3468_v45 = vld [vmem:[#allocation13 + $0x108] sm:$0xff] }
 0x91e   : > { %v3421_v46 = vadd.f32 %v3419_v0, %v2481_v62  ;;  %v3470_v0 = vld [vmem:[#allocation13 + $0x118] sm:$0xff] }
 0x91f   : > { %v3422_v1 = vadd.f32 %v3420_v44, %v2482_v63  ;;  %v5289_v44 = vpack.c.bf16 %v3465_v43, %v3463_v60  ;;  %v5325_v60 = vpack.c.bf16 %v3729_v54, %v3727_v53  ;;  %v5327_v43 = vpack.c.bf16 %v3734_v56, %v3732_v55  ;;  %v3767_v55 = vld [vmem:[#allocation13 + $0x540] sm:$0xff]  ;;  %v3769_v56 = vld [vmem:[#allocation13 + $0x550] sm:$0xff] }
 0x920   : > { %v3425_v2 = vrot.slane %v3421_v46, 7  ;;  %v5291_v46 = vpack.c.bf16 %v3470_v0, %v3468_v45  ;;  %v3731_v45 = vld [vmem:[#allocation13 + $0x420] sm:$0xff]  ;;  %v3733_v0 = vld [vmem:[#allocation13 + $0x430] sm:$0xff] }
 0x921   : > { %v3426_v3 = vrot.slane %v3422_v1, 7  ;;  %v3467_v1 = vld [vmem:[#allocation13 + $0x100] sm:$0xff] }
 0x922   : > { %3429 = vst [vmem:[#allocation2] sm:$0xfe] %v3425_v2  ;;  %3431 = vst [vmem:[#allocation2 + $0x10] sm:$0x1] %v3425_v2  ;;  %v3469_v2 = vld [vmem:[#allocation13 + $0x110] sm:$0xff] }
 0x923   : > { %3430 = vst [vmem:[#allocation2 + $0x8] sm:$0xfe] %v3426_v3  ;;  %3432 = vst [vmem:[#allocation2 + $0x18] sm:$0x1] %v3426_v3  ;;  %v3472_v3 = vld [vmem:[#allocation13 + $0x128] sm:$0xff]  ;;  %v5293_v5 = vpack.c.bf16 %v3469_v2, %v3467_v1  ;;  %v3738_v1 = vld [vmem:[#allocation13 + $0x458] sm:$0xff] }
 0x924   : > { %v5295_v6 = vpack.c.bf16 %v3474_v4, %v3472_v3  ;;  %v5329_v3 = vpack.c.bf16 %v3733_v0, %v3731_v45  ;;  %v3771_v45 = vld [vmem:[#allocation13 + $0x560] sm:$0xff]  ;;  %v3773_v0 = vld [vmem:[#allocation13 + $0x570] sm:$0xff] }
 0x929   : > { %v3499_v7 = vld [vmem:[#allocation2] sm:$0xfe]  ;;  %v3501_v8 = vld [vmem:[#allocation2 + $0x10] sm:$0x1] }
 0x92a   : > { %v3500_v10 = vld [vmem:[#allocation2 + $0x8] sm:$0xfe]  ;;  %v3502_v11 = vld [vmem:[#allocation2 + $0x18] sm:$0x1]  ;;  %v3572_v12 = vrot.slane %v3499_v7, 1  ;;  %v3573_v59 = vrot.slane %v3501_v8, 1 }
 0x92b   : > { %v3575_v62 = vrot.slane %v3500_v10, 1  ;;  %v3576_v13 = vrot.slane %v3502_v11, 1  ;;  %v3434_v20 = vld [vmem:[#allocation2 + $0x8] sm:$0xff]  ;;  %v3471_v7 = vld [vmem:[#allocation13 + $0x120] sm:$0xff]  ;;  %v3473_v8 = vld [vmem:[#allocation13 + $0x130] sm:$0xff] }
 0x92c   : > { %v3574_v17 = vsel %vm752_vm0, %v3572_v12, %v3573_v59  ;;  %v3478_v10 = vld [vmem:[#allocation13 + $0x158] sm:$0xff]  ;;  %v5297_v11 = vpack.c.bf16 %v3473_v8, %v3471_v7  ;;  %v3475_v59 = vld [vmem:[#allocation13 + $0x140] sm:$0xff]  ;;  %v3723_v50 = vld [vmem:[#allocation2 + $0x8] sm:$0xfc] }
 0x92d   : > { %v3577_v63 = vsel %vm752_vm0, %v3575_v62, %v3576_v13  ;;  %v5299_v12 = vpack.c.bf16 %v3478_v10, %v3476_v9  ;;  %v3477_v62 = vld [vmem:[#allocation13 + $0x150] sm:$0xff]  ;;  %v3480_v13 = vld [vmem:[#allocation13 + $0x168] sm:$0xff]  ;;  %v3742_v8 = vld [vmem:[#allocation13 + $0x478] sm:$0xff] }
 0x92e   : > { %3644 = vmatprep.mubr.f32.mxu0 %v3577_v63  ;;  %v5301_v63 = vpack.c.bf16 %v3477_v62, %v3475_v59  ;;  %v3740_v7 = vld [vmem:[#allocation13 + $0x468] sm:$0xff]  ;;  %v3746_v62 = vld [vmem:[#allocation13 + $0x498] sm:$0xff] }
 0x92f   : > { %3645 = vmatmul.mubr.f32.vlgmr.msra.gmra.mrb[6].mxu0 %v3574_v17  ;;  %v3484_v17 = vld [vmem:[#allocation13 + $0x188] sm:$0xff]  ;;  %v5335_v10 = vpack.c.bf16 %v3742_v8, %v3740_v7 }
 0x930   : > { %5262 = vmatpush1.bf16.msra.mxu0 %v5261_v61  ;;  %3715 = vmatprep.mubr.f32.mxu0 %v3434_v20  ;;  %v3482_v61 = vld [vmem:[#allocation13 + $0x178] sm:$0xff]  ;;  %v5307_v20 = vpack.c.bf16 %v3486_v18, %v3484_v17  ;;  %v3744_v59 = vld [vmem:[#allocation13 + $0x488] sm:$0xff]  ;;  %v5343_v18 = vpack.c.bf16 %v3750_v16, %v3748_v15 }
 0x931   : > { %5264 = vmatprep.subr.bf16.mxu0 %v5263_v14  ;;  %v5303_v14 = vpack.c.bf16 %v3482_v61, %v3480_v13  ;;  %v5339_v61 = vpack.c.bf16 %v3746_v62, %v3744_v59 }
 0x934   : > { %5266 = vmatpush1.bf16.msra.mxu0 %v5265_v21  ;;  %v3483_v21 = vld [vmem:[#allocation13 + $0x180] sm:$0xff] }
 0x935   : > { %5268 = vmatprep.subr.bf16.mxu0 %v5267_v22  ;;  %v3485_v22 = vld [vmem:[#allocation13 + $0x190] sm:$0xff] }
 0x936   : > { %v5309_v25 = vpack.c.bf16 %v3485_v22, %v3483_v21  ;;  %v3752_v21 = vld [vmem:[#allocation13 + $0x4c8] sm:$0xff]  ;;  %v3754_v22 = vld [vmem:[#allocation13 + $0x4d8] sm:$0xff] }
 0x937   : > { %v5347_v24 = vpack.c.bf16 %v3754_v22, %v3752_v21 }
 0x938   : > { %5270 = vmatpush1.bf16.msra.mxu0 %v5269_v27  ;;  %v3487_v27 = vld [vmem:[#allocation13 + $0x1a0] sm:$0xff] }
 0x939   : > { %5272 = vmatprep.subr.bf16.mxu0 %v5271_v28  ;;  %v3489_v28 = vld [vmem:[#allocation13 + $0x1b0] sm:$0xff] }
 0x93a   : > { %v5313_v31 = vpack.c.bf16 %v3489_v28, %v3487_v27  ;;  %v3756_v27 = vld [vmem:[#allocation13 + $0x4e8] sm:$0xff]  ;;  %v3758_v28 = vld [vmem:[#allocation13 + $0x4f8] sm:$0xff] }
 0x93b   : > { %v5351_v30 = vpack.c.bf16 %v3758_v28, %v3756_v27 }
 0x93c   : > { %5274 = vmatpush1.bf16.msra.mxu0 %v5273_v33  ;;  %v3491_v33 = vld [vmem:[#allocation13 + $0x1c0] sm:$0xff] }
 0x93d   : > { %5276 = vmatprep.subr.bf16.mxu0 %v5275_v35  ;;  %v3493_v35 = vld [vmem:[#allocation13 + $0x1d0] sm:$0xff] }
 0x93e   : > { %v5317_v39 = vpack.c.bf16 %v3493_v35, %v3491_v33  ;;  %v3760_v33 = vld [vmem:[#allocation13 + $0x508] sm:$0xff]  ;;  %v3762_v35 = vld [vmem:[#allocation13 + $0x518] sm:$0xff] }
 0x93f   : > { %v5355_v38 = vpack.c.bf16 %v3762_v35, %v3760_v33 }
 0x940   : > { %5278 = vmatpush1.bf16.msra.mxu0 %v5277_v41  ;;  %v3495_v41 = vld [vmem:[#allocation13 + $0x1e0] sm:$0xff] }
 0x941   : > { %5280 = vmatprep.subr.bf16.mxu0 %v5279_v42  ;;  %v3497_v42 = vld [vmem:[#allocation13 + $0x1f0] sm:$0xff] }
 0x942   : > { %v5321_v49 = vpack.c.bf16 %v3497_v42, %v3495_v41  ;;  %v3764_v41 = vld [vmem:[#allocation13 + $0x528] sm:$0xff]  ;;  %v3766_v42 = vld [vmem:[#allocation13 + $0x538] sm:$0xff] }
 0x944   : > { %5282 = vmatpush1.bf16.msra.mxu0 %v5281_v51  ;;  %v3725_v51 = vld [vmem:[#allocation2 + $0x18] sm:$0x3] }
 0x945   : > { %5284 = vmatprep.subr.bf16.mxu0 %v5283_v52  ;;  %v5323_v52 = vpack.c.bf16 %v3730_v48, %v3728_v47  ;;  %v5359_v48 = vpack.c.bf16 %v3766_v42, %v3764_v41 }
 0x948   : > { %5286 = vmatpush1.bf16.msra.mxu0 %v5285_v57  ;;  %v3798_v57 = vrot.slane %v3723_v50, 2  ;;  %v3765_v50 = vld [vmem:[#allocation13 + $0x530] sm:$0xff] }
 0x949   : > { %5288 = vmatprep.subr.bf16.mxu0 %v5287_v58  ;;  %v3799_v58 = vrot.slane %v3725_v51, 2  ;;  %v3768_v51 = vld [vmem:[#allocation13 + $0x548] sm:$0xff] }
 0x94b   : > { %v3800_v2 = vsel %vm976_vm1, %v3798_v57, %v3799_v58  ;;  %v3772_v57 = vld [vmem:[#allocation13 + $0x568] sm:$0xff]  ;;  %v3774_v58 = vld [vmem:[#allocation13 + $0x578] sm:$0xff] }
 0x94c   : > { %5290 = vmatpush1.bf16.msra.mxu0 %v5289_v44  ;;  %v3433_v44 = vld [vmem:[#allocation2] sm:$0xff] }
 0x94d   : > { %5292 = vmatprep.subr.bf16.mxu0 %v5291_v46  ;;  %v3736_v46 = vld [vmem:[#allocation13 + $0x448] sm:$0xff] }
 0x94e   : > { %v5331_v4 = vpack.c.bf16 %v3738_v1, %v3736_v46  ;;  %v3778_v46 = vld [vmem:[#allocation13 + $0x598] sm:$0xff]  ;;  %v5369_v1 = vpack.c.bf16 %v3773_v0, %v3771_v45 }
 0x950   : > { %5294 = vmatpush1.bf16.msra.mxu0 %v5293_v5  ;;  %v3735_v5 = vld [vmem:[#allocation13 + $0x440] sm:$0xff] }
 0x951   : > { %5296 = vmatprep.subr.bf16.mxu0 %v5295_v6  ;;  %v3737_v6 = vld [vmem:[#allocation13 + $0x450] sm:$0xff] }
 0x952   : > { %v5333_v9 = vpack.c.bf16 %v3737_v6, %v3735_v5  ;;  %v3780_v5 = vld [vmem:[#allocation13 + $0x5a8] sm:$0xff]  ;;  %v3782_v6 = vld [vmem:[#allocation13 + $0x5b8] sm:$0xff] }
 0x953   : > { %v5375_v8 = vpack.c.bf16 %v3782_v6, %v3780_v5 }
 0x954   : > { %5298 = vmatpush1.bf16.msra.mxu0 %v5297_v11  ;;  %v3739_v11 = vld [vmem:[#allocation13 + $0x460] sm:$0xff] }
 0x955   : > { %5300 = vmatprep.subr.bf16.mxu0 %v5299_v12  ;;  %v3741_v12 = vld [vmem:[#allocation13 + $0x470] sm:$0xff] }
 0x956   : > { %v5337_v13 = vpack.c.bf16 %v3741_v12, %v3739_v11  ;;  %v3784_v11 = vld [vmem:[#allocation13 + $0x5c8] sm:$0xff]  ;;  %v3786_v12 = vld [vmem:[#allocation13 + $0x5d8] sm:$0xff] }
 0x957   : > { %v5379_v62 = vpack.c.bf16 %v3786_v12, %v3784_v11 }
 0x958   : > { %5302 = vmatpush1.bf16.msra.mxu0 %v5301_v63  ;;  %v3743_v63 = vld [vmem:[#allocation13 + $0x480] sm:$0xff] }
 0x959   : > { %5304 = vmatprep.subr.bf16.mxu0 %v5303_v14  ;;  %v3745_v14 = vld [vmem:[#allocation13 + $0x490] sm:$0xff] }
 0x95a   : > { %v5341_v17 = vpack.c.bf16 %v3745_v14, %v3743_v63  ;;  %v3788_v63 = vld [vmem:[#allocation13 + $0x5e8] sm:$0xff]  ;;  %v3790_v14 = vld [vmem:[#allocation13 + $0x5f8] sm:$0xff] }
 0x95b   : > { %v5383_v16 = vpack.c.bf16 %v3790_v14, %v3788_v63 }
 0x95c   : > { %5306 = vmatpush1.bf16.msra.mxu0 %v5305_v19  ;;  %v3747_v19 = vld [vmem:[#allocation13 + $0x4a0] sm:$0xff] }
 0x95d   : > { %5308 = vmatprep.subr.bf16.mxu0 %v5307_v20  ;;  %v3749_v20 = vld [vmem:[#allocation13 + $0x4b0] sm:$0xff] }
 0x95e   : > { %v5345_v23 = vpack.c.bf16 %v3749_v20, %v3747_v19  ;;  %v3722_v19 = vld [vmem:[#allocation2] sm:$0xfc]  ;;  %v3724_v20 = vld [vmem:[#allocation2 + $0x10] sm:$0x3] }
 0x95f   : > { %v3795_v22 = vrot.slane %v3722_v19, 2 }
 0x960   : > { %5310 = vmatpush1.bf16.msra.mxu0 %v5309_v25  ;;  %v3751_v25 = vld [vmem:[#allocation13 + $0x4c0] sm:$0xff] }
 0x961   : > { %5312 = vmatprep.subr.bf16.mxu0 %v5311_v26  ;;  %v3753_v26 = vld [vmem:[#allocation13 + $0x4d0] sm:$0xff] }
 0x962   : > { %v5349_v29 = vpack.c.bf16 %v3753_v26, %v3751_v25  ;;  %v3876_v25 = vld [vmem:[%s6176_s16] sm:$0x3] }
 0x963   : > { %v3881_v26 = vrot.slane %v3876_v25, %v6039_v34  ;;  %v3885_v27 = vrot.slane %v3876_v25, %v6044_v36 }
 0x964   : > { %5314 = vmatpush1.bf16.msra.mxu0 %v5313_v31  ;;  %v3755_v31 = vld [vmem:[#allocation13 + $0x4e0] sm:$0xff] }
 0x965   : > { %5316 = vmatprep.subr.bf16.mxu0 %v5315_v32  ;;  %v3757_v32 = vld [vmem:[#allocation13 + $0x4f0] sm:$0xff] }
 0x966   : > { %v5353_v37 = vpack.c.bf16 %v3757_v32, %v3755_v31 }
 0x968   : > { %5318 = vmatpush1.bf16.msra.mxu0 %v5317_v39  ;;  %v3759_v39 = vld [vmem:[#allocation13 + $0x500] sm:$0xff] }
 0x969   : > { %5320 = vmatprep.subr.bf16.mxu0 %v5319_v40  ;;  %v3761_v40 = vld [vmem:[#allocation13 + $0x510] sm:$0xff] }
 0x96a   : > { %v5357_v47 = vpack.c.bf16 %v3761_v40, %v3759_v39 }
 0x96c   : > { %5322 = vmatpush1.bf16.msra.mxu0 %v5321_v49  ;;  %v3763_v49 = vld [vmem:[#allocation13 + $0x520] sm:$0xff] }
 0x96d   : > { %5324 = vmatprep.subr.bf16.mxu0 %v5323_v52  ;;  %v3770_v52 = vld [vmem:[#allocation13 + $0x558] sm:$0xff]  ;;  %v5361_v53 = vpack.c.bf16 %v3765_v50, %v3763_v49 }
 0x96e   : > { %v5363_v54 = vpack.c.bf16 %v3770_v52, %v3768_v51 }
 0x96f   : > { %3716 = vmatmul.mubr.f32.vlgmr.msra.gmra.mrb[6].mxu0 %v3433_v44  ;;  %v3776_v44 = vld [vmem:[#allocation13 + $0x588] sm:$0xff] }
 0x970   : > { %5326 = vmatpush1.bf16.msra.mxu0 %v5325_v60  ;;  %3867 = vmatprep.mubr.f32.mxu0 %v3800_v2  ;;  %v5365_v60 = vpack.c.bf16 %v3769_v56, %v3767_v55  ;;  %v5371_v2 = vpack.c.bf16 %v3778_v46, %v3776_v44 }
 0x971   : > { %5328 = vmatprep.subr.bf16.mxu0 %v5327_v43  ;;  %v5367_v43 = vpack.c.bf16 %v3774_v58, %v3772_v57 }
 0x974   : > { %5330 = vmatpush1.bf16.msra.mxu0 %v5329_v3  ;;  %v3775_v3 = vld [vmem:[#allocation13 + $0x580] sm:$0xff] }
 0x975   : > { %5332 = vmatprep.subr.bf16.mxu0 %v5331_v4  ;;  %v3777_v4 = vld [vmem:[#allocation13 + $0x590] sm:$0xff] }
 0x976   : > { %v5373_v7 = vpack.c.bf16 %v3777_v4, %v3775_v3 }
 0x978   : > { %5334 = vmatpush1.bf16.msra.mxu0 %v5333_v9  ;;  %v3779_v9 = vld [vmem:[#allocation13 + $0x5a0] sm:$0xff] }
 0x979   : > { %5336 = vmatprep.subr.bf16.mxu0 %v5335_v10  ;;  %v3781_v10 = vld [vmem:[#allocation13 + $0x5b0] sm:$0xff] }
 0x97a   : > { %v5377_v59 = vpack.c.bf16 %v3781_v10, %v3779_v9 }
 0x97c   : > { %5338 = vmatpush1.bf16.msra.mxu0 %v5337_v13  ;;  %v3783_v13 = vld [vmem:[#allocation13 + $0x5c0] sm:$0xff] }
 0x97d   : > { %5340 = vmatprep.subr.bf16.mxu0 %v5339_v61  ;;  %v3785_v61 = vld [vmem:[#allocation13 + $0x5d0] sm:$0xff] }
 0x97e   : > { %v5381_v15 = vpack.c.bf16 %v3785_v61, %v3783_v13 }
 0x980   : > { %5342 = vmatpush1.bf16.msra.mxu0 %v5341_v17  ;;  %v3787_v17 = vld [vmem:[#allocation13 + $0x5e0] sm:$0xff] }
 0x981   : > { %5344 = vmatprep.subr.bf16.mxu0 %v5343_v18  ;;  %v3789_v18 = vld [vmem:[#allocation13 + $0x5f0] sm:$0xff] }
 0x982   : > { %v5385_v21 = vpack.c.bf16 %v3789_v18, %v3787_v17 }
 0x984   : > { %5346 = vmatpush1.bf16.msra.mxu0 %v5345_v23  ;;  %v3796_v23 = vrot.slane %v3724_v20, 2 }
 0x985   : > { %5348 = vmatprep.subr.bf16.mxu0 %v5347_v24 }
 0x986   : > { %v3797_v24 = vsel %vm976_vm1, %v3795_v22, %v3796_v23 }
 0x988   : > { %5350 = vmatpush1.bf16.msra.mxu0 %v5349_v29 }
 0x989   : > { %5352 = vmatprep.subr.bf16.mxu0 %v5351_v30 }
 0x98c   : > { %5354 = vmatpush1.bf16.msra.mxu0 %v5353_v37 }
 0x98d   : > { %5356 = vmatprep.subr.bf16.mxu0 %v5355_v38 }
 0x990   : > { %5358 = vmatpush1.bf16.msra.mxu0 %v5357_v47 }
 0x991   : > { %5360 = vmatprep.subr.bf16.mxu0 %v5359_v48 }
 0x994   : > { %5362 = vmatpush1.bf16.msra.mxu0 %v5361_v53 }
 0x995   : > { %5364 = vmatprep.subr.bf16.mxu0 %v5363_v54 }
 0x998   : > { %5366 = vmatpush1.bf16.msra.mxu0 %v5365_v60 }
 0x999   : > { %5368 = vmatprep.subr.bf16.mxu0 %v5367_v43 }
 0x99c   : > { %5370 = vmatpush1.bf16.msra.mxu0 %v5369_v1 }
 0x99d   : > { %5372 = vmatprep.subr.bf16.mxu0 %v5371_v2 }
 0x9a0   : > { %5374 = vmatpush1.bf16.msra.mxu0 %v5373_v7 }
 0x9a1   : > { %5376 = vmatprep.subr.bf16.mxu0 %v5375_v8 }
 0x9a4   : > { %5378 = vmatpush1.bf16.msra.mxu0 %v5377_v59 }
 0x9a5   : > { %5380 = vmatprep.subr.bf16.mxu0 %v5379_v62 }
 0x9a8   : > { %5382 = vmatpush1.bf16.msra.mxu0 %v5381_v15 }
 0x9a9   : > { %5384 = vmatprep.subr.bf16.mxu0 %v5383_v16 }
 0x9ac   : > { %5386 = vmatpush1.bf16.msra.mxu0 %v5385_v21 }
 0x9af   : > { %3868 = vmatmul.mubr.f32.vlgmr.msra.gmra.mrb[6].mxu0 %v3797_v24 }
 0xa82   : > { %v3869_v28 = vpop.f32.mrb[6].mxu0 }
 0xa83   : > { %v3888_v29 = vadd.f32 %v3881_v26, %v3869_v28  ;;  %v3871_v30 = vpop.f32.mrb[7].mxu0 }
 0xa84   : > { %v3889_v31 = vadd.f32 %v3885_v27, %v3871_v30 }
 0xa85   : > { %3890 = vst [vmem:[%s596_s22] sm:$0xff] %v3888_v29 }
 0xa86   : > { %3891 = vst [vmem:[%s596_s22 + $0x8] sm:$0xff] %v3889_v31 }
 0xa87 PF: > { %s6178_s12 = sld [smem:[#allocation18_spill]] }
 0xa8d   : > { %s29_s18 = sadd.s32 1, %s6178_s12  }
 0xa8e   : > { %p26_p9 = scmp.ge.s32.totalorder %s29_s18, 4  }
 0xa90   :  { %28 = sbr.rel (!%p26_p9) target bundleno = 9 (0x9), region = 153 }
 0xa97   :  { %3913 = vsyncpa [#allocation4], 1 }
 0xa98   :  { %3915 = vsyncpa [#allocation4 + $0x1], 1 }
 0xa99   :  { %3916 = vsyncpa [#allocation6], 1 }
 0xa9a   :  { %3917 = vsyncpa [#allocation9], 1 }
 0xa9b   :  { %3918 = vsyncpa [#allocation12], 1 }

</bundles_post_ra>
